<compile_context>
chip_gen: v7x
topology: tpu7x:2x2x1
jax: 0.10.0
libtpu: 0.0.40
codegen_flags: <defaults>
</compile_context>

<pallas_src>
import functools

import jax
import jax.numpy as jnp
from jax.experimental import pallas as pl
from jax.experimental.pallas import tpu as pltpu

_LANE = 128
_SUBLANE_BF16 = 16
_VMEM_LIMIT = 32 * 1024 * 1024     # explicit scoped-VMEM budget (<= physical on v5e/v6e/v7x)


def _round_up(x, m):
    return (x + m - 1) // m * m


def _largest_divisor_le(n, cap):
    cap = max(1, min(n, cap))
    for d in range(cap, 0, -1):
        if n % d == 0:
            return d
    return 1


# ----------------------------------------------------------------------------
# Conv2d(k=3, s=2, p=1) + bias + ReLU  (one pallas_call per layer)
# ----------------------------------------------------------------------------
def _conv3x3s2_kernel(x_ref, w_ref, b_ref, o_ref, acc_ref, *, wh):
    """Bt images of a 3x3 / stride-2 / pad-1 conv with bias + ReLU fused.

    x_ref  : (Bt, 4, Hh*Wh, Cin) bf16 — zero-padded 2x2 parity-split planes,
             spatial flattened so every tap is a contiguous row slice.
    w_ref  : (9, Cin, Cout)      bf16 — tap-major weights (tap = 3*kh + kw).
    b_ref  : (1, Cout)           f32.
    o_ref  : (Bt, L, Cout)       bf16 — flattened rows r = i*Wh + j
             (rows with j == Wo are junk and are dropped by the wrapper).
    acc_ref: (L, Cout)           f32 VMEM scratch accumulator (reused per image).
    """
    bt = x_ref.shape[0]
    n_rows = acc_ref.shape[0]
    for b in range(bt):
        for t in range(9):
            kh, kw = t // 3, t % 3
            parity = 2 * (kh & 1) + (kw & 1)
            start = (kh >> 1) * wh + (kw >> 1)
            patch = x_ref[b, parity, pl.ds(start, n_rows), :]
            contrib = jnp.dot(patch, w_ref[t],
                              preferred_element_type=jnp.float32)
            if t == 0:
                acc_ref[...] = contrib
            else:
                acc_ref[...] += contrib
        y = jnp.maximum(acc_ref[...] + b_ref[...], 0.0)       # bias + ReLU, f32
        o_ref[b, :, :] = y.astype(o_ref.dtype)


def _pad_parity_split_flat(x):
    """(B, H, W, C) -> (B, 4, Hh*Wh, C): zero-pad by 1 + 2x2 space-to-depth.

    plane[b, 2*ph+pw, qh*Wh+qw, c] == x_padded[b, 2*qh+ph, 2*qw+pw, c].
    Bijective data movement only — no im2col replication.
    """
    B, H, W, C = x.shape
    Ho, Wo = (H + 1) // 2, (W + 1) // 2
    Hh, Wh = Ho + 1, Wo + 1
    xp = jnp.pad(x, ((0, 0), (1, 2 * Hh - H - 1), (1, 2 * Wh - W - 1), (0, 0)))
    xp = xp.reshape(B, Hh, 2, Wh, 2, C).transpose(0, 2, 4, 1, 3, 5)
    return xp.reshape(B, 4, Hh * Wh, C), Ho, Wo


def _pick_conv_batch_tile(B, Hh, Wh, L, budget_bytes=6 << 20, cap=8):
    """Largest batch tile whose lane-padded, double-buffered blocks fit VMEM."""
    in_bytes = 4 * _round_up(Hh * Wh, _SUBLANE_BF16) * _LANE * 2
    out_bytes = _round_up(L, _SUBLANE_BF16) * _LANE * 2
    per_image = 2 * (in_bytes + out_bytes)          # double-buffered in + out
    bt = max(1, min(cap, budget_bytes // max(per_image, 1)))
    bt = _largest_divisor_le(B, bt)
    if B // bt < 2:            # keep >= 2 grid steps (megacore / pipelining)
        bt = _largest_divisor_le(B, max(1, B // 2))
    return max(1, bt)


def conv2d_relu(x, w, b):
    """x: (B,H,W,Cin) bf16 NHWC, w: (9,Cin,Cout) bf16, b: (1,Cout) f32.
    Returns (B, Ho, Wo, Cout) bf16."""
    B, H, W, Cin = x.shape
    Cout = w.shape[-1]
    xs, Ho, Wo = _pad_parity_split_flat(x)
    Hh, Wh = Ho + 1, Wo + 1
    L = (Ho - 1) * Wh + Wo                 # flattened output rows (incl. junk)
    Bt = _pick_conv_batch_tile(B, Hh, Wh, L)

    flat = pl.pallas_call(
        functools.partial(_conv3x3s2_kernel, wh=Wh),
        out_shape=jax.ShapeDtypeStruct((B, L, Cout), jnp.bfloat16),
        grid=(B // Bt,),
        in_specs=[
            pl.BlockSpec((Bt, 4, Hh * Wh, Cin), lambda i: (i, 0, 0, 0)),
            pl.BlockSpec((9, Cin, Cout), lambda i: (0, 0, 0)),
            pl.BlockSpec((1, Cout), lambda i: (0, 0)),
        ],
        out_specs=pl.BlockSpec((Bt, L, Cout), lambda i: (i, 0, 0)),
        scratch_shapes=[pltpu.VMEM((L, Cout), jnp.float32)],
        compiler_params=pltpu.CompilerParams(
            dimension_semantics=("parallel",),
            vmem_limit_bytes=_VMEM_LIMIT),
    )(xs, w, b)

    # Un-flatten: row r = i*Wh + j  ->  (i, j); drop the junk j == Wo column.
    y = jnp.pad(flat, ((0, 0), (0, Ho * Wh - L), (0, 0)))
    return y.reshape(B, Ho, Wh, Cout)[:, :, :Wo, :]


# ----------------------------------------------------------------------------
# Fused MLP head: fc1 + ReLU + fc2, K-streamed fc1 weight, lane-dense output
# ----------------------------------------------------------------------------
def _mlp_head_kernel(x_ref, w1_ref, b1_ref, w2_ref, b2_ref, o_ref, acc_ref):
    k = pl.program_id(1)

    @pl.when(k == 0)
    def _():
        acc_ref[...] = jnp.zeros_like(acc_ref)

    acc_ref[...] += jnp.dot(x_ref[...], w1_ref[...],
                            preferred_element_type=jnp.float32)

    @pl.when(k == pl.num_programs(1) - 1)
    def _():
        h = jnp.maximum(acc_ref[...] + b1_ref[...], 0.0).astype(jnp.bfloat16)
        y = jnp.dot(h, w2_ref[...], preferred_element_type=jnp.float32)
        o_ref[...] = y + b2_ref[...]


def mlp_head(x, w1, b1, w2, b2, n_actions):
    """x: (B, K) bf16.  w1: (K, Hd) bf16 (streamed over K).  w2: (Hd, Np) bf16
    with Np lane-dense.  Returns (B, n_actions) f32."""
    B, K = x.shape
    Hd = w1.shape[1]
    Np = w2.shape[1]
    tm = B if B <= 128 else 128                        # v7x-friendly batch tile
    if K % _LANE == 0:
        tk = _largest_divisor_le(K // _LANE, 16) * _LANE   # (tk, Hd) weight tiles
    else:
        tk = K

    out = pl.pallas_call(
        _mlp_head_kernel,
        out_shape=jax.ShapeDtypeStruct((B, Np), jnp.float32),
        grid=(pl.cdiv(B, tm), K // tk),
        in_specs=[
            pl.BlockSpec((tm, tk), lambda i, k: (i, k)),
            pl.BlockSpec((tk, Hd), lambda i, k: (k, 0)),
            pl.BlockSpec((1, Hd), lambda i, k: (0, 0)),
            pl.BlockSpec((Hd, Np), lambda i, k: (0, 0)),
            pl.BlockSpec((1, Np), lambda i, k: (0, 0)),
        ],
        out_specs=pl.BlockSpec((tm, Np), lambda i, k: (i, 0)),
        scratch_shapes=[pltpu.VMEM((tm, Hd), jnp.float32)],
        compiler_params=pltpu.CompilerParams(
            dimension_semantics=("parallel", "arbitrary"),
            vmem_limit_bytes=_VMEM_LIMIT),
    )(x, w1, b1, w2, b2)
    return out[:, :n_actions]                          # drop lane padding


# ----------------------------------------------------------------------------
# Parameters (deterministic init, pre-laid-out for the kernels) and forward
# ----------------------------------------------------------------------------
def init_dqn_params(key, input_size, n_actions):
    C, H, W = input_size
    h1, w1s = (H + 1) // 2, (W + 1) // 2
    h2, w2s = (h1 + 1) // 2, (w1s + 1) // 2
    h3, w3s = (h2 + 1) // 2, (w2s + 1) // 2
    flat = h3 * w3s * 128
    n_pad = _round_up(max(n_actions, 1), _LANE)        # lane-dense fc2 width

    def u(k, shape, fan_in):
        bound = 1.0 / (fan_in ** 0.5)
        return jax.random.uniform(k, shape, jnp.float32, -bound, bound)

    ks = jax.random.split(key, 10)

    def conv_param(kw_, kb_, cin, cout):
        w = u(kw_, (cout, cin, 3, 3), cin * 9)                  # torch OIHW
        b = u(kb_, (cout,), cin * 9)
        w = w.transpose(2, 3, 1, 0).reshape(9, cin, cout)       # tap-major
        return w.astype(jnp.bfloat16), b.reshape(1, cout)       # bf16 / f32

    c1w, c1b = conv_param(ks[0], ks[1], C, 32)
    c2w, c2b = conv_param(ks[2], ks[3], 32, 64)
    c3w, c3b = conv_param(ks[4], ks[5], 64, 128)

    fc1_w = u(ks[6], (512, flat), flat)          # torch (out, in); in = (c,h,w)
    fc1_b = u(ks[7], (512,), flat)
    fc2_w = u(ks[8], (n_actions, 512), 512)
    fc2_b = u(ks[9], (n_actions,), 512)

    # Permute fc1's input columns from torch's NCHW-flatten order to the NHWC
    # flatten order used here, then pre-transpose to (in, out) — once at init.
    fc1_w = fc1_w.reshape(512, 128, h3, w3s).transpose(0, 2, 3, 1)
    fc1_w = fc1_w.reshape(512, flat).T.astype(jnp.bfloat16)     # (flat, 512)

    # Pre-transpose fc2 and zero-pad its output dim to a lane-dense width.
    fc2_w_p = jnp.zeros((512, n_pad), jnp.float32).at[:, :n_actions].set(fc2_w.T)
    fc2_b_p = jnp.zeros((n_pad,), jnp.float32).at[:n_actions].set(fc2_b)

    return {
        "conv1_w": c1w, "conv1_b": c1b,
        "conv2_w": c2w, "conv2_b": c2b,
        "conv3_w": c3w, "conv3_b": c3b,
        "fc1_w": fc1_w, "fc1_b": fc1_b.reshape(1, 512),
        "fc2_w": fc2_w_p.astype(jnp.bfloat16), "fc2_b": fc2_b_p.reshape(1, n_pad),
    }


def dqn_forward(params, x, *, n_actions):
    """x: (B, C, H, W) float32 (torch NCHW) -> (B, n_actions) float32."""
    x = jnp.transpose(x, (0, 2, 3, 1)).astype(jnp.bfloat16)    # NHWC, bf16 once
    h = conv2d_relu(x, params["conv1_w"], params["conv1_b"])
    h = conv2d_relu(h, params["conv2_w"], params["conv2_b"])
    h = conv2d_relu(h, params["conv3_w"], params["conv3_b"])
    h = h.reshape(h.shape[0], -1)      # NHWC flatten; fc1_w permuted to match
    return mlp_head(h, params["fc1_w"], params["fc1_b"],
                    params["fc2_w"], params["fc2_b"], n_actions)


if __name__ == "__main__":
    input_size = (4, 16, 16)    # (channels, H, W)
    n_actions = 6
    batch = 2

    key = jax.random.PRNGKey(0)
    k_param, k_x = jax.random.split(key)
    params = init_dqn_params(k_param, input_size, n_actions)
    x = jax.random.normal(k_x, (batch,) + input_size, dtype=jnp.float32)

    fwd = jax.jit(functools.partial(dqn_forward, n_actions=n_actions))
    out = jax.block_until_ready(fwd(params, x))
    assert out.shape == (batch, n_actions), out.shape
    assert out.dtype == jnp.float32
    assert bool(jnp.all(jnp.isfinite(out)))
    print("KERNEL_OK")
</pallas_src>

<mosaic_0001>
module attributes {stable_mosaic.version = 11 : i64} {
  func.func @_conv3x3s2_kernel(%arg0: i32, %arg1: memref<1x4x81x4xbf16, #tpu.memory_space<vmem>>, %arg2: memref<9x4x32xbf16, #tpu.memory_space<vmem>>, %arg3: memref<1x32xf32, #tpu.memory_space<vmem>>, %arg4: memref<1x71x32xbf16, #tpu.memory_space<vmem>>, %arg5: memref<71x32xf32, #tpu.memory_space<vmem>>) attributes {dimension_semantics = [#tpu.dimension_semantics<parallel>], iteration_bounds = array<i64: 2>, scalar_prefetch = 0 : i64, scratch_operands = 1 : i64, tpu.core_type = #tpu.core_type<tc>, window_params = [{transform_indices = @transform_0, window_bounds = array<i64: 1, 4, 81, 4>}, {pipeline_mode = #tpu.pipeline_mode<synchronous>, transform_indices = @transform_1, window_bounds = array<i64: 9, 4, 32>}, {pipeline_mode = #tpu.pipeline_mode<synchronous>, transform_indices = @transform_2, window_bounds = array<i64: 1, 32>}, {transform_indices = @transform_3, window_bounds = array<i64: 1, 71, 32>}]} {
    %c0 = arith.constant 0 : index
    %c0_0 = arith.constant 0 : index
    %c0_1 = arith.constant 0 : index
    %c0_2 = arith.constant 0 : index
    %0 = vector.load %arg1[%c0, %c0_0, %c0_1, %c0_2] : memref<1x4x81x4xbf16, #tpu.memory_space<vmem>>, vector<1x1x71x4xbf16>
    %1 = vector.shape_cast %0 : vector<1x1x71x4xbf16> to vector<71x4xbf16>
    %c0_3 = arith.constant 0 : index
    %c0_4 = arith.constant 0 : index
    %c0_5 = arith.constant 0 : index
    %2 = vector.load %arg2[%c0_3, %c0_4, %c0_5] : memref<9x4x32xbf16, #tpu.memory_space<vmem>>, vector<1x4x32xbf16>
    %3 = vector.shape_cast %2 : vector<1x4x32xbf16> to vector<4x32xbf16>
    %cst = arith.constant dense<0.000000e+00> : vector<71x32xf32>
    %4 = tpu.matmul %1, %3, %cst {dimension_numbers = #tpu.dot_dimension_numbers<[1], [0], [0], [1], [0, 0, 1, 1], [], []>} : vector<71x4xbf16>, vector<4x32xbf16>, vector<71x32xf32> -> vector<71x32xf32>
    %c0_6 = arith.constant 0 : index
    %c0_7 = arith.constant 0 : index
    %5 = vector.load %arg5[%c0_6, %c0_7] : memref<71x32xf32, #tpu.memory_space<vmem>>, vector<71x32xf32>
    tpu.vector_store %arg5[%c0_6, %c0_7], %4 {strides = array<i32>} : memref<71x32xf32, #tpu.memory_space<vmem>>, vector<71x32xf32>,
    %c0_8 = arith.constant 0 : index
    %c1 = arith.constant 1 : index
    %c0_9 = arith.constant 0 : index
    %c0_10 = arith.constant 0 : index
    %6 = vector.load %arg1[%c0_8, %c1, %c0_9, %c0_10] : memref<1x4x81x4xbf16, #tpu.memory_space<vmem>>, vector<1x1x71x4xbf16>
    %7 = vector.shape_cast %6 : vector<1x1x71x4xbf16> to vector<71x4xbf16>
    %c1_11 = arith.constant 1 : index
    %c0_12 = arith.constant 0 : index
    %c0_13 = arith.constant 0 : index
    %8 = vector.load %arg2[%c1_11, %c0_12, %c0_13] : memref<9x4x32xbf16, #tpu.memory_space<vmem>>, vector<1x4x32xbf16>
    %9 = vector.shape_cast %8 : vector<1x4x32xbf16> to vector<4x32xbf16>
    %cst_14 = arith.constant dense<0.000000e+00> : vector<71x32xf32>
    %10 = tpu.matmul %7, %9, %cst_14 {dimension_numbers = #tpu.dot_dimension_numbers<[1], [0], [0], [1], [0, 0, 1, 1], [], []>} : vector<71x4xbf16>, vector<4x32xbf16>, vector<71x32xf32> -> vector<71x32xf32>
    %c0_15 = arith.constant 0 : index
    %c0_16 = arith.constant 0 : index
    %11 = vector.load %arg5[%c0_15, %c0_16] : memref<71x32xf32, #tpu.memory_space<vmem>>, vector<71x32xf32>
    %12 = arith.addf %11, %10 : vector<71x32xf32>
    %c0_17 = arith.constant 0 : index
    %c0_18 = arith.constant 0 : index
    %13 = vector.load %arg5[%c0_17, %c0_18] : memref<71x32xf32, #tpu.memory_space<vmem>>, vector<71x32xf32>
    tpu.vector_store %arg5[%c0_17, %c0_18], %12 {strides = array<i32>} : memref<71x32xf32, #tpu.memory_space<vmem>>, vector<71x32xf32>,
    %c0_19 = arith.constant 0 : index
    %c0_20 = arith.constant 0 : index
    %c1_21 = arith.constant 1 : index
    %c0_22 = arith.constant 0 : index
    %14 = vector.load %arg1[%c0_19, %c0_20, %c1_21, %c0_22] : memref<1x4x81x4xbf16, #tpu.memory_space<vmem>>, vector<1x1x71x4xbf16>
    %15 = vector.shape_cast %14 : vector<1x1x71x4xbf16> to vector<71x4xbf16>
    %c2 = arith.constant 2 : index
    %c0_23 = arith.constant 0 : index
    %c0_24 = arith.constant 0 : index
    %16 = vector.load %arg2[%c2, %c0_23, %c0_24] : memref<9x4x32xbf16, #tpu.memory_space<vmem>>, vector<1x4x32xbf16>
    %17 = vector.shape_cast %16 : vector<1x4x32xbf16> to vector<4x32xbf16>
    %cst_25 = arith.constant dense<0.000000e+00> : vector<71x32xf32>
    %18 = tpu.matmul %15, %17, %cst_25 {dimension_numbers = #tpu.dot_dimension_numbers<[1], [0], [0], [1], [0, 0, 1, 1], [], []>} : vector<71x4xbf16>, vector<4x32xbf16>, vector<71x32xf32> -> vector<71x32xf32>
    %c0_26 = arith.constant 0 : index
    %c0_27 = arith.constant 0 : index
    %19 = vector.load %arg5[%c0_26, %c0_27] : memref<71x32xf32, #tpu.memory_space<vmem>>, vector<71x32xf32>
    %20 = arith.addf %19, %18 : vector<71x32xf32>
    %c0_28 = arith.constant 0 : index
    %c0_29 = arith.constant 0 : index
    %21 = vector.load %arg5[%c0_28, %c0_29] : memref<71x32xf32, #tpu.memory_space<vmem>>, vector<71x32xf32>
    tpu.vector_store %arg5[%c0_28, %c0_29], %20 {strides = array<i32>} : memref<71x32xf32, #tpu.memory_space<vmem>>, vector<71x32xf32>,
    %c0_30 = arith.constant 0 : index
    %c2_31 = arith.constant 2 : index
    %c0_32 = arith.constant 0 : index
    %c0_33 = arith.constant 0 : index
    %22 = vector.load %arg1[%c0_30, %c2_31, %c0_32, %c0_33] : memref<1x4x81x4xbf16, #tpu.memory_space<vmem>>, vector<1x1x71x4xbf16>
    %23 = vector.shape_cast %22 : vector<1x1x71x4xbf16> to vector<71x4xbf16>
    %c3 = arith.constant 3 : index
    %c0_34 = arith.constant 0 : index
    %c0_35 = arith.constant 0 : index
    %24 = vector.load %arg2[%c3, %c0_34, %c0_35] : memref<9x4x32xbf16, #tpu.memory_space<vmem>>, vector<1x4x32xbf16>
    %25 = vector.shape_cast %24 : vector<1x4x32xbf16> to vector<4x32xbf16>
    %cst_36 = arith.constant dense<0.000000e+00> : vector<71x32xf32>
    %26 = tpu.matmul %23, %25, %cst_36 {dimension_numbers = #tpu.dot_dimension_numbers<[1], [0], [0], [1], [0, 0, 1, 1], [], []>} : vector<71x4xbf16>, vector<4x32xbf16>, vector<71x32xf32> -> vector<71x32xf32>
    %c0_37 = arith.constant 0 : index
    %c0_38 = arith.constant 0 : index
    %27 = vector.load %arg5[%c0_37, %c0_38] : memref<71x32xf32, #tpu.memory_space<vmem>>, vector<71x32xf32>
    %28 = arith.addf %27, %26 : vector<71x32xf32>
    %c0_39 = arith.constant 0 : index
    %c0_40 = arith.constant 0 : index
    %29 = vector.load %arg5[%c0_39, %c0_40] : memref<71x32xf32, #tpu.memory_space<vmem>>, vector<71x32xf32>
    tpu.vector_store %arg5[%c0_39, %c0_40], %28 {strides = array<i32>} : memref<71x32xf32, #tpu.memory_space<vmem>>, vector<71x32xf32>,
    %c0_41 = arith.constant 0 : index
    %c3_42 = arith.constant 3 : index
    %c0_43 = arith.constant 0 : index
    %c0_44 = arith.constant 0 : index
    %30 = vector.load %arg1[%c0_41, %c3_42, %c0_43, %c0_44] : memref<1x4x81x4xbf16, #tpu.memory_space<vmem>>, vector<1x1x71x4xbf16>
    %31 = vector.shape_cast %30 : vector<1x1x71x4xbf16> to vector<71x4xbf16>
    %c4 = arith.constant 4 : index
    %c0_45 = arith.constant 0 : index
    %c0_46 = arith.constant 0 : index
    %32 = vector.load %arg2[%c4, %c0_45, %c0_46] : memref<9x4x32xbf16, #tpu.memory_space<vmem>>, vector<1x4x32xbf16>
    %33 = vector.shape_cast %32 : vector<1x4x32xbf16> to vector<4x32xbf16>
    %cst_47 = arith.constant dense<0.000000e+00> : vector<71x32xf32>
    %34 = tpu.matmul %31, %33, %cst_47 {dimension_numbers = #tpu.dot_dimension_numbers<[1], [0], [0], [1], [0, 0, 1, 1], [], []>} : vector<71x4xbf16>, vector<4x32xbf16>, vector<71x32xf32> -> vector<71x32xf32>
    %c0_48 = arith.constant 0 : index
    %c0_49 = arith.constant 0 : index
    %35 = vector.load %arg5[%c0_48, %c0_49] : memref<71x32xf32, #tpu.memory_space<vmem>>, vector<71x32xf32>
    %36 = arith.addf %35, %34 : vector<71x32xf32>
    %c0_50 = arith.constant 0 : index
    %c0_51 = arith.constant 0 : index
    %37 = vector.load %arg5[%c0_50, %c0_51] : memref<71x32xf32, #tpu.memory_space<vmem>>, vector<71x32xf32>
    tpu.vector_store %arg5[%c0_50, %c0_51], %36 {strides = array<i32>} : memref<71x32xf32, #tpu.memory_space<vmem>>, vector<71x32xf32>,
    %c0_52 = arith.constant 0 : index
    %c2_53 = arith.constant 2 : index
    %c1_54 = arith.constant 1 : index
    %c0_55 = arith.constant 0 : index
    %38 = vector.load %arg1[%c0_52, %c2_53, %c1_54, %c0_55] : memref<1x4x81x4xbf16, #tpu.memory_space<vmem>>, vector<1x1x71x4xbf16>
    %39 = vector.shape_cast %38 : vector<1x1x71x4xbf16> to vector<71x4xbf16>
    %c5 = arith.constant 5 : index
    %c0_56 = arith.constant 0 : index
    %c0_57 = arith.constant 0 : index
    %40 = vector.load %arg2[%c5, %c0_56, %c0_57] : memref<9x4x32xbf16, #tpu.memory_space<vmem>>, vector<1x4x32xbf16>
    %41 = vector.shape_cast %40 : vector<1x4x32xbf16> to vector<4x32xbf16>
    %cst_58 = arith.constant dense<0.000000e+00> : vector<71x32xf32>
    %42 = tpu.matmul %39, %41, %cst_58 {dimension_numbers = #tpu.dot_dimension_numbers<[1], [0], [0], [1], [0, 0, 1, 1], [], []>} : vector<71x4xbf16>, vector<4x32xbf16>, vector<71x32xf32> -> vector<71x32xf32>
    %c0_59 = arith.constant 0 : index
    %c0_60 = arith.constant 0 : index
    %43 = vector.load %arg5[%c0_59, %c0_60] : memref<71x32xf32, #tpu.memory_space<vmem>>, vector<71x32xf32>
    %44 = arith.addf %43, %42 : vector<71x32xf32>
    %c0_61 = arith.constant 0 : index
    %c0_62 = arith.constant 0 : index
    %45 = vector.load %arg5[%c0_61, %c0_62] : memref<71x32xf32, #tpu.memory_space<vmem>>, vector<71x32xf32>
    tpu.vector_store %arg5[%c0_61, %c0_62], %44 {strides = array<i32>} : memref<71x32xf32, #tpu.memory_space<vmem>>, vector<71x32xf32>,
    %c0_63 = arith.constant 0 : index
    %c0_64 = arith.constant 0 : index
    %c9 = arith.constant 9 : index
    %c0_65 = arith.constant 0 : index
    %46 = vector.load %arg1[%c0_63, %c0_64, %c9, %c0_65] : memref<1x4x81x4xbf16, #tpu.memory_space<vmem>>, vector<1x1x71x4xbf16>
    %47 = vector.shape_cast %46 : vector<1x1x71x4xbf16> to vector<71x4xbf16>
    %c6 = arith.constant 6 : index
    %c0_66 = arith.constant 0 : index
    %c0_67 = arith.constant 0 : index
    %48 = vector.load %arg2[%c6, %c0_66, %c0_67] : memref<9x4x32xbf16, #tpu.memory_space<vmem>>, vector<1x4x32xbf16>
    %49 = vector.shape_cast %48 : vector<1x4x32xbf16> to vector<4x32xbf16>
    %cst_68 = arith.constant dense<0.000000e+00> : vector<71x32xf32>
    %50 = tpu.matmul %47, %49, %cst_68 {dimension_numbers = #tpu.dot_dimension_numbers<[1], [0], [0], [1], [0, 0, 1, 1], [], []>} : vector<71x4xbf16>, vector<4x32xbf16>, vector<71x32xf32> -> vector<71x32xf32>
    %c0_69 = arith.constant 0 : index
    %c0_70 = arith.constant 0 : index
    %51 = vector.load %arg5[%c0_69, %c0_70] : memref<71x32xf32, #tpu.memory_space<vmem>>, vector<71x32xf32>
    %52 = arith.addf %51, %50 : vector<71x32xf32>
    %c0_71 = arith.constant 0 : index
    %c0_72 = arith.constant 0 : index
    %53 = vector.load %arg5[%c0_71, %c0_72] : memref<71x32xf32, #tpu.memory_space<vmem>>, vector<71x32xf32>
    tpu.vector_store %arg5[%c0_71, %c0_72], %52 {strides = array<i32>} : memref<71x32xf32, #tpu.memory_space<vmem>>, vector<71x32xf32>,
    %c0_73 = arith.constant 0 : index
    %c1_74 = arith.constant 1 : index
    %c9_75 = arith.constant 9 : index
    %c0_76 = arith.constant 0 : index
    %54 = vector.load %arg1[%c0_73, %c1_74, %c9_75, %c0_76] : memref<1x4x81x4xbf16, #tpu.memory_space<vmem>>, vector<1x1x71x4xbf16>
    %55 = vector.shape_cast %54 : vector<1x1x71x4xbf16> to vector<71x4xbf16>
    %c7 = arith.constant 7 : index
    %c0_77 = arith.constant 0 : index
    %c0_78 = arith.constant 0 : index
    %56 = vector.load %arg2[%c7, %c0_77, %c0_78] : memref<9x4x32xbf16, #tpu.memory_space<vmem>>, vector<1x4x32xbf16>
    %57 = vector.shape_cast %56 : vector<1x4x32xbf16> to vector<4x32xbf16>
    %cst_79 = arith.constant dense<0.000000e+00> : vector<71x32xf32>
    %58 = tpu.matmul %55, %57, %cst_79 {dimension_numbers = #tpu.dot_dimension_numbers<[1], [0], [0], [1], [0, 0, 1, 1], [], []>} : vector<71x4xbf16>, vector<4x32xbf16>, vector<71x32xf32> -> vector<71x32xf32>
    %c0_80 = arith.constant 0 : index
    %c0_81 = arith.constant 0 : index
    %59 = vector.load %arg5[%c0_80, %c0_81] : memref<71x32xf32, #tpu.memory_space<vmem>>, vector<71x32xf32>
    %60 = arith.addf %59, %58 : vector<71x32xf32>
    %c0_82 = arith.constant 0 : index
    %c0_83 = arith.constant 0 : index
    %61 = vector.load %arg5[%c0_82, %c0_83] : memref<71x32xf32, #tpu.memory_space<vmem>>, vector<71x32xf32>
    tpu.vector_store %arg5[%c0_82, %c0_83], %60 {strides = array<i32>} : memref<71x32xf32, #tpu.memory_space<vmem>>, vector<71x32xf32>,
    %c0_84 = arith.constant 0 : index
    %c0_85 = arith.constant 0 : index
    %c10 = arith.constant 10 : index
    %c0_86 = arith.constant 0 : index
    %62 = vector.load %arg1[%c0_84, %c0_85, %c10, %c0_86] : memref<1x4x81x4xbf16, #tpu.memory_space<vmem>>, vector<1x1x71x4xbf16>
    %63 = vector.shape_cast %62 : vector<1x1x71x4xbf16> to vector<71x4xbf16>
    %c8 = arith.constant 8 : index
    %c0_87 = arith.constant 0 : index
    %c0_88 = arith.constant 0 : index
    %64 = vector.load %arg2[%c8, %c0_87, %c0_88] : memref<9x4x32xbf16, #tpu.memory_space<vmem>>, vector<1x4x32xbf16>
    %65 = vector.shape_cast %64 : vector<1x4x32xbf16> to vector<4x32xbf16>
    %cst_89 = arith.constant dense<0.000000e+00> : vector<71x32xf32>
    %66 = tpu.matmul %63, %65, %cst_89 {dimension_numbers = #tpu.dot_dimension_numbers<[1], [0], [0], [1], [0, 0, 1, 1], [], []>} : vector<71x4xbf16>, vector<4x32xbf16>, vector<71x32xf32> -> vector<71x32xf32>
    %c0_90 = arith.constant 0 : index
    %c0_91 = arith.constant 0 : index
    %67 = vector.load %arg5[%c0_90, %c0_91] : memref<71x32xf32, #tpu.memory_space<vmem>>, vector<71x32xf32>
    %68 = arith.addf %67, %66 : vector<71x32xf32>
    %c0_92 = arith.constant 0 : index
    %c0_93 = arith.constant 0 : index
    %69 = vector.load %arg5[%c0_92, %c0_93] : memref<71x32xf32, #tpu.memory_space<vmem>>, vector<71x32xf32>
    tpu.vector_store %arg5[%c0_92, %c0_93], %68 {strides = array<i32>} : memref<71x32xf32, #tpu.memory_space<vmem>>, vector<71x32xf32>,
    %c0_94 = arith.constant 0 : index
    %c0_95 = arith.constant 0 : index
    %70 = vector.load %arg5[%c0_94, %c0_95] : memref<71x32xf32, #tpu.memory_space<vmem>>, vector<71x32xf32>
    %c0_96 = arith.constant 0 : index
    %c0_97 = arith.constant 0 : index
    %71 = vector.load %arg3[%c0_96, %c0_97] : memref<1x32xf32, #tpu.memory_space<vmem>>, vector<1x32xf32>
    %72 = vector.broadcast %71 : vector<1x32xf32> to vector<71x32xf32>
    %73 = arith.addf %70, %72 : vector<71x32xf32>
    %cst_98 = arith.constant 0.000000e+00 : f32
    %74 = vector.broadcast %cst_98 : f32 to vector<71x32xf32>
    %75 = arith.maximumf %73, %74 : vector<71x32xf32>
    %76 = arith.truncf %75 : vector<71x32xf32> to vector<71x32xbf16>
    %c0_99 = arith.constant 0 : index
    %c0_100 = arith.constant 0 : index
    %c0_101 = arith.constant 0 : index
    %77 = vector.load %arg4[%c0_99, %c0_100, %c0_101] : memref<1x71x32xbf16, #tpu.memory_space<vmem>>, vector<1x71x32xbf16>
    %78 = vector.shape_cast %77 : vector<1x71x32xbf16> to vector<71x32xbf16>
    %79 = vector.shape_cast %76 : vector<71x32xbf16> to vector<1x71x32xbf16>
    tpu.vector_store %arg4[%c0_99, %c0_100, %c0_101], %79 {strides = array<i32>} : memref<1x71x32xbf16, #tpu.memory_space<vmem>>, vector<1x71x32xbf16>,
    return
  }
  func.func @transform_0(%arg0: i32) -> (i32, i32, i32, i32) {
    %c0_i32 = arith.constant 0 : i32
    %c0_i32_0 = arith.constant 0 : i32
    %c0_i32_1 = arith.constant 0 : i32
    %c0_i32_2 = arith.constant 0 : i32
    return %arg0, %c0_i32, %c0_i32_0, %c0_i32_1 : i32, i32, i32, i32
  }
  func.func @transform_1(%arg0: i32) -> (i32, i32, i32) {
    %c0_i32 = arith.constant 0 : i32
    %c0_i32_0 = arith.constant 0 : i32
    %c0_i32_1 = arith.constant 0 : i32
    %c0_i32_2 = arith.constant 0 : i32
    return %c0_i32, %c0_i32_0, %c0_i32_1 : i32, i32, i32
  }
  func.func @transform_2(%arg0: i32) -> (i32, i32) {
    %c0_i32 = arith.constant 0 : i32
    %c0_i32_0 = arith.constant 0 : i32
    %c0_i32_1 = arith.constant 0 : i32
    return %c0_i32, %c0_i32_0 : i32, i32
  }
  func.func @transform_3(%arg0: i32) -> (i32, i32, i32) {
    %c0_i32 = arith.constant 0 : i32
    %c0_i32_0 = arith.constant 0 : i32
    %c0_i32_1 = arith.constant 0 : i32
    return %arg0, %c0_i32, %c0_i32_0 : i32, i32, i32
  }
}

module attributes {stable_mosaic.version = 11 : i64} {
  func.func @_conv3x3s2_kernel(%arg0: i32, %arg1: memref<1x4x25x32xbf16, #tpu.memory_space<vmem>>, %arg2: memref<9x32x64xbf16, #tpu.memory_space<vmem>>, %arg3: memref<1x64xf32, #tpu.memory_space<vmem>>, %arg4: memref<1x19x64xbf16, #tpu.memory_space<vmem>>, %arg5: memref<19x64xf32, #tpu.memory_space<vmem>>) attributes {dimension_semantics = [#tpu.dimension_semantics<parallel>], iteration_bounds = array<i64: 2>, scalar_prefetch = 0 : i64, scratch_operands = 1 : i64, tpu.core_type = #tpu.core_type<tc>, window_params = [{transform_indices = @transform_0, window_bounds = array<i64: 1, 4, 25, 32>}, {pipeline_mode = #tpu.pipeline_mode<synchronous>, transform_indices = @transform_1, window_bounds = array<i64: 9, 32, 64>}, {pipeline_mode = #tpu.pipeline_mode<synchronous>, transform_indices = @transform_2, window_bounds = array<i64: 1, 64>}, {transform_indices = @transform_3, window_bounds = array<i64: 1, 19, 64>}]} {
    %c0 = arith.constant 0 : index
    %c0_0 = arith.constant 0 : index
    %c0_1 = arith.constant 0 : index
    %c0_2 = arith.constant 0 : index
    %0 = vector.load %arg1[%c0, %c0_0, %c0_1, %c0_2] : memref<1x4x25x32xbf16, #tpu.memory_space<vmem>>, vector<1x1x19x32xbf16>
    %1 = vector.shape_cast %0 : vector<1x1x19x32xbf16> to vector<19x32xbf16>
    %c0_3 = arith.constant 0 : index
    %c0_4 = arith.constant 0 : index
    %c0_5 = arith.constant 0 : index
    %2 = vector.load %arg2[%c0_3, %c0_4, %c0_5] : memref<9x32x64xbf16, #tpu.memory_space<vmem>>, vector<1x32x64xbf16>
    %3 = vector.shape_cast %2 : vector<1x32x64xbf16> to vector<32x64xbf16>
    %cst = arith.constant dense<0.000000e+00> : vector<19x64xf32>
    %4 = tpu.matmul %1, %3, %cst {dimension_numbers = #tpu.dot_dimension_numbers<[1], [0], [0], [1], [0, 0, 1, 1], [], []>} : vector<19x32xbf16>, vector<32x64xbf16>, vector<19x64xf32> -> vector<19x64xf32>
    %c0_6 = arith.constant 0 : index
    %c0_7 = arith.constant 0 : index
    %5 = vector.load %arg5[%c0_6, %c0_7] : memref<19x64xf32, #tpu.memory_space<vmem>>, vector<19x64xf32>
    tpu.vector_store %arg5[%c0_6, %c0_7], %4 {strides = array<i32>} : memref<19x64xf32, #tpu.memory_space<vmem>>, vector<19x64xf32>,
    %c0_8 = arith.constant 0 : index
    %c1 = arith.constant 1 : index
    %c0_9 = arith.constant 0 : index
    %c0_10 = arith.constant 0 : index
    %6 = vector.load %arg1[%c0_8, %c1, %c0_9, %c0_10] : memref<1x4x25x32xbf16, #tpu.memory_space<vmem>>, vector<1x1x19x32xbf16>
    %7 = vector.shape_cast %6 : vector<1x1x19x32xbf16> to vector<19x32xbf16>
    %c1_11 = arith.constant 1 : index
    %c0_12 = arith.constant 0 : index
    %c0_13 = arith.constant 0 : index
    %8 = vector.load %arg2[%c1_11, %c0_12, %c0_13] : memref<9x32x64xbf16, #tpu.memory_space<vmem>>, vector<1x32x64xbf16>
    %9 = vector.shape_cast %8 : vector<1x32x64xbf16> to vector<32x64xbf16>
    %cst_14 = arith.constant dense<0.000000e+00> : vector<19x64xf32>
    %10 = tpu.matmul %7, %9, %cst_14 {dimension_numbers = #tpu.dot_dimension_numbers<[1], [0], [0], [1], [0, 0, 1, 1], [], []>} : vector<19x32xbf16>, vector<32x64xbf16>, vector<19x64xf32> -> vector<19x64xf32>
    %c0_15 = arith.constant 0 : index
    %c0_16 = arith.constant 0 : index
    %11 = vector.load %arg5[%c0_15, %c0_16] : memref<19x64xf32, #tpu.memory_space<vmem>>, vector<19x64xf32>
    %12 = arith.addf %11, %10 : vector<19x64xf32>
    %c0_17 = arith.constant 0 : index
    %c0_18 = arith.constant 0 : index
    %13 = vector.load %arg5[%c0_17, %c0_18] : memref<19x64xf32, #tpu.memory_space<vmem>>, vector<19x64xf32>
    tpu.vector_store %arg5[%c0_17, %c0_18], %12 {strides = array<i32>} : memref<19x64xf32, #tpu.memory_space<vmem>>, vector<19x64xf32>,
    %c0_19 = arith.constant 0 : index
    %c0_20 = arith.constant 0 : index
    %c1_21 = arith.constant 1 : index
    %c0_22 = arith.constant 0 : index
    %14 = vector.load %arg1[%c0_19, %c0_20, %c1_21, %c0_22] : memref<1x4x25x32xbf16, #tpu.memory_space<vmem>>, vector<1x1x19x32xbf16>
    %15 = vector.shape_cast %14 : vector<1x1x19x32xbf16> to vector<19x32xbf16>
    %c2 = arith.constant 2 : index
    %c0_23 = arith.constant 0 : index
    %c0_24 = arith.constant 0 : index
    %16 = vector.load %arg2[%c2, %c0_23, %c0_24] : memref<9x32x64xbf16, #tpu.memory_space<vmem>>, vector<1x32x64xbf16>
    %17 = vector.shape_cast %16 : vector<1x32x64xbf16> to vector<32x64xbf16>
    %cst_25 = arith.constant dense<0.000000e+00> : vector<19x64xf32>
    %18 = tpu.matmul %15, %17, %cst_25 {dimension_numbers = #tpu.dot_dimension_numbers<[1], [0], [0], [1], [0, 0, 1, 1], [], []>} : vector<19x32xbf16>, vector<32x64xbf16>, vector<19x64xf32> -> vector<19x64xf32>
    %c0_26 = arith.constant 0 : index
    %c0_27 = arith.constant 0 : index
    %19 = vector.load %arg5[%c0_26, %c0_27] : memref<19x64xf32, #tpu.memory_space<vmem>>, vector<19x64xf32>
    %20 = arith.addf %19, %18 : vector<19x64xf32>
    %c0_28 = arith.constant 0 : index
    %c0_29 = arith.constant 0 : index
    %21 = vector.load %arg5[%c0_28, %c0_29] : memref<19x64xf32, #tpu.memory_space<vmem>>, vector<19x64xf32>
    tpu.vector_store %arg5[%c0_28, %c0_29], %20 {strides = array<i32>} : memref<19x64xf32, #tpu.memory_space<vmem>>, vector<19x64xf32>,
    %c0_30 = arith.constant 0 : index
    %c2_31 = arith.constant 2 : index
    %c0_32 = arith.constant 0 : index
    %c0_33 = arith.constant 0 : index
    %22 = vector.load %arg1[%c0_30, %c2_31, %c0_32, %c0_33] : memref<1x4x25x32xbf16, #tpu.memory_space<vmem>>, vector<1x1x19x32xbf16>
    %23 = vector.shape_cast %22 : vector<1x1x19x32xbf16> to vector<19x32xbf16>
    %c3 = arith.constant 3 : index
    %c0_34 = arith.constant 0 : index
    %c0_35 = arith.constant 0 : index
    %24 = vector.load %arg2[%c3, %c0_34, %c0_35] : memref<9x32x64xbf16, #tpu.memory_space<vmem>>, vector<1x32x64xbf16>
    %25 = vector.shape_cast %24 : vector<1x32x64xbf16> to vector<32x64xbf16>
    %cst_36 = arith.constant dense<0.000000e+00> : vector<19x64xf32>
    %26 = tpu.matmul %23, %25, %cst_36 {dimension_numbers = #tpu.dot_dimension_numbers<[1], [0], [0], [1], [0, 0, 1, 1], [], []>} : vector<19x32xbf16>, vector<32x64xbf16>, vector<19x64xf32> -> vector<19x64xf32>
    %c0_37 = arith.constant 0 : index
    %c0_38 = arith.constant 0 : index
    %27 = vector.load %arg5[%c0_37, %c0_38] : memref<19x64xf32, #tpu.memory_space<vmem>>, vector<19x64xf32>
    %28 = arith.addf %27, %26 : vector<19x64xf32>
    %c0_39 = arith.constant 0 : index
    %c0_40 = arith.constant 0 : index
    %29 = vector.load %arg5[%c0_39, %c0_40] : memref<19x64xf32, #tpu.memory_space<vmem>>, vector<19x64xf32>
    tpu.vector_store %arg5[%c0_39, %c0_40], %28 {strides = array<i32>} : memref<19x64xf32, #tpu.memory_space<vmem>>, vector<19x64xf32>,
    %c0_41 = arith.constant 0 : index
    %c3_42 = arith.constant 3 : index
    %c0_43 = arith.constant 0 : index
    %c0_44 = arith.constant 0 : index
    %30 = vector.load %arg1[%c0_41, %c3_42, %c0_43, %c0_44] : memref<1x4x25x32xbf16, #tpu.memory_space<vmem>>, vector<1x1x19x32xbf16>
    %31 = vector.shape_cast %30 : vector<1x1x19x32xbf16> to vector<19x32xbf16>
    %c4 = arith.constant 4 : index
    %c0_45 = arith.constant 0 : index
    %c0_46 = arith.constant 0 : index
    %32 = vector.load %arg2[%c4, %c0_45, %c0_46] : memref<9x32x64xbf16, #tpu.memory_space<vmem>>, vector<1x32x64xbf16>
    %33 = vector.shape_cast %32 : vector<1x32x64xbf16> to vector<32x64xbf16>
    %cst_47 = arith.constant dense<0.000000e+00> : vector<19x64xf32>
    %34 = tpu.matmul %31, %33, %cst_47 {dimension_numbers = #tpu.dot_dimension_numbers<[1], [0], [0], [1], [0, 0, 1, 1], [], []>} : vector<19x32xbf16>, vector<32x64xbf16>, vector<19x64xf32> -> vector<19x64xf32>
    %c0_48 = arith.constant 0 : index
    %c0_49 = arith.constant 0 : index
    %35 = vector.load %arg5[%c0_48, %c0_49] : memref<19x64xf32, #tpu.memory_space<vmem>>, vector<19x64xf32>
    %36 = arith.addf %35, %34 : vector<19x64xf32>
    %c0_50 = arith.constant 0 : index
    %c0_51 = arith.constant 0 : index
    %37 = vector.load %arg5[%c0_50, %c0_51] : memref<19x64xf32, #tpu.memory_space<vmem>>, vector<19x64xf32>
    tpu.vector_store %arg5[%c0_50, %c0_51], %36 {strides = array<i32>} : memref<19x64xf32, #tpu.memory_space<vmem>>, vector<19x64xf32>,
    %c0_52 = arith.constant 0 : index
    %c2_53 = arith.constant 2 : index
    %c1_54 = arith.constant 1 : index
    %c0_55 = arith.constant 0 : index
    %38 = vector.load %arg1[%c0_52, %c2_53, %c1_54, %c0_55] : memref<1x4x25x32xbf16, #tpu.memory_space<vmem>>, vector<1x1x19x32xbf16>
    %39 = vector.shape_cast %38 : vector<1x1x19x32xbf16> to vector<19x32xbf16>
    %c5 = arith.constant 5 : index
    %c0_56 = arith.constant 0 : index
    %c0_57 = arith.constant 0 : index
    %40 = vector.load %arg2[%c5, %c0_56, %c0_57] : memref<9x32x64xbf16, #tpu.memory_space<vmem>>, vector<1x32x64xbf16>
    %41 = vector.shape_cast %40 : vector<1x32x64xbf16> to vector<32x64xbf16>
    %cst_58 = arith.constant dense<0.000000e+00> : vector<19x64xf32>
    %42 = tpu.matmul %39, %41, %cst_58 {dimension_numbers = #tpu.dot_dimension_numbers<[1], [0], [0], [1], [0, 0, 1, 1], [], []>} : vector<19x32xbf16>, vector<32x64xbf16>, vector<19x64xf32> -> vector<19x64xf32>
    %c0_59 = arith.constant 0 : index
    %c0_60 = arith.constant 0 : index
    %43 = vector.load %arg5[%c0_59, %c0_60] : memref<19x64xf32, #tpu.memory_space<vmem>>, vector<19x64xf32>
    %44 = arith.addf %43, %42 : vector<19x64xf32>
    %c0_61 = arith.constant 0 : index
    %c0_62 = arith.constant 0 : index
    %45 = vector.load %arg5[%c0_61, %c0_62] : memref<19x64xf32, #tpu.memory_space<vmem>>, vector<19x64xf32>
    tpu.vector_store %arg5[%c0_61, %c0_62], %44 {strides = array<i32>} : memref<19x64xf32, #tpu.memory_space<vmem>>, vector<19x64xf32>,
    %c0_63 = arith.constant 0 : index
    %c0_64 = arith.constant 0 : index
    %c5_65 = arith.constant 5 : index
    %c0_66 = arith.constant 0 : index
    %46 = vector.load %arg1[%c0_63, %c0_64, %c5_65, %c0_66] : memref<1x4x25x32xbf16, #tpu.memory_space<vmem>>, vector<1x1x19x32xbf16>
    %47 = vector.shape_cast %46 : vector<1x1x19x32xbf16> to vector<19x32xbf16>
    %c6 = arith.constant 6 : index
    %c0_67 = arith.constant 0 : index
    %c0_68 = arith.constant 0 : index
    %48 = vector.load %arg2[%c6, %c0_67, %c0_68] : memref<9x32x64xbf16, #tpu.memory_space<vmem>>, vector<1x32x64xbf16>
    %49 = vector.shape_cast %48 : vector<1x32x64xbf16> to vector<32x64xbf16>
    %cst_69 = arith.constant dense<0.000000e+00> : vector<19x64xf32>
    %50 = tpu.matmul %47, %49, %cst_69 {dimension_numbers = #tpu.dot_dimension_numbers<[1], [0], [0], [1], [0, 0, 1, 1], [], []>} : vector<19x32xbf16>, vector<32x64xbf16>, vector<19x64xf32> -> vector<19x64xf32>
    %c0_70 = arith.constant 0 : index
    %c0_71 = arith.constant 0 : index
    %51 = vector.load %arg5[%c0_70, %c0_71] : memref<19x64xf32, #tpu.memory_space<vmem>>, vector<19x64xf32>
    %52 = arith.addf %51, %50 : vector<19x64xf32>
    %c0_72 = arith.constant 0 : index
    %c0_73 = arith.constant 0 : index
    %53 = vector.load %arg5[%c0_72, %c0_73] : memref<19x64xf32, #tpu.memory_space<vmem>>, vector<19x64xf32>
    tpu.vector_store %arg5[%c0_72, %c0_73], %52 {strides = array<i32>} : memref<19x64xf32, #tpu.memory_space<vmem>>, vector<19x64xf32>,
    %c0_74 = arith.constant 0 : index
    %c1_75 = arith.constant 1 : index
    %c5_76 = arith.constant 5 : index
    %c0_77 = arith.constant 0 : index
    %54 = vector.load %arg1[%c0_74, %c1_75, %c5_76, %c0_77] : memref<1x4x25x32xbf16, #tpu.memory_space<vmem>>, vector<1x1x19x32xbf16>
    %55 = vector.shape_cast %54 : vector<1x1x19x32xbf16> to vector<19x32xbf16>
    %c7 = arith.constant 7 : index
    %c0_78 = arith.constant 0 : index
    %c0_79 = arith.constant 0 : index
    %56 = vector.load %arg2[%c7, %c0_78, %c0_79] : memref<9x32x64xbf16, #tpu.memory_space<vmem>>, vector<1x32x64xbf16>
    %57 = vector.shape_cast %56 : vector<1x32x64xbf16> to vector<32x64xbf16>
    %cst_80 = arith.constant dense<0.000000e+00> : vector<19x64xf32>
    %58 = tpu.matmul %55, %57, %cst_80 {dimension_numbers = #tpu.dot_dimension_numbers<[1], [0], [0], [1], [0, 0, 1, 1], [], []>} : vector<19x32xbf16>, vector<32x64xbf16>, vector<19x64xf32> -> vector<19x64xf32>
    %c0_81 = arith.constant 0 : index
    %c0_82 = arith.constant 0 : index
    %59 = vector.load %arg5[%c0_81, %c0_82] : memref<19x64xf32, #tpu.memory_space<vmem>>, vector<19x64xf32>
    %60 = arith.addf %59, %58 : vector<19x64xf32>
    %c0_83 = arith.constant 0 : index
    %c0_84 = arith.constant 0 : index
    %61 = vector.load %arg5[%c0_83, %c0_84] : memref<19x64xf32, #tpu.memory_space<vmem>>, vector<19x64xf32>
    tpu.vector_store %arg5[%c0_83, %c0_84], %60 {strides = array<i32>} : memref<19x64xf32, #tpu.memory_space<vmem>>, vector<19x64xf32>,
    %c0_85 = arith.constant 0 : index
    %c0_86 = arith.constant 0 : index
    %c6_87 = arith.constant 6 : index
    %c0_88 = arith.constant 0 : index
    %62 = vector.load %arg1[%c0_85, %c0_86, %c6_87, %c0_88] : memref<1x4x25x32xbf16, #tpu.memory_space<vmem>>, vector<1x1x19x32xbf16>
    %63 = vector.shape_cast %62 : vector<1x1x19x32xbf16> to vector<19x32xbf16>
    %c8 = arith.constant 8 : index
    %c0_89 = arith.constant 0 : index
    %c0_90 = arith.constant 0 : index
    %64 = vector.load %arg2[%c8, %c0_89, %c0_90] : memref<9x32x64xbf16, #tpu.memory_space<vmem>>, vector<1x32x64xbf16>
    %65 = vector.shape_cast %64 : vector<1x32x64xbf16> to vector<32x64xbf16>
    %cst_91 = arith.constant dense<0.000000e+00> : vector<19x64xf32>
    %66 = tpu.matmul %63, %65, %cst_91 {dimension_numbers = #tpu.dot_dimension_numbers<[1], [0], [0], [1], [0, 0, 1, 1], [], []>} : vector<19x32xbf16>, vector<32x64xbf16>, vector<19x64xf32> -> vector<19x64xf32>
    %c0_92 = arith.constant 0 : index
    %c0_93 = arith.constant 0 : index
    %67 = vector.load %arg5[%c0_92, %c0_93] : memref<19x64xf32, #tpu.memory_space<vmem>>, vector<19x64xf32>
    %68 = arith.addf %67, %66 : vector<19x64xf32>
    %c0_94 = arith.constant 0 : index
    %c0_95 = arith.constant 0 : index
    %69 = vector.load %arg5[%c0_94, %c0_95] : memref<19x64xf32, #tpu.memory_space<vmem>>, vector<19x64xf32>
    tpu.vector_store %arg5[%c0_94, %c0_95], %68 {strides = array<i32>} : memref<19x64xf32, #tpu.memory_space<vmem>>, vector<19x64xf32>,
    %c0_96 = arith.constant 0 : index
    %c0_97 = arith.constant 0 : index
    %70 = vector.load %arg5[%c0_96, %c0_97] : memref<19x64xf32, #tpu.memory_space<vmem>>, vector<19x64xf32>
    %c0_98 = arith.constant 0 : index
    %c0_99 = arith.constant 0 : index
    %71 = vector.load %arg3[%c0_98, %c0_99] : memref<1x64xf32, #tpu.memory_space<vmem>>, vector<1x64xf32>
    %72 = vector.broadcast %71 : vector<1x64xf32> to vector<19x64xf32>
    %73 = arith.addf %70, %72 : vector<19x64xf32>
    %cst_100 = arith.constant 0.000000e+00 : f32
    %74 = vector.broadcast %cst_100 : f32 to vector<19x64xf32>
    %75 = arith.maximumf %73, %74 : vector<19x64xf32>
    %76 = arith.truncf %75 : vector<19x64xf32> to vector<19x64xbf16>
    %c0_101 = arith.constant 0 : index
    %c0_102 = arith.constant 0 : index
    %c0_103 = arith.constant 0 : index
    %77 = vector.load %arg4[%c0_101, %c0_102, %c0_103] : memref<1x19x64xbf16, #tpu.memory_space<vmem>>, vector<1x19x64xbf16>
    %78 = vector.shape_cast %77 : vector<1x19x64xbf16> to vector<19x64xbf16>
    %79 = vector.shape_cast %76 : vector<19x64xbf16> to vector<1x19x64xbf16>
    tpu.vector_store %arg4[%c0_101, %c0_102, %c0_103], %79 {strides = array<i32>} : memref<1x19x64xbf16, #tpu.memory_space<vmem>>, vector<1x19x64xbf16>,
    return
  }
  func.func @transform_0(%arg0: i32) -> (i32, i32, i32, i32) {
    %c0_i32 = arith.constant 0 : i32
    %c0_i32_0 = arith.constant 0 : i32
    %c0_i32_1 = arith.constant 0 : i32
    %c0_i32_2 = arith.constant 0 : i32
    return %arg0, %c0_i32, %c0_i32_0, %c0_i32_1 : i32, i32, i32, i32
  }
  func.func @transform_1(%arg0: i32) -> (i32, i32, i32) {
    %c0_i32 = arith.constant 0 : i32
    %c0_i32_0 = arith.constant 0 : i32
    %c0_i32_1 = arith.constant 0 : i32
    %c0_i32_2 = arith.constant 0 : i32
    return %c0_i32, %c0_i32_0, %c0_i32_1 : i32, i32, i32
  }
  func.func @transform_2(%arg0: i32) -> (i32, i32) {
    %c0_i32 = arith.constant 0 : i32
    %c0_i32_0 = arith.constant 0 : i32
    %c0_i32_1 = arith.constant 0 : i32
    return %c0_i32, %c0_i32_0 : i32, i32
  }
  func.func @transform_3(%arg0: i32) -> (i32, i32, i32) {
    %c0_i32 = arith.constant 0 : i32
    %c0_i32_0 = arith.constant 0 : i32
    %c0_i32_1 = arith.constant 0 : i32
    return %arg0, %c0_i32, %c0_i32_0 : i32, i32, i32
  }
}

module attributes {stable_mosaic.version = 11 : i64} {
  func.func @_conv3x3s2_kernel(%arg0: i32, %arg1: memref<1x4x9x64xbf16, #tpu.memory_space<vmem>>, %arg2: memref<9x64x128xbf16, #tpu.memory_space<vmem>>, %arg3: memref<1x128xf32, #tpu.memory_space<vmem>>, %arg4: memref<1x5x128xbf16, #tpu.memory_space<vmem>>, %arg5: memref<5x128xf32, #tpu.memory_space<vmem>>) attributes {dimension_semantics = [#tpu.dimension_semantics<parallel>], iteration_bounds = array<i64: 2>, scalar_prefetch = 0 : i64, scratch_operands = 1 : i64, tpu.core_type = #tpu.core_type<tc>, window_params = [{transform_indices = @transform_0, window_bounds = array<i64: 1, 4, 9, 64>}, {pipeline_mode = #tpu.pipeline_mode<synchronous>, transform_indices = @transform_1, window_bounds = array<i64: 9, 64, 128>}, {pipeline_mode = #tpu.pipeline_mode<synchronous>, transform_indices = @transform_2, window_bounds = array<i64: 1, 128>}, {transform_indices = @transform_3, window_bounds = array<i64: 1, 5, 128>}]} {
    %c0 = arith.constant 0 : index
    %c0_0 = arith.constant 0 : index
    %c0_1 = arith.constant 0 : index
    %c0_2 = arith.constant 0 : index
    %0 = vector.load %arg1[%c0, %c0_0, %c0_1, %c0_2] : memref<1x4x9x64xbf16, #tpu.memory_space<vmem>>, vector<1x1x5x64xbf16>
    %1 = vector.shape_cast %0 : vector<1x1x5x64xbf16> to vector<5x64xbf16>
    %c0_3 = arith.constant 0 : index
    %c0_4 = arith.constant 0 : index
    %c0_5 = arith.constant 0 : index
    %2 = vector.load %arg2[%c0_3, %c0_4, %c0_5] : memref<9x64x128xbf16, #tpu.memory_space<vmem>>, vector<1x64x128xbf16>
    %3 = vector.shape_cast %2 : vector<1x64x128xbf16> to vector<64x128xbf16>
    %cst = arith.constant dense<0.000000e+00> : vector<5x128xf32>
    %4 = tpu.matmul %1, %3, %cst {dimension_numbers = #tpu.dot_dimension_numbers<[1], [0], [0], [1], [0, 0, 1, 1], [], []>} : vector<5x64xbf16>, vector<64x128xbf16>, vector<5x128xf32> -> vector<5x128xf32>
    %c0_6 = arith.constant 0 : index
    %c0_7 = arith.constant 0 : index
    %5 = vector.load %arg5[%c0_6, %c0_7] : memref<5x128xf32, #tpu.memory_space<vmem>>, vector<5x128xf32>
    tpu.vector_store %arg5[%c0_6, %c0_7], %4 {strides = array<i32>} : memref<5x128xf32, #tpu.memory_space<vmem>>, vector<5x128xf32>,
    %c0_8 = arith.constant 0 : index
    %c1 = arith.constant 1 : index
    %c0_9 = arith.constant 0 : index
    %c0_10 = arith.constant 0 : index
    %6 = vector.load %arg1[%c0_8, %c1, %c0_9, %c0_10] : memref<1x4x9x64xbf16, #tpu.memory_space<vmem>>, vector<1x1x5x64xbf16>
    %7 = vector.shape_cast %6 : vector<1x1x5x64xbf16> to vector<5x64xbf16>
    %c1_11 = arith.constant 1 : index
    %c0_12 = arith.constant 0 : index
    %c0_13 = arith.constant 0 : index
    %8 = vector.load %arg2[%c1_11, %c0_12, %c0_13] : memref<9x64x128xbf16, #tpu.memory_space<vmem>>, vector<1x64x128xbf16>
    %9 = vector.shape_cast %8 : vector<1x64x128xbf16> to vector<64x128xbf16>
    %cst_14 = arith.constant dense<0.000000e+00> : vector<5x128xf32>
    %10 = tpu.matmul %7, %9, %cst_14 {dimension_numbers = #tpu.dot_dimension_numbers<[1], [0], [0], [1], [0, 0, 1, 1], [], []>} : vector<5x64xbf16>, vector<64x128xbf16>, vector<5x128xf32> -> vector<5x128xf32>
    %c0_15 = arith.constant 0 : index
    %c0_16 = arith.constant 0 : index
    %11 = vector.load %arg5[%c0_15, %c0_16] : memref<5x128xf32, #tpu.memory_space<vmem>>, vector<5x128xf32>
    %12 = arith.addf %11, %10 : vector<5x128xf32>
    %c0_17 = arith.constant 0 : index
    %c0_18 = arith.constant 0 : index
    %13 = vector.load %arg5[%c0_17, %c0_18] : memref<5x128xf32, #tpu.memory_space<vmem>>, vector<5x128xf32>
    tpu.vector_store %arg5[%c0_17, %c0_18], %12 {strides = array<i32>} : memref<5x128xf32, #tpu.memory_space<vmem>>, vector<5x128xf32>,
    %c0_19 = arith.constant 0 : index
    %c0_20 = arith.constant 0 : index
    %c1_21 = arith.constant 1 : index
    %c0_22 = arith.constant 0 : index
    %14 = vector.load %arg1[%c0_19, %c0_20, %c1_21, %c0_22] : memref<1x4x9x64xbf16, #tpu.memory_space<vmem>>, vector<1x1x5x64xbf16>
    %15 = vector.shape_cast %14 : vector<1x1x5x64xbf16> to vector<5x64xbf16>
    %c2 = arith.constant 2 : index
    %c0_23 = arith.constant 0 : index
    %c0_24 = arith.constant 0 : index
    %16 = vector.load %arg2[%c2, %c0_23, %c0_24] : memref<9x64x128xbf16, #tpu.memory_space<vmem>>, vector<1x64x128xbf16>
    %17 = vector.shape_cast %16 : vector<1x64x128xbf16> to vector<64x128xbf16>
    %cst_25 = arith.constant dense<0.000000e+00> : vector<5x128xf32>
    %18 = tpu.matmul %15, %17, %cst_25 {dimension_numbers = #tpu.dot_dimension_numbers<[1], [0], [0], [1], [0, 0, 1, 1], [], []>} : vector<5x64xbf16>, vector<64x128xbf16>, vector<5x128xf32> -> vector<5x128xf32>
    %c0_26 = arith.constant 0 : index
    %c0_27 = arith.constant 0 : index
    %19 = vector.load %arg5[%c0_26, %c0_27] : memref<5x128xf32, #tpu.memory_space<vmem>>, vector<5x128xf32>
    %20 = arith.addf %19, %18 : vector<5x128xf32>
    %c0_28 = arith.constant 0 : index
    %c0_29 = arith.constant 0 : index
    %21 = vector.load %arg5[%c0_28, %c0_29] : memref<5x128xf32, #tpu.memory_space<vmem>>, vector<5x128xf32>
    tpu.vector_store %arg5[%c0_28, %c0_29], %20 {strides = array<i32>} : memref<5x128xf32, #tpu.memory_space<vmem>>, vector<5x128xf32>,
    %c0_30 = arith.constant 0 : index
    %c2_31 = arith.constant 2 : index
    %c0_32 = arith.constant 0 : index
    %c0_33 = arith.constant 0 : index
    %22 = vector.load %arg1[%c0_30, %c2_31, %c0_32, %c0_33] : memref<1x4x9x64xbf16, #tpu.memory_space<vmem>>, vector<1x1x5x64xbf16>
    %23 = vector.shape_cast %22 : vector<1x1x5x64xbf16> to vector<5x64xbf16>
    %c3 = arith.constant 3 : index
    %c0_34 = arith.constant 0 : index
    %c0_35 = arith.constant 0 : index
    %24 = vector.load %arg2[%c3, %c0_34, %c0_35] : memref<9x64x128xbf16, #tpu.memory_space<vmem>>, vector<1x64x128xbf16>
    %25 = vector.shape_cast %24 : vector<1x64x128xbf16> to vector<64x128xbf16>
    %cst_36 = arith.constant dense<0.000000e+00> : vector<5x128xf32>
    %26 = tpu.matmul %23, %25, %cst_36 {dimension_numbers = #tpu.dot_dimension_numbers<[1], [0], [0], [1], [0, 0, 1, 1], [], []>} : vector<5x64xbf16>, vector<64x128xbf16>, vector<5x128xf32> -> vector<5x128xf32>
    %c0_37 = arith.constant 0 : index
    %c0_38 = arith.constant 0 : index
    %27 = vector.load %arg5[%c0_37, %c0_38] : memref<5x128xf32, #tpu.memory_space<vmem>>, vector<5x128xf32>
    %28 = arith.addf %27, %26 : vector<5x128xf32>
    %c0_39 = arith.constant 0 : index
    %c0_40 = arith.constant 0 : index
    %29 = vector.load %arg5[%c0_39, %c0_40] : memref<5x128xf32, #tpu.memory_space<vmem>>, vector<5x128xf32>
    tpu.vector_store %arg5[%c0_39, %c0_40], %28 {strides = array<i32>} : memref<5x128xf32, #tpu.memory_space<vmem>>, vector<5x128xf32>,
    %c0_41 = arith.constant 0 : index
    %c3_42 = arith.constant 3 : index
    %c0_43 = arith.constant 0 : index
    %c0_44 = arith.constant 0 : index
    %30 = vector.load %arg1[%c0_41, %c3_42, %c0_43, %c0_44] : memref<1x4x9x64xbf16, #tpu.memory_space<vmem>>, vector<1x1x5x64xbf16>
    %31 = vector.shape_cast %30 : vector<1x1x5x64xbf16> to vector<5x64xbf16>
    %c4 = arith.constant 4 : index
    %c0_45 = arith.constant 0 : index
    %c0_46 = arith.constant 0 : index
    %32 = vector.load %arg2[%c4, %c0_45, %c0_46] : memref<9x64x128xbf16, #tpu.memory_space<vmem>>, vector<1x64x128xbf16>
    %33 = vector.shape_cast %32 : vector<1x64x128xbf16> to vector<64x128xbf16>
    %cst_47 = arith.constant dense<0.000000e+00> : vector<5x128xf32>
    %34 = tpu.matmul %31, %33, %cst_47 {dimension_numbers = #tpu.dot_dimension_numbers<[1], [0], [0], [1], [0, 0, 1, 1], [], []>} : vector<5x64xbf16>, vector<64x128xbf16>, vector<5x128xf32> -> vector<5x128xf32>
    %c0_48 = arith.constant 0 : index
    %c0_49 = arith.constant 0 : index
    %35 = vector.load %arg5[%c0_48, %c0_49] : memref<5x128xf32, #tpu.memory_space<vmem>>, vector<5x128xf32>
    %36 = arith.addf %35, %34 : vector<5x128xf32>
    %c0_50 = arith.constant 0 : index
    %c0_51 = arith.constant 0 : index
    %37 = vector.load %arg5[%c0_50, %c0_51] : memref<5x128xf32, #tpu.memory_space<vmem>>, vector<5x128xf32>
    tpu.vector_store %arg5[%c0_50, %c0_51], %36 {strides = array<i32>} : memref<5x128xf32, #tpu.memory_space<vmem>>, vector<5x128xf32>,
    %c0_52 = arith.constant 0 : index
    %c2_53 = arith.constant 2 : index
    %c1_54 = arith.constant 1 : index
    %c0_55 = arith.constant 0 : index
    %38 = vector.load %arg1[%c0_52, %c2_53, %c1_54, %c0_55] : memref<1x4x9x64xbf16, #tpu.memory_space<vmem>>, vector<1x1x5x64xbf16>
    %39 = vector.shape_cast %38 : vector<1x1x5x64xbf16> to vector<5x64xbf16>
    %c5 = arith.constant 5 : index
    %c0_56 = arith.constant 0 : index
    %c0_57 = arith.constant 0 : index
    %40 = vector.load %arg2[%c5, %c0_56, %c0_57] : memref<9x64x128xbf16, #tpu.memory_space<vmem>>, vector<1x64x128xbf16>
    %41 = vector.shape_cast %40 : vector<1x64x128xbf16> to vector<64x128xbf16>
    %cst_58 = arith.constant dense<0.000000e+00> : vector<5x128xf32>
    %42 = tpu.matmul %39, %41, %cst_58 {dimension_numbers = #tpu.dot_dimension_numbers<[1], [0], [0], [1], [0, 0, 1, 1], [], []>} : vector<5x64xbf16>, vector<64x128xbf16>, vector<5x128xf32> -> vector<5x128xf32>
    %c0_59 = arith.constant 0 : index
    %c0_60 = arith.constant 0 : index
    %43 = vector.load %arg5[%c0_59, %c0_60] : memref<5x128xf32, #tpu.memory_space<vmem>>, vector<5x128xf32>
    %44 = arith.addf %43, %42 : vector<5x128xf32>
    %c0_61 = arith.constant 0 : index
    %c0_62 = arith.constant 0 : index
    %45 = vector.load %arg5[%c0_61, %c0_62] : memref<5x128xf32, #tpu.memory_space<vmem>>, vector<5x128xf32>
    tpu.vector_store %arg5[%c0_61, %c0_62], %44 {strides = array<i32>} : memref<5x128xf32, #tpu.memory_space<vmem>>, vector<5x128xf32>,
    %c0_63 = arith.constant 0 : index
    %c0_64 = arith.constant 0 : index
    %c3_65 = arith.constant 3 : index
    %c0_66 = arith.constant 0 : index
    %46 = vector.load %arg1[%c0_63, %c0_64, %c3_65, %c0_66] : memref<1x4x9x64xbf16, #tpu.memory_space<vmem>>, vector<1x1x5x64xbf16>
    %47 = vector.shape_cast %46 : vector<1x1x5x64xbf16> to vector<5x64xbf16>
    %c6 = arith.constant 6 : index
    %c0_67 = arith.constant 0 : index
    %c0_68 = arith.constant 0 : index
    %48 = vector.load %arg2[%c6, %c0_67, %c0_68] : memref<9x64x128xbf16, #tpu.memory_space<vmem>>, vector<1x64x128xbf16>
    %49 = vector.shape_cast %48 : vector<1x64x128xbf16> to vector<64x128xbf16>
    %cst_69 = arith.constant dense<0.000000e+00> : vector<5x128xf32>
    %50 = tpu.matmul %47, %49, %cst_69 {dimension_numbers = #tpu.dot_dimension_numbers<[1], [0], [0], [1], [0, 0, 1, 1], [], []>} : vector<5x64xbf16>, vector<64x128xbf16>, vector<5x128xf32> -> vector<5x128xf32>
    %c0_70 = arith.constant 0 : index
    %c0_71 = arith.constant 0 : index
    %51 = vector.load %arg5[%c0_70, %c0_71] : memref<5x128xf32, #tpu.memory_space<vmem>>, vector<5x128xf32>
    %52 = arith.addf %51, %50 : vector<5x128xf32>
    %c0_72 = arith.constant 0 : index
    %c0_73 = arith.constant 0 : index
    %53 = vector.load %arg5[%c0_72, %c0_73] : memref<5x128xf32, #tpu.memory_space<vmem>>, vector<5x128xf32>
    tpu.vector_store %arg5[%c0_72, %c0_73], %52 {strides = array<i32>} : memref<5x128xf32, #tpu.memory_space<vmem>>, vector<5x128xf32>,
    %c0_74 = arith.constant 0 : index
    %c1_75 = arith.constant 1 : index
    %c3_76 = arith.constant 3 : index
    %c0_77 = arith.constant 0 : index
    %54 = vector.load %arg1[%c0_74, %c1_75, %c3_76, %c0_77] : memref<1x4x9x64xbf16, #tpu.memory_space<vmem>>, vector<1x1x5x64xbf16>
    %55 = vector.shape_cast %54 : vector<1x1x5x64xbf16> to vector<5x64xbf16>
    %c7 = arith.constant 7 : index
    %c0_78 = arith.constant 0 : index
    %c0_79 = arith.constant 0 : index
    %56 = vector.load %arg2[%c7, %c0_78, %c0_79] : memref<9x64x128xbf16, #tpu.memory_space<vmem>>, vector<1x64x128xbf16>
    %57 = vector.shape_cast %56 : vector<1x64x128xbf16> to vector<64x128xbf16>
    %cst_80 = arith.constant dense<0.000000e+00> : vector<5x128xf32>
    %58 = tpu.matmul %55, %57, %cst_80 {dimension_numbers = #tpu.dot_dimension_numbers<[1], [0], [0], [1], [0, 0, 1, 1], [], []>} : vector<5x64xbf16>, vector<64x128xbf16>, vector<5x128xf32> -> vector<5x128xf32>
    %c0_81 = arith.constant 0 : index
    %c0_82 = arith.constant 0 : index
    %59 = vector.load %arg5[%c0_81, %c0_82] : memref<5x128xf32, #tpu.memory_space<vmem>>, vector<5x128xf32>
    %60 = arith.addf %59, %58 : vector<5x128xf32>
    %c0_83 = arith.constant 0 : index
    %c0_84 = arith.constant 0 : index
    %61 = vector.load %arg5[%c0_83, %c0_84] : memref<5x128xf32, #tpu.memory_space<vmem>>, vector<5x128xf32>
    tpu.vector_store %arg5[%c0_83, %c0_84], %60 {strides = array<i32>} : memref<5x128xf32, #tpu.memory_space<vmem>>, vector<5x128xf32>,
    %c0_85 = arith.constant 0 : index
    %c0_86 = arith.constant 0 : index
    %c4_87 = arith.constant 4 : index
    %c0_88 = arith.constant 0 : index
    %62 = vector.load %arg1[%c0_85, %c0_86, %c4_87, %c0_88] : memref<1x4x9x64xbf16, #tpu.memory_space<vmem>>, vector<1x1x5x64xbf16>
    %63 = vector.shape_cast %62 : vector<1x1x5x64xbf16> to vector<5x64xbf16>
    %c8 = arith.constant 8 : index
    %c0_89 = arith.constant 0 : index
    %c0_90 = arith.constant 0 : index
    %64 = vector.load %arg2[%c8, %c0_89, %c0_90] : memref<9x64x128xbf16, #tpu.memory_space<vmem>>, vector<1x64x128xbf16>
    %65 = vector.shape_cast %64 : vector<1x64x128xbf16> to vector<64x128xbf16>
    %cst_91 = arith.constant dense<0.000000e+00> : vector<5x128xf32>
    %66 = tpu.matmul %63, %65, %cst_91 {dimension_numbers = #tpu.dot_dimension_numbers<[1], [0], [0], [1], [0, 0, 1, 1], [], []>} : vector<5x64xbf16>, vector<64x128xbf16>, vector<5x128xf32> -> vector<5x128xf32>
    %c0_92 = arith.constant 0 : index
    %c0_93 = arith.constant 0 : index
    %67 = vector.load %arg5[%c0_92, %c0_93] : memref<5x128xf32, #tpu.memory_space<vmem>>, vector<5x128xf32>
    %68 = arith.addf %67, %66 : vector<5x128xf32>
    %c0_94 = arith.constant 0 : index
    %c0_95 = arith.constant 0 : index
    %69 = vector.load %arg5[%c0_94, %c0_95] : memref<5x128xf32, #tpu.memory_space<vmem>>, vector<5x128xf32>
    tpu.vector_store %arg5[%c0_94, %c0_95], %68 {strides = array<i32>} : memref<5x128xf32, #tpu.memory_space<vmem>>, vector<5x128xf32>,
    %c0_96 = arith.constant 0 : index
    %c0_97 = arith.constant 0 : index
    %70 = vector.load %arg5[%c0_96, %c0_97] : memref<5x128xf32, #tpu.memory_space<vmem>>, vector<5x128xf32>
    %c0_98 = arith.constant 0 : index
    %c0_99 = arith.constant 0 : index
    %71 = vector.load %arg3[%c0_98, %c0_99] : memref<1x128xf32, #tpu.memory_space<vmem>>, vector<1x128xf32>
    %72 = vector.broadcast %71 : vector<1x128xf32> to vector<5x128xf32>
    %73 = arith.addf %70, %72 : vector<5x128xf32>
    %cst_100 = arith.constant 0.000000e+00 : f32
    %74 = vector.broadcast %cst_100 : f32 to vector<5x128xf32>
    %75 = arith.maximumf %73, %74 : vector<5x128xf32>
    %76 = arith.truncf %75 : vector<5x128xf32> to vector<5x128xbf16>
    %c0_101 = arith.constant 0 : index
    %c0_102 = arith.constant 0 : index
    %c0_103 = arith.constant 0 : index
    %77 = vector.load %arg4[%c0_101, %c0_102, %c0_103] : memref<1x5x128xbf16, #tpu.memory_space<vmem>>, vector<1x5x128xbf16>
    %78 = vector.shape_cast %77 : vector<1x5x128xbf16> to vector<5x128xbf16>
    %79 = vector.shape_cast %76 : vector<5x128xbf16> to vector<1x5x128xbf16>
    tpu.vector_store %arg4[%c0_101, %c0_102, %c0_103], %79 {strides = array<i32>} : memref<1x5x128xbf16, #tpu.memory_space<vmem>>, vector<1x5x128xbf16>,
    return
  }
  func.func @transform_0(%arg0: i32) -> (i32, i32, i32, i32) {
    %c0_i32 = arith.constant 0 : i32
    %c0_i32_0 = arith.constant 0 : i32
    %c0_i32_1 = arith.constant 0 : i32
    %c0_i32_2 = arith.constant 0 : i32
    return %arg0, %c0_i32, %c0_i32_0, %c0_i32_1 : i32, i32, i32, i32
  }
  func.func @transform_1(%arg0: i32) -> (i32, i32, i32) {
    %c0_i32 = arith.constant 0 : i32
    %c0_i32_0 = arith.constant 0 : i32
    %c0_i32_1 = arith.constant 0 : i32
    %c0_i32_2 = arith.constant 0 : i32
    return %c0_i32, %c0_i32_0, %c0_i32_1 : i32, i32, i32
  }
  func.func @transform_2(%arg0: i32) -> (i32, i32) {
    %c0_i32 = arith.constant 0 : i32
    %c0_i32_0 = arith.constant 0 : i32
    %c0_i32_1 = arith.constant 0 : i32
    return %c0_i32, %c0_i32_0 : i32, i32
  }
  func.func @transform_3(%arg0: i32) -> (i32, i32, i32) {
    %c0_i32 = arith.constant 0 : i32
    %c0_i32_0 = arith.constant 0 : i32
    %c0_i32_1 = arith.constant 0 : i32
    return %arg0, %c0_i32, %c0_i32_0 : i32, i32, i32
  }
}

module attributes {stable_mosaic.version = 11 : i64} {
  func.func @_mlp_head_kernel(%arg0: i32, %arg1: i32, %arg2: memref<2x512xbf16, #tpu.memory_space<vmem>>, %arg3: memref<512x512xbf16, #tpu.memory_space<vmem>>, %arg4: memref<1x512xf32, #tpu.memory_space<vmem>>, %arg5: memref<512x128xbf16, #tpu.memory_space<vmem>>, %arg6: memref<1x128xf32, #tpu.memory_space<vmem>>, %arg7: memref<2x128xf32, #tpu.memory_space<vmem>>, %arg8: memref<2x512xf32, #tpu.memory_space<vmem>>) attributes {dimension_semantics = [#tpu.dimension_semantics<parallel>, #tpu.dimension_semantics<arbitrary>], iteration_bounds = array<i64: 1, 1>, scalar_prefetch = 0 : i64, scratch_operands = 1 : i64, tpu.core_type = #tpu.core_type<tc>, window_params = [{transform_indices = @transform_0, window_bounds = array<i64: 2, 512>}, {transform_indices = @transform_1, window_bounds = array<i64: 512, 512>}, {pipeline_mode = #tpu.pipeline_mode<synchronous>, transform_indices = @transform_2, window_bounds = array<i64: 1, 512>}, {pipeline_mode = #tpu.pipeline_mode<synchronous>, transform_indices = @transform_3, window_bounds = array<i64: 512, 128>}, {pipeline_mode = #tpu.pipeline_mode<synchronous>, transform_indices = @transform_4, window_bounds = array<i64: 1, 128>}, {transform_indices = @transform_5, window_bounds = array<i64: 2, 128>}]} {
    %c0_i32 = arith.constant 0 : i32
    %0 = arith.cmpi eq, %arg1, %c0_i32 : i32
    %1 = arith.extui %0 : i1 to i32
    %c0_i32_0 = arith.constant 0 : i32
    %2 = arith.cmpi ne, %1, %c0_i32_0 : i32
    scf.if %2 {
      %cst_10 = arith.constant 0.000000e+00 : f32
      %12 = vector.broadcast %cst_10 : f32 to vector<2x512xf32>
      %c0_11 = arith.constant 0 : index
      %c0_12 = arith.constant 0 : index
      %13 = vector.load %arg8[%c0_11, %c0_12] : memref<2x512xf32, #tpu.memory_space<vmem>>, vector<2x512xf32>
      tpu.vector_store %arg8[%c0_11, %c0_12], %12 {strides = array<i32>} : memref<2x512xf32, #tpu.memory_space<vmem>>, vector<2x512xf32>,
    } else {
    }
    %c0 = arith.constant 0 : index
    %c0_1 = arith.constant 0 : index
    %3 = vector.load %arg8[%c0, %c0_1] : memref<2x512xf32, #tpu.memory_space<vmem>>, vector<2x512xf32>
    %c0_2 = arith.constant 0 : index
    %c0_3 = arith.constant 0 : index
    %4 = vector.load %arg2[%c0_2, %c0_3] : memref<2x512xbf16, #tpu.memory_space<vmem>>, vector<2x512xbf16>
    %c0_4 = arith.constant 0 : index
    %c0_5 = arith.constant 0 : index
    %5 = vector.load %arg3[%c0_4, %c0_5] : memref<512x512xbf16, #tpu.memory_space<vmem>>, vector<512x512xbf16>
    %cst = arith.constant dense<0.000000e+00> : vector<2x512xf32>
    %6 = tpu.matmul %4, %5, %cst {dimension_numbers = #tpu.dot_dimension_numbers<[1], [0], [0], [1], [0, 0, 1, 1], [], []>} : vector<2x512xbf16>, vector<512x512xbf16>, vector<2x512xf32> -> vector<2x512xf32>
    %7 = arith.addf %3, %6 : vector<2x512xf32>
    %c0_6 = arith.constant 0 : index
    %c0_7 = arith.constant 0 : index
    %8 = vector.load %arg8[%c0_6, %c0_7] : memref<2x512xf32, #tpu.memory_space<vmem>>, vector<2x512xf32>
    tpu.vector_store %arg8[%c0_6, %c0_7], %7 {strides = array<i32>} : memref<2x512xf32, #tpu.memory_space<vmem>>, vector<2x512xf32>,
    %c0_i32_8 = arith.constant 0 : i32
    %9 = arith.cmpi eq, %arg1, %c0_i32_8 : i32
    %10 = arith.extui %9 : i1 to i32
    %c0_i32_9 = arith.constant 0 : i32
    %11 = arith.cmpi ne, %10, %c0_i32_9 : i32
    scf.if %11 {
      %c0_10 = arith.constant 0 : index
      %c0_11 = arith.constant 0 : index
      %12 = vector.load %arg8[%c0_10, %c0_11] : memref<2x512xf32, #tpu.memory_space<vmem>>, vector<2x512xf32>
      %c0_12 = arith.constant 0 : index
      %c0_13 = arith.constant 0 : index
      %13 = vector.load %arg4[%c0_12, %c0_13] : memref<1x512xf32, #tpu.memory_space<vmem>>, vector<1x512xf32>
      %14 = vector.broadcast %13 : vector<1x512xf32> to vector<2x512xf32>
      %15 = arith.addf %12, %14 : vector<2x512xf32>
      %cst_14 = arith.constant 0.000000e+00 : f32
      %16 = vector.broadcast %cst_14 : f32 to vector<2x512xf32>
      %17 = arith.maximumf %15, %16 : vector<2x512xf32>
      %18 = arith.truncf %17 : vector<2x512xf32> to vector<2x512xbf16>
      %c0_15 = arith.constant 0 : index
      %c0_16 = arith.constant 0 : index
      %19 = vector.load %arg5[%c0_15, %c0_16] : memref<512x128xbf16, #tpu.memory_space<vmem>>, vector<512x128xbf16>
      %cst_17 = arith.constant dense<0.000000e+00> : vector<2x128xf32>
      %20 = tpu.matmul %18, %19, %cst_17 {dimension_numbers = #tpu.dot_dimension_numbers<[1], [0], [0], [1], [0, 0, 1, 1], [], []>} : vector<2x512xbf16>, vector<512x128xbf16>, vector<2x128xf32> -> vector<2x128xf32>
      %c0_18 = arith.constant 0 : index
      %c0_19 = arith.constant 0 : index
      %21 = vector.load %arg6[%c0_18, %c0_19] : memref<1x128xf32, #tpu.memory_space<vmem>>, vector<1x128xf32>
      %22 = vector.broadcast %21 : vector<1x128xf32> to vector<2x128xf32>
      %23 = arith.addf %20, %22 : vector<2x128xf32>
      %c0_20 = arith.constant 0 : index
      %c0_21 = arith.constant 0 : index
      %24 = vector.load %arg7[%c0_20, %c0_21] : memref<2x128xf32, #tpu.memory_space<vmem>>, vector<2x128xf32>
      tpu.vector_store %arg7[%c0_20, %c0_21], %23 {strides = array<i32>} : memref<2x128xf32, #tpu.memory_space<vmem>>, vector<2x128xf32>,
    } else {
    }
    return
  }
  func.func @transform_0(%arg0: i32, %arg1: i32) -> (i32, i32) {
    %c0_i32 = arith.constant 0 : i32
    return %arg0, %arg1 : i32, i32
  }
  func.func @transform_1(%arg0: i32, %arg1: i32) -> (i32, i32) {
    %c0_i32 = arith.constant 0 : i32
    %c0_i32_0 = arith.constant 0 : i32
    return %arg1, %c0_i32 : i32, i32
  }
  func.func @transform_2(%arg0: i32, %arg1: i32) -> (i32, i32) {
    %c0_i32 = arith.constant 0 : i32
    %c0_i32_0 = arith.constant 0 : i32
    %c0_i32_1 = arith.constant 0 : i32
    return %c0_i32, %c0_i32_0 : i32, i32
  }
  func.func @transform_3(%arg0: i32, %arg1: i32) -> (i32, i32) {
    %c0_i32 = arith.constant 0 : i32
    %c0_i32_0 = arith.constant 0 : i32
    %c0_i32_1 = arith.constant 0 : i32
    return %c0_i32, %c0_i32_0 : i32, i32
  }
  func.func @transform_4(%arg0: i32, %arg1: i32) -> (i32, i32) {
    %c0_i32 = arith.constant 0 : i32
    %c0_i32_0 = arith.constant 0 : i32
    %c0_i32_1 = arith.constant 0 : i32
    return %c0_i32, %c0_i32_0 : i32, i32
  }
  func.func @transform_5(%arg0: i32, %arg1: i32) -> (i32, i32) {
    %c0_i32 = arith.constant 0 : i32
    %c0_i32_0 = arith.constant 0 : i32
    return %arg0, %c0_i32 : i32, i32
  }
}

</mosaic_0001>

<bundles_post_ra>
// kernel: dqn_forward.5
= control target key start
LH: loop header
LB: loop body
LE: loop exit
PB: predicated region body
PF: predicated region fallthrough
CT: control target
= control target key end

     0   :  { %s1456_s12 = smov 0   ;;  %s1603_s0 = inlined_call_operand.vmem [shape: bf16[2,4,25,32], index: 0, kind: input, shape index: {}]   ;;  %s1604_s1 = inlined_call_operand.vmem [shape: bf16[9,32,64], index: 1, kind: input, shape index: {}]   ;;  %s1605_s2 = inlined_call_operand.vmem [shape: f32[1,64], index: 2, kind: input, shape index: {}]   ;;  %s1606_s3 = inlined_call_operand.vmem [shape: bf16[2,19,64], index: 3, kind: output, shape index: {}]  }
   0x1 LB: > { %s1156_s13 = sadd.s32 4294967295, %s1434_s12   ;;  %p1160_p0 = scmp.ge.s32.totalorder %s1434_s12, 1  ;;  %s1434_s12 = sphi %s1456_s12, %s13_s12  }
   0x2   : > { %p137_p1 = scmp.lt.s32.totalorder %s1434_s12, 3 }
   0x4   : > { %p138_p2 = pnand %p1160_p0, %p137_p1 }
   0x5   : > { %v1392_v0 = vld [vmem:[%s1604_s1] sm:$0xff] (!%p138_p2)   ;;  %p161_p3 = scmp.lt.s32.totalorder (!%p138_p2), %s1156_s13, 1  ;;  %v1393_v1 = vld [vmem:[%s1604_s1 + $0x8] sm:$0xff] (!%p138_p2)   ;;  %v1394_v2 = vld [vmem:[%s1604_s1 + $0x10] sm:$0xff] (!%p138_p2)   ;;  %vm199_vm0 = vcmask (!%p138_p2), 261120   ;;  %vm984_vm3 = vcmask (!%p138_p2), 1044480  }
   0x6   : > { %141 = sbr.rel (%p138_p2) target bundleno = 328 (0x148), region = 32  ;;  %1311 = vmatprep.subr.bf16.mxu0 (!%p138_p2), %v1392_v0  ;;  %v1397_v3 = vld [vmem:[%s1604_s1 + $0x18] sm:$0xff] (!%p138_p2)   ;;  %1319 = vmatprep.subr.bf16.mxu1 (!%p138_p2), %v1394_v2  ;;  %v1400_v4 = vld [vmem:[%s1604_s1 + $0x20] sm:$0xff] (!%p138_p2)   ;;  %v1401_v6 = vld [vmem:[%s1604_s1 + $0x28] sm:$0xff] (!%p138_p2)   ;;  %vm367_vm1 = vsmask.f32 (!%p138_p2), 7424 }
   0x7   : > { %1312 = vmatpush3.bf16.msra.mxu0 (!%p138_p2), %v1392_v0  ;;  %1320 = vmatpush3.bf16.msra.mxu1 (!%p138_p2), %v1394_v2  ;;  %v1404_v14 = vld [vmem:[%s1604_s1 + $0x30] sm:$0xff] (!%p138_p2)   ;;  %v1405_v18 = vld [vmem:[%s1604_s1 + $0x38] sm:$0xff] (!%p138_p2)   ;;  %v1408_v23 = vld [vmem:[%s1604_s1 + $0x40] sm:$0xff] (!%p138_p2)   ;;  %vm764_vm2 = vsmask.f32 (!%p138_p2), 5376  ;;  %vm257_vm4 = vcmask (!%p138_p2), 518144  }
   0x8   : > { %1313 = vmatprep.subr.bf16.mxu0 (!%p138_p2), %v1393_v1  ;;  %1321 = vmatprep.subr.bf16.mxu1 (!%p138_p2), %v1397_v3  ;;  %v1409_v26 = vld [vmem:[%s1604_s1 + $0x48] sm:$0xff] (!%p138_p2)   ;;  %v1412_v28 = vld [vmem:[%s1604_s1 + $0x50] sm:$0xff] (!%p138_p2)   ;;  %v1413_v30 = vld [vmem:[%s1604_s1 + $0x58] sm:$0xff] (!%p138_p2)   ;;  %vm254_vm5 = vcmask (!%p138_p2), 523264   ;;  %vm1095_vm6 = vcmask (!%p138_p2), 517120   ;;  %vm1092_vm9 = vcmask (!%p138_p2), 519168  }
   0x9   : > { %v1416_v33 = vld [vmem:[%s1604_s1 + $0x60] sm:$0xff] (!%p138_p2)   ;;  %v1417_v38 = vld [vmem:[%s1604_s1 + $0x68] sm:$0xff] (!%p138_p2)   ;;  %v1420_v39 = vld [vmem:[%s1604_s1 + $0x70] sm:$0xff] (!%p138_p2)   ;;  %vm1096_vm7 = vsmask.f32 (!%p138_p2), 1280 }
   0xa   : > { %v1424_v43 = vld [vmem:[%s1604_s1 + $0x80] sm:$0xff] (!%p138_p2)   ;;  %v1421_v46 = vld [vmem:[%s1604_s1 + $0x78] sm:$0xff] (!%p138_p2)   ;;  %vm1097_vm8 = vmand (!%p138_p2), %vm1095_vm6, %vm1096_vm7 }
   0xb   : > { %1314 = vmatpush3.bf16.msra.mxu0 (!%p138_p2), %v1393_v1  ;;  %1322 = vmatpush3.bf16.msra.mxu1 (!%p138_p2), %v1397_v3 }
   0xc   : > { %1327 = vmatprep.subr.bf16.mxu0 (!%p138_p2), %v1400_v4  ;;  %1335 = vmatprep.subr.bf16.mxu1 (!%p138_p2), %v1404_v14 }
   0xd   : > { %s1608_s13 = smov (!%p161_p3, %s1156_s13), 1 }
   0xe   : > { %s1271_s22 = sshll.u32 %s1608_s13, 6 }
   0xf   : > { %s1485_s27 = scalar_lea.vmem %s1603_s0, %s1271_s22 }
  0x10   : > { %v1395_v5 = vld [vmem:[%s1485_s27] sm:$0xff]   ;;  %v1396_v7 = vld [vmem:[%s1485_s27 + $0x8] ss:$0 sps:$4 sm:$0x33]   ;;  %v1398_v8 = vld [vmem:[%s1485_s27 + $0x10] sm:$0xff]  }
  0x11   : > { %1315 = vmatprep.mubr.msk.bf16.mxu0 %vm199_vm0, %v1395_v5  ;;  %1323 = vmatprep.mubr.msk.bf16.mxu1 %vm199_vm0, %v1398_v8  ;;  %v1399_v9 = vld [vmem:[%s1485_s27 + $0x18] ss:$0 sps:$4 sm:$0x33]   ;;  %v1402_v10 = vld [vmem:[%s1485_s27] sm:$0xff]   ;;  %v1410_v27 = vld [vmem:[%s1485_s27 + $0x30] sm:$0xff]  }
  0x12   : > { %1316 = vmatmul.mubr.msk.bf16.vlgmr.msra.gmra.mrb[0].mxu0 %vm199_vm0, %v1396_v7  ;;  %v1403_v11 = vld [vmem:[%s1485_s27 + $0x8] ss:$0 sps:$4 sm:$0x33]   ;;  %v369_v12 = vshrl.u32 %v1402_v10, 16  ;;  %v371_v13 = vshll.u32 %v1402_v10, 16  ;;  %1324 = vmatmul.mubr.msk.bf16.vlgmr.msra.gmra.mrb[0].mxu1 %vm199_vm0, %v1399_v9  ;;  %v1406_v19 = vld [vmem:[%s1485_s27 + $0x20] sm:$0xff]  }
  0x13   : > { %1328 = vmatpush3.bf16.msra.mxu0 %v1400_v4  ;;  %v376_v16 = vshll.u32 %v1403_v11, 16  ;;  %v380_v17 = vshrl.u32 %v1403_v11, 16  ;;  %1336 = vmatpush3.bf16.msra.mxu1 %v1404_v14  ;;  %v1407_v22 = vld [vmem:[%s1485_s27 + $0x28] ss:$0 sps:$4 sm:$0x33]   ;;  %v1414_v31 = vld [vmem:[%s1485_s27 + $0x20] sm:$0xff]  }
  0x14   : > { %1329 = vmatprep.subr.bf16.mxu0 %v1401_v6  ;;  %v373_v15 = vrot.slane %v371_v13, 1  ;;  %1337 = vmatprep.subr.bf16.mxu1 %v1405_v18  ;;  %v1411_v29 = vld [vmem:[%s1485_s27 + $0x38] ss:$0 sps:$4 sm:$0x33]   ;;  %v659_v34 = vshrl.u32 %v1414_v31, 16  ;;  %v661_v35 = vshll.u32 %v1414_v31, 16 }
  0x15   : > { %v378_v21 = vrot.slane %v376_v16, 1  ;;  %1339 = vmatprep.mubr.msk.bf16.mxu1 %vm199_vm0, %v1406_v19  ;;  %v1415_v32 = vld [vmem:[%s1485_s27 + $0x28] ss:$0 sps:$4 sm:$0x33]   ;;  %v1418_v42 = vld [vmem:[%s1485_s27] sm:$0xfc]  }
  0x16   : > { %v374_v20 = vor.u32 %v373_v15, %v369_v12  ;;  %v666_v36 = vshll.u32 %v1415_v32, 16  ;;  %v670_v37 = vshrl.u32 %v1415_v32, 16  ;;  %v663_v40 = vrot.slane %v661_v35, 1  ;;  %v1419_v45 = vld [vmem:[%s1485_s27 + $0x8] ss:$0 sps:$4 sm:$0xff]  }
  0x17   : > { %1330 = vmatpush3.bf16.msra.mxu0 %v1401_v6  ;;  %v382_v25 = vor.u32 %v380_v17, %v378_v21  ;;  %1338 = vmatpush3.bf16.msra.mxu1 %v1405_v18  ;;  %v766_v48 = vshrl.u32 %v1418_v42, 16  ;;  %v769_v49 = vshll.u32 %v1418_v42, 16  ;;  %v774_v51 = vshrl.u32 %v1419_v45, 16  ;;  %v1422_v57 = vld [vmem:[%s1485_s27 + $0x10] sm:$0xfc]   ;;  %v1425_v5 = vld [vmem:[%s1604_s1 + $0x88] sm:$0xff]  }
  0x18   : > { %v379_v24 = vsel %vm367_vm1, %v374_v20, %v378_v21  ;;  %1343 = vmatprep.subr.bf16.mxu0 %v1408_v23  ;;  %1351 = vmatprep.subr.bf16.mxu1 %v1412_v28  ;;  %v668_v41 = vrot.slane %v666_v36, 1  ;;  %v664_v44 = vor.u32 %v663_v40, %v659_v34  ;;  %v777_v52 = vshll.u32 %v1419_v45, 16  ;;  %v1423_v58 = vld [vmem:[%s1485_s27 + $0x18] ss:$0 sps:$4 sm:$0xff]   ;;  %v1426_v7 = vld [vmem:[%s1485_s27] sm:$0xf8]  }
  0x19   : > { %1331 = vmatprep.mubr.msk.bf16.mxu0 %vm199_vm0, %v379_v24  ;;  %v768_v53 = vrot.slane %v766_v48, 2  ;;  %v771_v54 = vrot.slane %v769_v49, 3  ;;  %v776_v55 = vrot.slane %v774_v51, 2  ;;  %v874_v61 = vshrl.u32 %v1422_v57, 16  ;;  %v1427_v9 = vld [vmem:[%s1485_s27 + $0x8] sm:$0x1f]  }
  0x1a   : > { %1332 = vmatmul.mubr.msk.bf16.vlgmr.msra.gmra.mrb[4].mxu0 %vm199_vm0, %v382_v25  ;;  %1340 = vmatmul.mubr.msk.bf16.vlgmr.msra.gmra.mrb[4].mxu1 %vm199_vm0, %v1407_v22  ;;  %v672_v47 = vor.u32 %v670_v37, %v668_v41  ;;  %v669_v50 = vsel %vm367_vm1, %v664_v44, %v668_v41  ;;  %v779_v56 = vrot.slane %v777_v52, 3  ;;  %v877_v62 = vshll.u32 %v1422_v57, 16  ;;  %s1383_s27 = smul.u32 12, %s1608_s13 }
  0x1b   : > { %1344 = vmatpush3.bf16.msra.mxu0 %v1408_v23  ;;  %1347 = vmatprep.mubr.msk.bf16.mxu0 %vm199_vm0, %v1410_v27  ;;  %v772_v59 = vor.u32 %v771_v54, %v768_v53  ;;  %v882_v63 = vshrl.u32 %v1423_v58, 16  ;;  %v885_v0 = vshll.u32 %v1423_v58, 16  ;;  %v876_v2 = vrot.slane %v874_v61, 2 }
  0x1c   : > { %1345 = vmatprep.subr.bf16.mxu0 %v1409_v26  ;;  %1352 = vmatpush3.bf16.msra.mxu1 %v1412_v28  ;;  %v780_v60 = vor.u32 %v779_v56, %v776_v55  ;;  %v879_v3 = vrot.slane %v877_v62, 3  ;;  %v985_v11 = vrot.slane %v1426_v7, 3  ;;  %v986_v12 = vrot.slane %v1427_v9, 3  ;;  %s170_s7 = scalar_lea.vmem %s1606_s3, %s1383_s27 }
  0x1d   : > { %1353 = vmatprep.subr.bf16.mxu1 %v1413_v30  ;;  %1355 = vmatprep.mubr.msk.bf16.mxu1 %vm199_vm0, %v669_v50  ;;  %v884_v4 = vrot.slane %v882_v63, 2  ;;  %v887_v6 = vrot.slane %v885_v0, 3 }
  0x1e   : > { %v781_v1 = vsel %vm764_vm2, %v772_v59, %v780_v60  ;;  %v880_v8 = vor.u32 %v879_v3, %v876_v2  ;;  %v987_v14 = vsel %vm984_vm3, %v985_v11, %v986_v12 }
  0x1f   : > { %1346 = vmatpush3.bf16.msra.mxu0 %v1409_v26  ;;  %v888_v10 = vor.u32 %v887_v6, %v884_v4 }
  0x20   : > { %1359 = vmatprep.subr.bf16.mxu0 %v1416_v33  ;;  %1354 = vmatpush3.bf16.msra.mxu1 %v1413_v30 }
  0x21   : > { %1367 = vmatprep.subr.bf16.mxu1 %v1420_v39  ;;  %v889_v13 = vsel %vm764_vm2, %v880_v8, %v888_v10 }
  0x22   : > { %1348 = vmatmul.mubr.msk.bf16.vlgmr.msra.gmra.mrb[8].mxu0 %vm199_vm0, %v1411_v29 }
  0x23   : > { %1360 = vmatpush3.bf16.msra.mxu0 %v1416_v33  ;;  %1356 = vmatmul.mubr.msk.bf16.vlgmr.msra.gmra.mrb[8].mxu1 %vm199_vm0, %v672_v47 }
  0x24   : > { %1361 = vmatprep.subr.bf16.mxu0 %v1417_v38  ;;  %1368 = vmatpush3.bf16.msra.mxu1 %v1420_v39 }
  0x25   : > { %1369 = vmatprep.subr.bf16.mxu1 %v1421_v46  ;;  %1363 = vmatprep.mubr.msk.bf16.mxu0 %vm199_vm0, %v781_v1 }
  0x26   : > { %1371 = vmatprep.mubr.msk.bf16.mxu1 %vm199_vm0, %v889_v13 }
  0x27   : > { %1362 = vmatpush3.bf16.msra.mxu0 %v1417_v38 }
  0x28   : > { %1375 = vmatprep.subr.bf16.mxu0 %v1424_v43  ;;  %1370 = vmatpush3.bf16.msra.mxu1 %v1421_v46 }
  0x2a   : > { %1364 = vmatmul.mubr.msk.bf16.vlgmr.msra.gmra.mrb[12].mxu0 %vm199_vm0, %v780_v60 }
  0x2b   : > { %1376 = vmatpush3.bf16.msra.mxu0 %v1424_v43  ;;  %1372 = vmatmul.mubr.msk.bf16.vlgmr.msra.gmra.mrb[12].mxu1 %vm199_vm0, %v888_v10 }
  0x2c   : > { %1377 = vmatprep.subr.bf16.mxu0 %v1425_v5  ;;  %1379 = vmatprep.mubr.msk.bf16.mxu0 %vm199_vm0, %v987_v14 }
  0x2f   : > { %1378 = vmatpush3.bf16.msra.mxu0 %v1425_v5 }
  0x32   : > { %1380 = vmatmul.mubr.msk.bf16.vlgmr.msra.gmra.mrb[16].mxu0 %vm199_vm0, %v986_v12 }
  0xe5   : > { %v1317_v15 = vpop.f32.mrb[0].mxu0  ;;  %v1325_v18 = vpop.f32.mrb[0].mxu1 }
  0xe6   : > { %258 = vst.msk [vmem:[#allocation2 + $0x10] sm:$0x7] %vm257_vm4, %v1317_v15  ;;  %v240_v16 = vpop.f32.mrb[1].mxu0  ;;  %v328_v20 = vpop.f32.mrb[1].mxu1 }
  0xe7   : > { %255 = vst.msk [vmem:[#allocation2] sm:$0xff] %vm254_vm5, %v240_v16  ;;  %v1318_v17 = vpop.f32.mrb[2].mxu0  ;;  %v1326_v21 = vpop.f32.mrb[2].mxu1 }
  0xe8   : > { %v243_v19 = vpop.f32.mrb[3].mxu0  ;;  %v331_v22 = vpop.f32.mrb[3].mxu1 }
  0xe9   : > { %256 = vst.msk [vmem:[#allocation2 + $0x8] sm:$0xff] %vm254_vm5, %v243_v19 }
  0xed   : > { %v344_v23 = vld [vmem:[#allocation2 + $0x10] sm:$0x7]  ;;  %v1333_v26 = vpop.f32.mrb[4].mxu0  ;;  %v1341_v31 = vpop.f32.mrb[4].mxu1 }
  0xee   : > { %v347_v24 = vadd.f32 %v1325_v18, %v344_v23  ;;  %v342_v25 = vld [vmem:[#allocation2] sm:$0xff]  ;;  %v435_v28 = vpop.f32.mrb[5].mxu0  ;;  %v527_v34 = vpop.f32.mrb[5].mxu1 }
  0xef   : > { %v345_v27 = vadd.f32 %v342_v25, %v328_v20  ;;  %v1334_v30 = vpop.f32.mrb[6].mxu0  ;;  %v1342_v35 = vpop.f32.mrb[6].mxu1 }
  0xf0   : > { %350 = vst.msk [vmem:[#allocation2 + $0x10] sm:$0x7] %vm257_vm4, %v347_v24  ;;  %v343_v29 = vld [vmem:[#allocation2 + $0x8] sm:$0xff]  ;;  %v438_v33 = vpop.f32.mrb[7].mxu0  ;;  %v530_v36 = vpop.f32.mrb[7].mxu1 }
  0xf1   : > { %348 = vst.msk [vmem:[#allocation2] sm:$0xff] %vm254_vm5, %v345_v27  ;;  %v346_v32 = vadd.f32 %v343_v29, %v331_v22  ;;  %v1265_v35 = vld [vmem:[%s1605_s2] ss:$0 sm:$0xff] }
  0xf3   : > { %349 = vst.msk [vmem:[#allocation2 + $0x8] sm:$0xff] %vm254_vm5, %v346_v32 }
  0xf5   : > { %v1349_v37 = vpop.f32.mrb[8].mxu0 }
  0xf6   : > { %v619_v39 = vpop.f32.mrb[9].mxu0  ;;  %v1357_v47 = vpop.f32.mrb[8].mxu1 }
  0xf7   : > { %v451_v38 = vld [vmem:[#allocation2 + $0x10] sm:$0x7]  ;;  %v1350_v42 = vpop.f32.mrb[10].mxu0  ;;  %v725_v48 = vpop.f32.mrb[9].mxu1 }
  0xf8   : > { %v454_v40 = vadd.f32 %v1333_v26, %v451_v38  ;;  %v449_v41 = vld [vmem:[#allocation2] sm:$0xff]  ;;  %v622_v44 = vpop.f32.mrb[11].mxu0  ;;  %v1358_v49 = vpop.f32.mrb[10].mxu1 }
  0xf9   : > { %v452_v43 = vadd.f32 %v449_v41, %v435_v28  ;;  %v728_v50 = vpop.f32.mrb[11].mxu1 }
  0xfa   : > { %457 = vst.msk [vmem:[#allocation2 + $0x10] sm:$0x7] %vm257_vm4, %v454_v40  ;;  %v450_v45 = vld [vmem:[#allocation2 + $0x8] sm:$0xff] }
  0xfb   : > { %455 = vst.msk [vmem:[#allocation2] sm:$0xff] %vm254_vm5, %v452_v43  ;;  %v453_v46 = vadd.f32 %v450_v45, %v438_v33  ;;  %v1098_v43 = vld [vmem:[%s170_s7 + $0x8] sm:$0x3] }
  0xfd   : > { %456 = vst.msk [vmem:[#allocation2 + $0x8] sm:$0xff] %vm254_vm5, %v453_v46  ;;  %v1365_v52 = vpop.f32.mrb[12].mxu0 }
  0xfe   : > { %v834_v55 = vpop.f32.mrb[13].mxu0  ;;  %v1373_v61 = vpop.f32.mrb[12].mxu1 }
  0xff   : > { %v1366_v57 = vpop.f32.mrb[14].mxu0  ;;  %v942_v62 = vpop.f32.mrb[13].mxu1 }
 0x100   : > { %v837_v59 = vpop.f32.mrb[15].mxu0  ;;  %v1374_v63 = vpop.f32.mrb[14].mxu1 }
 0x101   : > { %v543_v51 = vld [vmem:[#allocation2 + $0x10] sm:$0x7]  ;;  %v945_v0 = vpop.f32.mrb[15].mxu1 }
 0x102   : > { %v546_v53 = vadd.f32 %v1341_v31, %v543_v51  ;;  %v541_v54 = vld [vmem:[#allocation2] sm:$0xff] }
 0x103   : > { %v544_v56 = vadd.f32 %v541_v54, %v527_v34 }
 0x104   : > { %549 = vst.msk [vmem:[#allocation2 + $0x10] sm:$0x7] %vm257_vm4, %v546_v53  ;;  %v542_v58 = vld [vmem:[#allocation2 + $0x8] sm:$0xff] }
 0x105   : > { %547 = vst.msk [vmem:[#allocation2] sm:$0xff] %vm254_vm5, %v544_v56  ;;  %v545_v60 = vadd.f32 %v542_v58, %v530_v36  ;;  %v1381_v1 = vpop.f32.mrb[16].mxu0 }
 0x106   : > { %v1040_v2 = vpop.f32.mrb[17].mxu0 }
 0x107   : > { %548 = vst.msk [vmem:[#allocation2 + $0x8] sm:$0xff] %vm254_vm5, %v545_v60  ;;  %v1382_v4 = vpop.f32.mrb[18].mxu0 }
 0x108   : > { %v1043_v7 = vpop.f32.mrb[19].mxu0 }
 0x10b   : > { %v635_v3 = vld [vmem:[#allocation2 + $0x10] sm:$0x7] }
 0x10c   : > { %v638_v5 = vadd.f32 %v1349_v37, %v635_v3  ;;  %v633_v6 = vld [vmem:[#allocation2] sm:$0xff] }
 0x10d   : > { %v636_v8 = vadd.f32 %v633_v6, %v619_v39 }
 0x10e   : > { %641 = vst.msk [vmem:[#allocation2 + $0x10] sm:$0x7] %vm257_vm4, %v638_v5  ;;  %v634_v9 = vld [vmem:[#allocation2 + $0x8] sm:$0xff] }
 0x10f   : > { %639 = vst.msk [vmem:[#allocation2] sm:$0xff] %vm254_vm5, %v636_v8  ;;  %v637_v10 = vadd.f32 %v634_v9, %v622_v44 }
 0x111   : > { %640 = vst.msk [vmem:[#allocation2 + $0x8] sm:$0xff] %vm254_vm5, %v637_v10 }
 0x115   : > { %v741_v11 = vld [vmem:[#allocation2 + $0x10] sm:$0x7] }
 0x116   : > { %v744_v12 = vadd.f32 %v1357_v47, %v741_v11  ;;  %v739_v13 = vld [vmem:[#allocation2] sm:$0xff] }
 0x117   : > { %v742_v14 = vadd.f32 %v739_v13, %v725_v48 }
 0x118   : > { %747 = vst.msk [vmem:[#allocation2 + $0x10] sm:$0x7] %vm257_vm4, %v744_v12  ;;  %v740_v15 = vld [vmem:[#allocation2 + $0x8] sm:$0xff] }
 0x119   : > { %745 = vst.msk [vmem:[#allocation2] sm:$0xff] %vm254_vm5, %v742_v14  ;;  %v743_v16 = vadd.f32 %v740_v15, %v728_v50 }
 0x11b   : > { %746 = vst.msk [vmem:[#allocation2 + $0x8] sm:$0xff] %vm254_vm5, %v743_v16 }
 0x11f   : > { %v850_v17 = vld [vmem:[#allocation2 + $0x10] sm:$0x7] }
 0x120   : > { %v853_v18 = vadd.f32 %v1365_v52, %v850_v17  ;;  %v848_v19 = vld [vmem:[#allocation2] sm:$0xff] }
 0x121   : > { %v851_v20 = vadd.f32 %v848_v19, %v834_v55 }
 0x122   : > { %856 = vst.msk [vmem:[#allocation2 + $0x10] sm:$0x7] %vm257_vm4, %v853_v18  ;;  %v849_v21 = vld [vmem:[#allocation2 + $0x8] sm:$0xff] }
 0x123   : > { %854 = vst.msk [vmem:[#allocation2] sm:$0xff] %vm254_vm5, %v851_v20  ;;  %v852_v22 = vadd.f32 %v849_v21, %v837_v59 }
 0x125   : > { %855 = vst.msk [vmem:[#allocation2 + $0x8] sm:$0xff] %vm254_vm5, %v852_v22 }
 0x129   : > { %v958_v23 = vld [vmem:[#allocation2 + $0x10] sm:$0x7] }
 0x12a   : > { %v961_v24 = vadd.f32 %v1373_v61, %v958_v23  ;;  %v956_v25 = vld [vmem:[#allocation2] sm:$0xff] }
 0x12b   : > { %v959_v26 = vadd.f32 %v956_v25, %v942_v62 }
 0x12c   : > { %964 = vst.msk [vmem:[#allocation2 + $0x10] sm:$0x7] %vm257_vm4, %v961_v24  ;;  %v957_v27 = vld [vmem:[#allocation2 + $0x8] sm:$0xff] }
 0x12d   : > { %962 = vst.msk [vmem:[#allocation2] sm:$0xff] %vm254_vm5, %v959_v26  ;;  %v960_v28 = vadd.f32 %v957_v27, %v945_v0 }
 0x12f   : > { %963 = vst.msk [vmem:[#allocation2 + $0x8] sm:$0xff] %vm254_vm5, %v960_v28 }
 0x133   : > { %v1056_v29 = vld [vmem:[#allocation2 + $0x10] sm:$0x7] }
 0x134   : > { %v1059_v30 = vadd.f32 %v1381_v1, %v1056_v29  ;;  %v1054_v31 = vld [vmem:[#allocation2] sm:$0xff] }
 0x135   : > { %v1057_v32 = vadd.f32 %v1054_v31, %v1040_v2 }
 0x136   : > { %1062 = vst.msk [vmem:[#allocation2 + $0x10] sm:$0x7] %vm257_vm4, %v1059_v30  ;;  %v1055_v33 = vld [vmem:[#allocation2 + $0x8] sm:$0xff] }
 0x137   : > { %1060 = vst.msk [vmem:[#allocation2] sm:$0xff] %vm254_vm5, %v1057_v32  ;;  %v1058_v34 = vadd.f32 %v1055_v33, %v1043_v7 }
 0x139   : > { %1061 = vst.msk [vmem:[#allocation2 + $0x8] sm:$0xff] %vm254_vm5, %v1058_v34 }
 0x13d   : > { %v1065_v36 = vld [vmem:[#allocation2 + $0x10] sm:$0x7] }
 0x13e   : > { %v1063_v37 = vld [vmem:[#allocation2] sm:$0xff]  ;;  %v1075_v38 = vadd.f32 %v1265_v35, %v1065_v36 }
 0x13f   : > { %v1073_v39 = vadd.f32 %v1265_v35, %v1063_v37 }
 0x140   : > { %v1078_v40 = vmax.f32 %v1075_v38, 0.0  ;;  %v1064_v41 = vld [vmem:[#allocation2 + $0x8] sm:$0xff] }
 0x141   : > { %v1076_v42 = vmax.f32 %v1073_v39, 0.0  ;;  %v1074_v44 = vadd.f32 %v1265_v35, %v1064_v41 }
 0x142   : > { %v1274_v45 = vpack.c.bf16 %v1078_v40, %v1078_v40 }
 0x143   : > { %v1272_v46 = vpack.c.bf16 %v1076_v42, %v1076_v42  ;;  %v1077_v47 = vmax.f32 %v1074_v44, 0.0 }
 0x144   : > { %v1099_v48 = vsel %vm1097_vm8, %v1274_v45, %v1098_v43 }
 0x145   : > { %1093 = vst.msk [vmem:[%s170_s7] sm:$0xf] %vm1092_vm9, %v1272_v46  ;;  %1100 = vst [vmem:[%s170_s7 + $0x8] sm:$0x3] %v1099_v48  ;;  %v1273_v49 = vpack.c.bf16 %v1077_v47, %v1077_v47 }
 0x147   : > { %1094 = vst.msk [vmem:[%s170_s7 + $0x4] sm:$0xf] %vm1092_vm9, %v1273_v49 }
 0x148 PF: > { %s13_s12 = sadd.s32 1, %s1434_s12  }
 0x149   : > { %p10_p4 = scmp.ge.s32.totalorder %s13_s12, 4  }
 0x14b   :  { %12 = sbr.rel (!%p10_p4) target bundleno = 1 (0x1), region = 73 }

// kernel: dqn_forward.4
= control target key start
LH: loop header
LB: loop body
LE: loop exit
PB: predicated region body
PF: predicated region fallthrough
CT: control target
= control target key end

     0   :  { %s2342_s12 = smov 0   ;;  %s2799_s0 = inlined_call_operand.vmem [shape: bf16[2,4,81,4], index: 0, kind: input, shape index: {}]   ;;  %s2800_s1 = inlined_call_operand.vmem [shape: bf16[9,4,32], index: 1, kind: input, shape index: {}]   ;;  %s2801_s2 = inlined_call_operand.vmem [shape: f32[1,32], index: 2, kind: input, shape index: {}]   ;;  %s2802_s3 = inlined_call_operand.vmem [shape: bf16[2,71,32], index: 3, kind: output, shape index: {}]  }
   0x1 LB: > { %s1830_s13 = sadd.s32 4294967295, %s2318_s12   ;;  %p1834_p0 = scmp.ge.s32.totalorder %s2318_s12, 1  ;;  %s2318_s12 = sphi %s2342_s12, %s13_s12  }
   0x2   : > { %p137_p1 = scmp.lt.s32.totalorder %s2318_s12, 3 }
   0x4   : > { %p138_p2 = pnand %p1834_p0, %p137_p1 }
   0x5   : > { %v181_v0 = vld [vmem:[%s2800_s1] sm:$0x3] (!%p138_p2)  ;;  %vm221_vm0 = vcmask (!%p138_p2), 1041408   ;;  %p161_p3 = scmp.lt.s32.totalorder (!%p138_p2), %s1830_s13, 1  ;;  %v2320_v1 = vmov (!%p138_p2), 0.0   ;;  %vm2321_vm1 = vmmov (!%p138_p2), 0  }
   0x6   : > { %141 = sbr.rel (%p138_p2) target bundleno = 427 (0x1ab), region = 32  ;;  %2253 = vmatprep.subr.bf16.mxu1 (!%p138_p2), %v2320_v1  ;;  %2055 = vmatprep.subr.bf16.mxu0 (!%p138_p2), %v2320_v1  ;;  %v223_v2 = vsel (!%p138_p2), %vm221_vm0, %v181_v0, 0  ;;  %v1867_v3 = vld [vmem:[%s2800_s1 + $0x4] sm:$0x3] (!%p138_p2)  ;;  %v1856_v4 = vld [vmem:[%s2800_s1 + $0x2] sm:$0x3] (!%p138_p2) }
   0x7   : > { %2254 = vmatpush3.bf16.msra.mxu1 (!%p138_p2), %v223_v2  ;;  %2056 = vmatpush3.bf16.msra.mxu0 (!%p138_p2), %v223_v2  ;;  %vm205_vm2 = vcmask (!%p138_p2), 31744   ;;  %v550_v6 = vsel (!%p138_p2), %vm221_vm0, %v1867_v3, 0  ;;  %v359_v8 = vsel (!%p138_p2), %vm221_vm0, %v1856_v4, 0  ;;  %v1887_v15 = vld [vmem:[%s2800_s1 + $0x6] sm:$0x3] (!%p138_p2)  ;;  %vm1562_vm4 = vcmask (!%p138_p2), 1046528  }
   0x8   : > { %2057 = vmatprep.mubr.msk.bf16.mxu0 (!%p138_p2), %vm2321_vm1, %v2320_v1  ;;  %2069 = vmatprep.mubr.msk.bf16.mxu1 (!%p138_p2), %vm2321_vm1, %v2320_v1  ;;  %v702_v20 = vsel (!%p138_p2), %vm221_vm0, %v1887_v15, 0  ;;  %vm494_vm3 = vsmask.f32 (!%p138_p2), 7424  ;;  %v1907_v25 = vld [vmem:[%s2800_s1 + $0x8] sm:$0x3] (!%p138_p2)  ;;  %vm297_vm5 = vcmask (!%p138_p2), 261120  }
   0x9   : > { %2077 = vmatprep.subr.bf16.mxu1 (!%p138_p2), %v2320_v1  ;;  %2099 = vmatprep.subr.bf16.mxu0 (!%p138_p2), %v2320_v1  ;;  %v854_v31 = vsel (!%p138_p2), %vm221_vm0, %v1907_v25, 0  ;;  %vm306_vm6 = vcmask (!%p138_p2), 260096   ;;  %vm1760_vm7 = vcmask (!%p138_p2), 257024   ;;  %vm1770_vm8 = vsmask.f32 (!%p138_p2), 3328 }
   0xa   : > { %vm1771_vm9 = vmand (!%p138_p2), %vm1760_vm7, %vm1770_vm8 }
   0xd   : > { %s2804_s13 = smov (!%p161_p3, %s1830_s13), 1 }
   0xe   : > { %s2255_s16 = smul.u32 176, %s2804_s13 }
   0xf   : > { %s2256_s11 = smul.u32 36, %s2804_s13 }
  0x10   : > { %s2374_s23 = scalar_lea.vmem %s2799_s0, %s2255_s16 }
  0x11   : > { %v2267_v5 = vld [vmem:[%s2374_s23] sm:$0xff]   ;;  %v2268_v7 = vld [vmem:[%s2374_s23 + $0x18] sm:$0xff]   ;;  %v2269_v9 = vld [vmem:[%s2374_s23 + $0x8] sm:$0xff]   ;;  %s2760_s13 = scalar_lea.vmem %s2802_s3, %s2256_s11 }
  0x12   : > { %2058 = vmatmul.mubr.msk.bf16.vlgmr.msra.gmra.mrb[0].mxu0 %vm205_vm2, %v2267_v5  ;;  %2070 = vmatmul.mubr.msk.bf16.vlgmr.msra.gmra.mrb[0].mxu1 %vm205_vm2, %v2268_v7  ;;  %v2270_v10 = vld [vmem:[%s2374_s23 + $0x20] ss:$0 sps:$4 sm:$0xff]   ;;  %v2275_v12 = vld [vmem:[%s2374_s23 + $0x8] sm:$0xff]   ;;  %v2271_v14 = vld [vmem:[%s2374_s23 + $0x10] sm:$0xff]  }
  0x13   : > { %2100 = vmatpush3.bf16.msra.mxu0 %v550_v6  ;;  %2078 = vmatpush3.bf16.msra.mxu1 %v359_v8  ;;  %v2274_v11 = vld [vmem:[%s2374_s23] sm:$0xff]   ;;  %v2272_v16 = vld [vmem:[%s2374_s23 + $0x2c] sm:$0xff]   ;;  %v503_v19 = vshll.u32 %v2275_v12, 16  ;;  %v2410_v24 = vld [vmem:[%s2374_s23 + $0x18] sm:$0xff]   ;;  %v507_v26 = vshrl.u32 %v2275_v12, 16 }
  0x14   : > { %2061 = vmatprep.mubr.msk.bf16.mxu0 %vm2321_vm1, %v2320_v1  ;;  %2073 = vmatprep.mubr.msk.bf16.mxu1 %vm2321_vm1, %v2320_v1  ;;  %v498_v13 = vshll.u32 %v2274_v11, 16  ;;  %v496_v17 = vshrl.u32 %v2274_v11, 16  ;;  %v2277_v21 = vld [vmem:[%s2374_s23 + $0x10] sm:$0xff]   ;;  %v519_v30 = vshll.u32 %v2410_v24, 16  ;;  %v2292_v35 = vld [vmem:[%s2374_s23 + $0x58] sm:$0xff]   ;;  %v2293_v36 = vld [vmem:[%s2374_s23 + $0x60] sm:$0xff]  }
  0x15   : > { %2121 = vmatprep.subr.bf16.mxu1 %v2320_v1  ;;  %2143 = vmatprep.subr.bf16.mxu0 %v2320_v1  ;;  %v505_v23 = vrot.slane %v503_v19, 1  ;;  %v511_v27 = vshll.u32 %v2277_v21, 16  ;;  %v2273_v28 = vld [vmem:[%s2374_s23 + $0x34] sm:$0xff]   ;;  %v515_v34 = vshrl.u32 %v2277_v21, 16  ;;  %v2294_v38 = vld [vmem:[%s2374_s23 + $0x68] sm:$0xff]   ;;  %v990_v39 = vshrl.u32 %v2292_v35, 16 }
  0x16   : > { %v500_v18 = vrot.slane %v498_v13, 1  ;;  %v2426_v37 = vrot.slane %v519_v30, 1  ;;  %v992_v40 = vshll.u32 %v2292_v35, 16  ;;  %v997_v41 = vshll.u32 %v2293_v36, 16  ;;  %v2276_v43 = vld [vmem:[%s2374_s23 + $0x3c] sm:$0xff]   ;;  %v2295_v45 = vld [vmem:[%s2374_s23 + $0x4] sm:$0xff]  }
  0x17   : > { %v509_v32 = vor.u32 %v507_v26, %v505_v23  ;;  %v513_v33 = vrot.slane %v511_v27, 1  ;;  %v1001_v42 = vshrl.u32 %v2293_v36, 16  ;;  %v1005_v44 = vshll.u32 %v2294_v38, 16  ;;  %v2296_v50 = vld [vmem:[%s2374_s23 + $0xc] sm:$0xff]   ;;  %v2440_v52 = vld [vmem:[%s2374_s23 + $0x20] ss:$0 sps:$4 sm:$0xff]  }
  0x18   : > { %v501_v22 = vor.u32 %v500_v18, %v496_v17  ;;  %v994_v48 = vrot.slane %v992_v40, 1  ;;  %v999_v49 = vrot.slane %v997_v41, 1  ;;  %v2297_v51 = vld [vmem:[%s2374_s23 + $0x70] sm:$0xff]   ;;  %v1180_v54 = vshrl.u32 %v2295_v45, 16  ;;  %v2451_v7 = vld [vmem:[%s2374_s23 + $0x78] ss:$0 sps:$4 sm:$0xff]  }
  0x19   : > { %v514_v46 = vsel %vm494_vm3, %v509_v32, %v513_v33  ;;  %v517_v47 = vor.u32 %v515_v34, %v513_v33  ;;  %v1007_v53 = vrot.slane %v1005_v44, 1  ;;  %v1182_v55 = vshll.u32 %v2295_v45, 16  ;;  %v2298_v63 = vld [vmem:[%s2374_s23 + $0x14] sm:$0xff]   ;;  %v2300_v11 = vld [vmem:[%s2374_s23 + $0x1c] sm:$0xff]   ;;  %v2465_v17 = vld [vmem:[%s2374_s23 + $0x24] ss:$0 sps:$4 sm:$0xff]  }
  0x1a   : > { %2062 = vmatmul.mubr.msk.bf16.gmra.mrb[4].mxu0 %vm205_vm2, %v2269_v9  ;;  %2074 = vmatmul.mubr.msk.bf16.gmra.mrb[4].mxu1 %vm205_vm2, %v2270_v10  ;;  %v506_v29 = vsel %vm494_vm3, %v501_v22, %v505_v23  ;;  %v1009_v56 = vshrl.u32 %v2294_v38, 16  ;;  %v995_v57 = vor.u32 %v994_v48, %v990_v39  ;;  %v1003_v58 = vor.u32 %v1001_v42, %v999_v49  ;;  %v2302_v18 = vld [vmem:[%s2374_s23 + $0x30] sm:$0xff]   ;;  %v2278_v19 = vld [vmem:[%s2374_s23 + $0x44] sm:$0xff]  }
  0x1b   : > { %2065 = vmatprep.mubr.msk.bf16.mxu0 %vm2321_vm1, %v2320_v1  ;;  %2079 = vmatprep.mubr.msk.bf16.mxu1 %vm2321_vm1, %v2320_v1  ;;  %v1187_v59 = vshll.u32 %v2296_v50, 16  ;;  %v1013_v60 = vshll.u32 %v2297_v51, 16  ;;  %v1184_v61 = vrot.slane %v1182_v55, 1  ;;  %v1191_v0 = vshrl.u32 %v2296_v50, 16  ;;  %v2307_v50 = vld [vmem:[%s2374_s23 + $0x48] sm:$0xff]  }
  0x1c   : > { %v1011_v62 = vor.u32 %v1009_v56, %v1007_v53  ;;  %v1017_v2 = vshrl.u32 %v2297_v51, 16  ;;  %v2445_v3 = vsel %vm494_vm3, %v995_v57, %v999_v49  ;;  %v2448_v4 = vsel %vm494_vm3, %v1003_v58, %v1007_v53  ;;  %v2280_v53 = vld [vmem:[%s2374_s23 + $0x4c] ss:$0 sps:$4 sm:$0xff]   ;;  %v2509_v57 = vld [vmem:[%s2374_s23 + $0x50] ss:$0 sps:$4 sm:$0xff]  }
  0x1d   : > { %v1189_v5 = vrot.slane %v1187_v59, 1  ;;  %v1015_v6 = vrot.slane %v1013_v60, 1  ;;  %v523_v8 = vshrl.u32 %v2410_v24, 16  ;;  %v1185_v9 = vor.u32 %v1184_v61, %v1180_v54  ;;  %v2303_v24 = vld [vmem:[%s2374_s23 + $0x38] sm:$0xff]  }
  0x1e   : > { %v1195_v10 = vshll.u32 %v2298_v63, 16  ;;  %v1199_v12 = vshrl.u32 %v2298_v63, 16  ;;  %v1203_v23 = vshll.u32 %v2300_v11, 16  ;;  %v522_v25 = vsel %vm494_vm3, %v517_v47, %v2426_v37 }
  0x1f   : > { %v2461_v13 = vsel %vm494_vm3, %v1011_v62, %v1015_v6  ;;  %v1019_v15 = vor.u32 %v1017_v2, %v1015_v6  ;;  %v2471_v21 = vsel %vm494_vm3, %v1185_v9, %v1189_v5  ;;  %v1207_v27 = vshrl.u32 %v2300_v11, 16  ;;  %v2282_v9 = vld [vmem:[%s2374_s23 + $0x58] sm:$0xff]   ;;  %v1938_v11 = vld [vmem:[%s2800_s1 + $0xc] sm:$0x3] }
  0x20   : > { %v1197_v22 = vrot.slane %v1195_v10, 1  ;;  %v1205_v32 = vrot.slane %v1203_v23, 1  ;;  %v1370_v33 = vshrl.u32 %v2302_v18, 16  ;;  %v1372_v36 = vshll.u32 %v2302_v18, 16  ;;  %v2285_v18 = vld [vmem:[%s2374_s23 + $0x68] sm:$0xff]  }
  0x21   : > { %v1377_v40 = vshll.u32 %v2303_v24, 16  ;;  %v1381_v41 = vshrl.u32 %v2303_v24, 16  ;;  %v525_v44 = vor.u32 %v523_v8, %v2426_v37  ;;  %v1393_v37 = vshll.u32 %v2307_v50, 16  ;;  %v1927_v8 = vld [vmem:[%s2800_s1 + $0xa] sm:$0x3] }
  0x22   : > { %2066 = vmatmul.mubr.msk.bf16.gmra.mrb[8].mxu0 %vm205_vm2, %v2271_v14  ;;  %2080 = vmatmul.mubr.msk.bf16.vlgmr.msra.gmra.mrb[8].mxu1 %vm205_vm2, %v2272_v16  ;;  %v1193_v14 = vor.u32 %v1191_v0, %v1189_v5  ;;  %v1021_v16 = vshll.u32 %v2451_v7, 16  ;;  %v1209_v39 = vor.u32 %v1207_v27, %v1205_v32  ;;  %v1374_v42 = vrot.slane %v1372_v36, 1  ;;  %v2289_v23 = vld [vmem:[%s2374_s23 + $0x78] ss:$0 sps:$4 sm:$0xff]   ;;  %v2291_v24 = vld [vmem:[%s2374_s23 + $0xa4] ss:$0 sps:$4 sm:$0xff]  }
  0x23   : > { %2101 = vmatprep.mubr.msk.bf16.mxu0 %vm2321_vm1, %v2320_v1  ;;  %2122 = vmatpush3.bf16.msra.mxu1 %v702_v20  ;;  %v527_v20 = vshll.u32 %v2440_v52, 16  ;;  %v1379_v47 = vrot.slane %v1377_v40, 1  ;;  %v1397_v60 = vshrl.u32 %v2307_v50, 16  ;;  %v1395_v61 = vrot.slane %v1393_v37, 1 }
  0x24   : > { %2083 = vmatprep.mubr.msk.bf16.mxu1 %vm2321_vm1, %v2320_v1  ;;  %2165 = vmatprep.subr.bf16.mxu1 %v2320_v1  ;;  %v2476_v26 = vrot.slane %v1021_v16, 1  ;;  %v2481_v30 = vsel %vm494_vm3, %v1193_v14, %v1197_v22  ;;  %v1375_v48 = vor.u32 %v1374_v42, %v1370_v33  ;;  %v1401_v62 = vshll.u32 %v2509_v57, 16  ;;  %v2283_v14 = vld [vmem:[%s2374_s23 + $0x60] sm:$0xff]   ;;  %v2286_v16 = vld [vmem:[%s2374_s23 + $0x8c] sm:$0xff]  }
  0x25   : > { %v529_v45 = vrot.slane %v527_v20, 1  ;;  %v1383_v54 = vor.u32 %v1381_v41, %v1379_v47  ;;  %v531_v63 = vshrl.u32 %v2440_v52, 16  ;;  %v1399_v2 = vor.u32 %v1397_v60, %v1395_v61  ;;  %v2287_v20 = vld [vmem:[%s2374_s23 + $0x70] sm:$0xff]  }
  0x26   : > { %v2485_v34 = vsel %vm494_vm3, %v1019_v15, %v2476_v26  ;;  %v2506_v55 = vsel %vm494_vm3, %v1375_v48, %v1379_v47  ;;  %v2521_v5 = vrot.slane %v1401_v62, 1  ;;  %v1044_v10 = vsel %vm221_vm0, %v1927_v8, 0 }
  0x27   : > { %v530_v58 = vsel %vm494_vm3, %v525_v44, %v529_v45  ;;  %v533_v52 = vor.u32 %v531_v63, %v529_v45  ;;  %v1234_v15 = vsel %vm221_vm0, %v1938_v11, 0  ;;  %v1405_v40 = vshrl.u32 %v2509_v57, 16 }
  0x28   : > { %v2530_v6 = vsel %vm494_vm3, %v1399_v2, %v2521_v5 }
  0x29   : > { %v1407_v42 = vor.u32 %v1405_v40, %v2521_v5 }
  0x2a   : > { %2102 = vmatmul.mubr.msk.bf16.vlgmr.msra.gmra.mrb[12].mxu0 %vm205_vm2, %v506_v29  ;;  %2084 = vmatmul.mubr.msk.bf16.gmra.mrb[12].mxu1 %vm205_vm2, %v2273_v28  ;;  %v1211_v28 = vshll.u32 %v2465_v17, 16  ;;  %v2304_v29 = vld [vmem:[%s2374_s23 + $0x40] sm:$0xff]  }
  0x2b   : > { %2144 = vmatpush3.bf16.msra.mxu0 %v854_v31  ;;  %2087 = vmatprep.mubr.msk.bf16.mxu1 %vm2321_vm1, %v2320_v1  ;;  %v1201_v31 = vor.u32 %v1199_v12, %v1197_v22  ;;  %v1389_v51 = vshrl.u32 %v2304_v29, 16  ;;  %v2284_v12 = vld [vmem:[%s2374_s23 + $0x84] sm:$0xff]   ;;  %v2290_v22 = vld [vmem:[%s2374_s23 + $0x9c] sm:$0xff]  }
  0x2c   : > { %2105 = vmatprep.mubr.msk.bf16.mxu0 %vm2321_vm1, %v2320_v1  ;;  %2187 = vmatprep.subr.bf16.mxu0 %v2320_v1  ;;  %v2487_v35 = vrot.slane %v1211_v28, 1  ;;  %v1969_v28 = vld [vmem:[%s2800_s1 + $0x10] sm:$0x3] }
  0x2d   : > { %v2490_v38 = vsel %vm494_vm3, %v1201_v31, %v1205_v32  ;;  %v2308_v32 = vld [vmem:[%s2374_s23 + $0x14] sm:$0xff]  }
  0x2e   : > { %v1566_v33 = vrot.slane %v2308_v32, 1 }
  0x32   : > { %2106 = vmatmul.mubr.msk.bf16.gmra.mrb[16].mxu0 %vm205_vm2, %v514_v46  ;;  %2088 = vmatmul.mubr.msk.bf16.gmra.mrb[16].mxu1 %vm205_vm2, %v2276_v43  ;;  %v1385_v43 = vshll.u32 %v2304_v29, 16  ;;  %v2499_v46 = vsel %vm494_vm3, %v1209_v39, %v2487_v35  ;;  %v1588_v29 = vsel %vm221_vm0, %v1969_v28, 0  ;;  %v2311_v39 = vld [vmem:[%s2374_s23 + $0x24] sm:$0x1f]  }
  0x33   : > { %2109 = vmatprep.mubr.msk.bf16.mxu0 %vm2321_vm1, %v2320_v1  ;;  %2091 = vmatprep.mubr.msk.bf16.mxu1 %vm2321_vm1, %v2320_v1  ;;  %v1570_v41 = vrot.slane %v2311_v39, 1 }
  0x34   : > { %v1387_v49 = vrot.slane %v1385_v43, 1 }
  0x36   : > { %v1391_v56 = vor.u32 %v1389_v51, %v1387_v49  ;;  %v2513_v59 = vsel %vm494_vm3, %v1383_v54, %v1387_v49 }
  0x38   : > { %v2519_v0 = vsel %vm494_vm3, %v1391_v56, %v1395_v61 }
  0x3a   : > { %2110 = vmatmul.mubr.msk.bf16.gmra.mrb[20].mxu0 %vm205_vm2, %v522_v25  ;;  %2092 = vmatmul.mubr.msk.bf16.gmra.mrb[20].mxu1 %vm205_vm2, %v2278_v19  ;;  %v2288_v19 = vld [vmem:[%s2374_s23 + $0x94] sm:$0xff]   ;;  %v1958_v25 = vld [vmem:[%s2800_s1 + $0xe] sm:$0x3] }
  0x3b   : > { %2113 = vmatprep.mubr.msk.bf16.mxu0 %vm2321_vm1, %v2320_v1  ;;  %2095 = vmatprep.mubr.msk.bf16.mxu1 %vm2321_vm1, %v2320_v1  ;;  %v1424_v27 = vsel %vm221_vm0, %v1958_v25, 0 }
  0x42   : > { %2114 = vmatmul.mubr.msk.bf16.gmra.mrb[24].mxu0 %vm205_vm2, %v530_v58  ;;  %2096 = vmatmul.mubr.msk.bf16.gmra.mrb[24].mxu1 %vm205_vm2, %v2280_v53 }
  0x43   : > { %2117 = vmatprep.mubr.msk.bf16.mxu0 %vm2321_vm1, %v2320_v1  ;;  %2123 = vmatprep.mubr.msk.bf16.mxu1 %vm2321_vm1, %v2320_v1 }
  0x4a   : > { %2118 = vmatmul.mubr.msk.bf16.gmra.mrb[28].mxu0 %vm205_vm2, %v533_v52  ;;  %2124 = vmatmul.mubr.msk.bf16.vlgmr.msra.gmra.mrb[28].mxu1 %vm205_vm2, %v2282_v9 }
  0x4b   : > { %2145 = vmatprep.mubr.msk.bf16.mxu0 %vm2321_vm1, %v2320_v1  ;;  %2166 = vmatpush3.bf16.msra.mxu1 %v1044_v10 }
  0x4c   : > { %2127 = vmatprep.mubr.msk.bf16.mxu1 %vm2321_vm1, %v2320_v1  ;;  %2209 = vmatprep.subr.bf16.mxu1 %v2320_v1 }
  0x52   : > { %2146 = vmatmul.mubr.msk.bf16.vlgmr.msra.gmra.mrb[32].mxu0 %vm205_vm2, %v2284_v12  ;;  %2128 = vmatmul.mubr.msk.bf16.gmra.mrb[32].mxu1 %vm205_vm2, %v2283_v14 }
  0x53   : > { %2188 = vmatpush3.bf16.msra.mxu0 %v1234_v15  ;;  %2131 = vmatprep.mubr.msk.bf16.mxu1 %vm2321_vm1, %v2320_v1 }
  0x54   : > { %2149 = vmatprep.mubr.msk.bf16.mxu0 %vm2321_vm1, %v2320_v1  ;;  %2231 = vmatprep.subr.bf16.mxu0 %v2320_v1 }
  0x5a   : > { %2150 = vmatmul.mubr.msk.bf16.gmra.mrb[36].mxu0 %vm205_vm2, %v2286_v16  ;;  %2132 = vmatmul.mubr.msk.bf16.gmra.mrb[36].mxu1 %vm205_vm2, %v2285_v18 }
  0x5b   : > { %2153 = vmatprep.mubr.msk.bf16.mxu0 %vm2321_vm1, %v2320_v1  ;;  %2135 = vmatprep.mubr.msk.bf16.mxu1 %vm2321_vm1, %v2320_v1 }
  0x62   : > { %2154 = vmatmul.mubr.msk.bf16.gmra.mrb[40].mxu0 %vm205_vm2, %v2288_v19  ;;  %2136 = vmatmul.mubr.msk.bf16.gmra.mrb[40].mxu1 %vm205_vm2, %v2287_v20 }
  0x63   : > { %2157 = vmatprep.mubr.msk.bf16.mxu0 %vm2321_vm1, %v2320_v1  ;;  %2139 = vmatprep.mubr.msk.bf16.mxu1 %vm2321_vm1, %v2320_v1 }
  0x6a   : > { %2158 = vmatmul.mubr.msk.bf16.gmra.mrb[44].mxu0 %vm205_vm2, %v2290_v22  ;;  %2140 = vmatmul.mubr.msk.bf16.gmra.mrb[44].mxu1 %vm205_vm2, %v2289_v23 }
  0x6b   : > { %2161 = vmatprep.mubr.msk.bf16.mxu0 %vm2321_vm1, %v2320_v1  ;;  %2167 = vmatprep.mubr.msk.bf16.mxu1 %vm2321_vm1, %v2320_v1 }
  0x72   : > { %2162 = vmatmul.mubr.msk.bf16.gmra.mrb[48].mxu0 %vm205_vm2, %v2291_v24  ;;  %2168 = vmatmul.mubr.msk.bf16.vlgmr.msra.gmra.mrb[48].mxu1 %vm205_vm2, %v2445_v3  ;;  %v1025_v3 = vshrl.u32 %v2451_v7, 16 }
  0x73   : > { %2189 = vmatprep.mubr.msk.bf16.mxu0 %vm2321_vm1, %v2320_v1  ;;  %2210 = vmatpush3.bf16.msra.mxu1 %v1424_v27 }
  0x74   : > { %2171 = vmatprep.mubr.msk.bf16.mxu1 %vm2321_vm1, %v2320_v1 }
  0x7a   : > { %2190 = vmatmul.mubr.msk.bf16.vlgmr.msra.gmra.mrb[52].mxu0 %vm205_vm2, %v2471_v21  ;;  %2172 = vmatmul.mubr.msk.bf16.gmra.mrb[52].mxu1 %vm205_vm2, %v2448_v4  ;;  %v1027_v4 = vor.u32 %v1025_v3, %v2476_v26  ;;  %v2305_v21 = vld [vmem:[%s2374_s23 + $0x4] sm:$0xfe]  }
  0x7b   : > { %2232 = vmatpush3.bf16.msra.mxu0 %v1588_v29  ;;  %2175 = vmatprep.mubr.msk.bf16.mxu1 %vm2321_vm1, %v2320_v1 }
  0x7c   : > { %2193 = vmatprep.mubr.msk.bf16.mxu0 %vm2321_vm1, %v2320_v1 }
  0x82   : > { %2194 = vmatmul.mubr.msk.bf16.gmra.mrb[56].mxu0 %vm205_vm2, %v2481_v30  ;;  %2176 = vmatmul.mubr.msk.bf16.gmra.mrb[56].mxu1 %vm205_vm2, %v2461_v13  ;;  %v1215_v13 = vshrl.u32 %v2465_v17, 16  ;;  %v2306_v30 = vld [vmem:[%s2374_s23 + $0xc] sm:$0xff]   ;;  %v1563_v17 = vrot.slane %v2305_v21, 1 }
  0x83   : > { %2197 = vmatprep.mubr.msk.bf16.mxu0 %vm2321_vm1, %v2320_v1  ;;  %2179 = vmatprep.mubr.msk.bf16.mxu1 %vm2321_vm1, %v2320_v1  ;;  %v1564_v26 = vrot.slane %v2306_v30, 1 }
  0x84   : > { %v1217_v7 = vor.u32 %v1215_v13, %v2487_v35  ;;  %v2310_v35 = vld [vmem:[%s2374_s23 + $0x1c] sm:$0xff]  }
  0x85   : > { %v1565_v31 = vsel %vm1562_vm4, %v1563_v17, %v1564_v26  ;;  %v1568_v36 = vrot.slane %v2310_v35, 1 }
  0x87   : > { %v1571_v43 = vsel %vm1562_vm4, %v1568_v36, %v1570_v41 }
  0x8a   : > { %2198 = vmatmul.mubr.msk.bf16.gmra.mrb[60].mxu0 %vm205_vm2, %v2490_v38  ;;  %2180 = vmatmul.mubr.msk.bf16.gmra.mrb[60].mxu1 %vm205_vm2, %v2485_v34  ;;  %v1567_v34 = vsel %vm1562_vm4, %v1564_v26, %v1566_v33  ;;  %v1569_v38 = vsel %vm1562_vm4, %v1566_v33, %v1568_v36 }
  0x8b   : > { %2201 = vmatprep.mubr.msk.bf16.mxu0 %vm2321_vm1, %v2320_v1  ;;  %2183 = vmatprep.mubr.msk.bf16.mxu1 %vm2321_vm1, %v2320_v1 }
  0x92   : > { %2202 = vmatmul.mubr.msk.bf16.gmra.mrb[64].mxu0 %vm205_vm2, %v2499_v46  ;;  %2184 = vmatmul.mubr.msk.bf16.gmra.mrb[64].mxu1 %vm205_vm2, %v1027_v4 }
  0x93   : > { %2205 = vmatprep.mubr.msk.bf16.mxu0 %vm2321_vm1, %v2320_v1  ;;  %2211 = vmatprep.mubr.msk.bf16.mxu1 %vm2321_vm1, %v2320_v1 }
  0x9a   : > { %2206 = vmatmul.mubr.msk.bf16.gmra.mrb[68].mxu0 %vm205_vm2, %v1217_v7  ;;  %2212 = vmatmul.mubr.msk.bf16.vlgmr.msra.gmra.mrb[68].mxu1 %vm205_vm2, %v2506_v55 }
  0x9b   : > { %2233 = vmatprep.mubr.msk.bf16.mxu0 %vm2321_vm1, %v2320_v1  ;;  %2215 = vmatprep.mubr.msk.bf16.mxu1 %vm2321_vm1, %v2320_v1 }
  0xa2   : > { %2234 = vmatmul.mubr.msk.bf16.vlgmr.msra.gmra.mrb[72].mxu0 %vm205_vm2, %v1565_v31  ;;  %2216 = vmatmul.mubr.msk.bf16.gmra.mrb[72].mxu1 %vm205_vm2, %v2513_v59 }
  0xa3   : > { %2237 = vmatprep.mubr.msk.bf16.mxu0 %vm2321_vm1, %v2320_v1  ;;  %2219 = vmatprep.mubr.msk.bf16.mxu1 %vm2321_vm1, %v2320_v1 }
  0xaa   : > { %2238 = vmatmul.mubr.msk.bf16.gmra.mrb[76].mxu0 %vm205_vm2, %v1567_v34  ;;  %2220 = vmatmul.mubr.msk.bf16.gmra.mrb[76].mxu1 %vm205_vm2, %v2519_v0 }
  0xab   : > { %2241 = vmatprep.mubr.msk.bf16.mxu0 %vm2321_vm1, %v2320_v1  ;;  %2223 = vmatprep.mubr.msk.bf16.mxu1 %vm2321_vm1, %v2320_v1 }
  0xb2   : > { %2242 = vmatmul.mubr.msk.bf16.gmra.mrb[80].mxu0 %vm205_vm2, %v1569_v38  ;;  %2224 = vmatmul.mubr.msk.bf16.gmra.mrb[80].mxu1 %vm205_vm2, %v2530_v6 }
  0xb3   : > { %2245 = vmatprep.mubr.msk.bf16.mxu0 %vm2321_vm1, %v2320_v1  ;;  %2227 = vmatprep.mubr.msk.bf16.mxu1 %vm2321_vm1, %v2320_v1 }
  0xba   : > { %2246 = vmatmul.mubr.msk.bf16.gmra.mrb[84].mxu0 %vm205_vm2, %v1571_v43  ;;  %2228 = vmatmul.mubr.msk.bf16.gmra.mrb[84].mxu1 %vm205_vm2, %v1407_v42 }
  0xbb   : > { %2249 = vmatprep.mubr.msk.bf16.mxu0 %vm2321_vm1, %v2320_v1 }
  0xc2   : > { %2250 = vmatmul.mubr.msk.bf16.gmra.mrb[88].mxu0 %vm205_vm2, %v1570_v41 }
  0xe5   : > { %v259_v44 = vpop.f32.mrb[0].mxu0  ;;  %v283_v45 = vpop.f32.mrb[0].mxu1 }
  0xe6   : > { %298 = vst.msk [vmem:[#allocation2] sm:$0xff] %vm297_vm5, %v259_v44  ;;  %v2059_v46 = vpop.f32.mrb[1].mxu0  ;;  %304 = vst.msk [vmem:[#allocation2 + $0x30] sm:$0xff] %vm297_vm5, %v283_v45  ;;  %v2071_v47 = vpop.f32.mrb[1].mxu1 }
  0xe7   : > { %v262_v48 = vpop.f32.mrb[2].mxu0  ;;  %v286_v49 = vpop.f32.mrb[2].mxu1 }
  0xe8   : > { %299 = vst.msk [vmem:[#allocation2 + $0x8] sm:$0xff] %vm297_vm5, %v262_v48  ;;  %v2060_v50 = vpop.f32.mrb[3].mxu0  ;;  %305 = vst.msk [vmem:[#allocation2 + $0x38] sm:$0xff] %vm297_vm5, %v286_v49  ;;  %v2072_v51 = vpop.f32.mrb[3].mxu1 }
  0xed   : > { %v267_v1 = vpop.f32.mrb[4].mxu0  ;;  %v291_v53 = vpop.f32.mrb[4].mxu1  ;;  %v433_v61 = vld [vmem:[#allocation2] sm:$0xff]  ;;  %v439_v42 = vld [vmem:[#allocation2 + $0x30] sm:$0xff] }
  0xee   : > { %300 = vst.msk [vmem:[#allocation2 + $0x10] sm:$0xff] %vm297_vm5, %v267_v1  ;;  %v2063_v54 = vpop.f32.mrb[5].mxu0  ;;  %v2075_v55 = vpop.f32.mrb[5].mxu1 }
  0xef   : > { %307 = vst.msk [vmem:[#allocation2 + $0x40] sm:$0x7f] %vm306_vm6, %v291_v53  ;;  %v270_v56 = vpop.f32.mrb[6].mxu0  ;;  %v294_v37 = vpop.f32.mrb[6].mxu1  ;;  %v434_v6 = vld [vmem:[#allocation2 + $0x8] sm:$0xff]  ;;  %v440_v49 = vld [vmem:[#allocation2 + $0x38] sm:$0xff] }
  0xf0   : > { %301 = vst.msk [vmem:[#allocation2 + $0x18] sm:$0xff] %vm297_vm5, %v270_v56  ;;  %v2064_v57 = vpop.f32.mrb[7].mxu0  ;;  %v2076_v58 = vpop.f32.mrb[7].mxu1 }
  0xf5   : > { %v275_v59 = vpop.f32.mrb[8].mxu0  ;;  %v395_v60 = vpop.f32.mrb[8].mxu1  ;;  %v435_v12 = vld [vmem:[#allocation2 + $0x10] sm:$0xff] }
  0xf6   : > { %302 = vst.msk [vmem:[#allocation2 + $0x20] sm:$0xff] %vm297_vm5, %v275_v59  ;;  %v2067_v62 = vpop.f32.mrb[9].mxu0  ;;  %v442_v63 = vadd.f32 %v433_v61, %v395_v60  ;;  %v2081_v0 = vpop.f32.mrb[9].mxu1  ;;  %v441_v57 = vld [vmem:[#allocation2 + $0x40] sm:$0x7f] }
  0xf7   : > { %v278_v2 = vpop.f32.mrb[10].mxu0  ;;  %v398_v5 = vpop.f32.mrb[10].mxu1  ;;  %v436_v22 = vld [vmem:[#allocation2 + $0x18] sm:$0xff] }
  0xf8   : > { %303 = vst.msk [vmem:[#allocation2 + $0x28] sm:$0xff] %vm297_vm5, %v278_v2  ;;  %v2068_v52 = vpop.f32.mrb[11].mxu0  ;;  %451 = vst.msk [vmem:[#allocation2] sm:$0xff] %vm297_vm5, %v442_v63  ;;  %v443_v8 = vadd.f32 %v434_v6, %v398_v5  ;;  %v2082_v9 = vpop.f32.mrb[11].mxu1 }
  0xfa   : > { %452 = vst.msk [vmem:[#allocation2 + $0x8] sm:$0xff] %vm297_vm5, %v443_v8 }
  0xfd   : > { %v586_v10 = vpop.f32.mrb[12].mxu0  ;;  %v403_v11 = vpop.f32.mrb[12].mxu1  ;;  %v437_v13 = vld [vmem:[#allocation2 + $0x20] sm:$0xff] }
  0xfe   : > { %v2103_v14 = vpop.f32.mrb[13].mxu0  ;;  %v444_v15 = vadd.f32 %v435_v12, %v403_v11  ;;  %v2085_v16 = vpop.f32.mrb[13].mxu1 }
  0xff   : > { %v589_v18 = vpop.f32.mrb[14].mxu0  ;;  %v624_v19 = vld [vmem:[#allocation2] sm:$0xff]  ;;  %v406_v20 = vpop.f32.mrb[14].mxu1  ;;  %v438_v32 = vld [vmem:[#allocation2 + $0x28] sm:$0xff] }
 0x100   : > { %v2104_v23 = vpop.f32.mrb[15].mxu0  ;;  %453 = vst.msk [vmem:[#allocation2 + $0x10] sm:$0xff] %vm297_vm5, %v444_v15  ;;  %v633_v24 = vadd.f32 %v624_v19, %v586_v10  ;;  %v445_v25 = vadd.f32 %v436_v22, %v406_v20  ;;  %v2086_v27 = vpop.f32.mrb[15].mxu1 }
 0x101   : > { %v625_v28 = vld [vmem:[#allocation2 + $0x8] sm:$0xff] }
 0x102   : > { %642 = vst.msk [vmem:[#allocation2] sm:$0xff] %vm297_vm5, %v633_v24  ;;  %454 = vst.msk [vmem:[#allocation2 + $0x18] sm:$0xff] %vm297_vm5, %v445_v25  ;;  %v634_v29 = vadd.f32 %v625_v28, %v589_v18 }
 0x104   : > { %643 = vst.msk [vmem:[#allocation2 + $0x8] sm:$0xff] %vm297_vm5, %v634_v29 }
 0x105   : > { %v594_v3 = vpop.f32.mrb[16].mxu0  ;;  %v411_v4 = vpop.f32.mrb[16].mxu1 }
 0x106   : > { %v2107_v7 = vpop.f32.mrb[17].mxu0  ;;  %v446_v21 = vadd.f32 %v437_v13, %v411_v4  ;;  %v2089_v30 = vpop.f32.mrb[17].mxu1 }
 0x107   : > { %v597_v17 = vpop.f32.mrb[18].mxu0  ;;  %v626_v26 = vld [vmem:[#allocation2 + $0x10] sm:$0xff]  ;;  %v414_v31 = vpop.f32.mrb[18].mxu1 }
 0x108   : > { %v2108_v33 = vpop.f32.mrb[19].mxu0  ;;  %455 = vst.msk [vmem:[#allocation2 + $0x20] sm:$0xff] %vm297_vm5, %v446_v21  ;;  %v635_v34 = vadd.f32 %v626_v26, %v594_v3  ;;  %v447_v35 = vadd.f32 %v438_v32, %v414_v31  ;;  %v2090_v36 = vpop.f32.mrb[19].mxu1 }
 0x109   : > { %v627_v38 = vld [vmem:[#allocation2 + $0x18] sm:$0xff]  ;;  %v776_v10 = vld [vmem:[#allocation2] sm:$0xff] }
 0x10a   : > { %644 = vst.msk [vmem:[#allocation2 + $0x10] sm:$0xff] %vm297_vm5, %v635_v34  ;;  %456 = vst.msk [vmem:[#allocation2 + $0x28] sm:$0xff] %vm297_vm5, %v447_v35  ;;  %v636_v39 = vadd.f32 %v627_v38, %v597_v17 }
 0x10b   : > { %v777_v19 = vld [vmem:[#allocation2 + $0x8] sm:$0xff] }
 0x10c   : > { %645 = vst.msk [vmem:[#allocation2 + $0x18] sm:$0xff] %vm297_vm5, %v636_v39 }
 0x10d   : > { %v602_v40 = vpop.f32.mrb[20].mxu0  ;;  %v419_v41 = vpop.f32.mrb[20].mxu1 }
 0x10e   : > { %v2111_v43 = vpop.f32.mrb[21].mxu0  ;;  %v448_v44 = vadd.f32 %v439_v42, %v419_v41  ;;  %v2093_v45 = vpop.f32.mrb[21].mxu1 }
 0x10f   : > { %v605_v46 = vpop.f32.mrb[22].mxu0  ;;  %v628_v47 = vld [vmem:[#allocation2 + $0x20] sm:$0xff]  ;;  %v422_v48 = vpop.f32.mrb[22].mxu1 }
 0x110   : > { %v2112_v50 = vpop.f32.mrb[23].mxu0  ;;  %457 = vst.msk [vmem:[#allocation2 + $0x30] sm:$0xff] %vm297_vm5, %v448_v44  ;;  %v637_v51 = vadd.f32 %v628_v47, %v602_v40  ;;  %v449_v1 = vadd.f32 %v440_v49, %v422_v48  ;;  %v2094_v53 = vpop.f32.mrb[23].mxu1 }
 0x111   : > { %v629_v54 = vld [vmem:[#allocation2 + $0x28] sm:$0xff]  ;;  %v778_v28 = vld [vmem:[#allocation2 + $0x10] sm:$0xff] }
 0x112   : > { %646 = vst.msk [vmem:[#allocation2 + $0x20] sm:$0xff] %vm297_vm5, %v637_v51  ;;  %458 = vst.msk [vmem:[#allocation2 + $0x38] sm:$0xff] %vm297_vm5, %v449_v1  ;;  %v638_v55 = vadd.f32 %v629_v54, %v605_v46 }
 0x113   : > { %v779_v30 = vld [vmem:[#allocation2 + $0x18] sm:$0xff] }
 0x114   : > { %647 = vst.msk [vmem:[#allocation2 + $0x28] sm:$0xff] %vm297_vm5, %v638_v55 }
 0x115   : > { %v610_v56 = vpop.f32.mrb[24].mxu0  ;;  %v427_v37 = vpop.f32.mrb[24].mxu1 }
 0x116   : > { %v2115_v58 = vpop.f32.mrb[25].mxu0  ;;  %v450_v59 = vadd.f32 %v441_v57, %v427_v37  ;;  %v2097_v60 = vpop.f32.mrb[25].mxu1 }
 0x117   : > { %v613_v61 = vpop.f32.mrb[26].mxu0  ;;  %v630_v62 = vld [vmem:[#allocation2 + $0x30] sm:$0xff]  ;;  %v430_v63 = vpop.f32.mrb[26].mxu1 }
 0x118   : > { %v2116_v0 = vpop.f32.mrb[27].mxu0  ;;  %459 = vst.msk [vmem:[#allocation2 + $0x40] sm:$0x7f] %vm306_vm6, %v450_v59  ;;  %v639_v2 = vadd.f32 %v630_v62, %v610_v56  ;;  %v2098_v5 = vpop.f32.mrb[27].mxu1 }
 0x119   : > { %v631_v6 = vld [vmem:[#allocation2 + $0x38] sm:$0xff]  ;;  %v780_v38 = vld [vmem:[#allocation2 + $0x20] sm:$0xff] }
 0x11a   : > { %648 = vst.msk [vmem:[#allocation2 + $0x30] sm:$0xff] %vm297_vm5, %v639_v2  ;;  %v640_v52 = vadd.f32 %v631_v6, %v613_v61 }
 0x11b   : > { %v781_v45 = vld [vmem:[#allocation2 + $0x28] sm:$0xff] }
 0x11c   : > { %649 = vst.msk [vmem:[#allocation2 + $0x38] sm:$0xff] %vm297_vm5, %v640_v52 }
 0x11d   : > { %v618_v8 = vpop.f32.mrb[28].mxu0  ;;  %v738_v9 = vpop.f32.mrb[28].mxu1 }
 0x11e   : > { %v2119_v11 = vpop.f32.mrb[29].mxu0  ;;  %v785_v12 = vadd.f32 %v776_v10, %v738_v9  ;;  %v2125_v14 = vpop.f32.mrb[29].mxu1 }
 0x11f   : > { %v621_v15 = vpop.f32.mrb[30].mxu0  ;;  %v632_v16 = vld [vmem:[#allocation2 + $0x40] sm:$0x7f]  ;;  %v741_v18 = vpop.f32.mrb[30].mxu1 }
 0x120   : > { %v2120_v20 = vpop.f32.mrb[31].mxu0  ;;  %v641_v22 = vadd.f32 %v632_v16, %v618_v8  ;;  %794 = vst.msk [vmem:[#allocation2] sm:$0xff] %vm297_vm5, %v785_v12  ;;  %v786_v23 = vadd.f32 %v777_v19, %v741_v18  ;;  %v2126_v24 = vpop.f32.mrb[31].mxu1 }
 0x121   : > { %v782_v54 = vld [vmem:[#allocation2 + $0x30] sm:$0xff] }
 0x122   : > { %650 = vst.msk [vmem:[#allocation2 + $0x40] sm:$0x7f] %vm306_vm6, %v641_v22 }
 0x123   : > { %795 = vst.msk [vmem:[#allocation2 + $0x8] sm:$0xff] %vm297_vm5, %v786_v23  ;;  %v783_v60 = vld [vmem:[#allocation2 + $0x38] sm:$0xff] }
 0x125   : > { %v890_v25 = vpop.f32.mrb[32].mxu0  ;;  %v746_v27 = vpop.f32.mrb[32].mxu1 }
 0x126   : > { %v2147_v29 = vpop.f32.mrb[33].mxu0  ;;  %v787_v3 = vadd.f32 %v778_v28, %v746_v27  ;;  %v2129_v4 = vpop.f32.mrb[33].mxu1 }
 0x127   : > { %v893_v13 = vpop.f32.mrb[34].mxu0  ;;  %v928_v7 = vld [vmem:[#allocation2] sm:$0xff]  ;;  %v749_v21 = vpop.f32.mrb[34].mxu1 }
 0x128   : > { %v2148_v17 = vpop.f32.mrb[35].mxu0  ;;  %796 = vst.msk [vmem:[#allocation2 + $0x10] sm:$0xff] %vm297_vm5, %v787_v3  ;;  %v937_v26 = vadd.f32 %v928_v7, %v890_v25  ;;  %v788_v31 = vadd.f32 %v779_v30, %v749_v21  ;;  %v2130_v32 = vpop.f32.mrb[35].mxu1 }
 0x129   : > { %v784_v8 = vld [vmem:[#allocation2 + $0x40] sm:$0x7f] }
 0x12a   : > { %v929_v33 = vld [vmem:[#allocation2 + $0x8] sm:$0xff]  ;;  %946 = vst.msk [vmem:[#allocation2] sm:$0xff] %vm297_vm5, %v937_v26  ;;  %797 = vst.msk [vmem:[#allocation2 + $0x18] sm:$0xff] %vm297_vm5, %v788_v31 }
 0x12b   : > { %v938_v34 = vadd.f32 %v929_v33, %v893_v13 }
 0x12d   : > { %947 = vst.msk [vmem:[#allocation2 + $0x8] sm:$0xff] %vm297_vm5, %v938_v34  ;;  %v898_v35 = vpop.f32.mrb[36].mxu0  ;;  %v754_v36 = vpop.f32.mrb[36].mxu1 }
 0x12e   : > { %v2151_v39 = vpop.f32.mrb[37].mxu0  ;;  %v789_v40 = vadd.f32 %v780_v38, %v754_v36  ;;  %v2133_v41 = vpop.f32.mrb[37].mxu1 }
 0x12f   : > { %v901_v42 = vpop.f32.mrb[38].mxu0  ;;  %v930_v43 = vld [vmem:[#allocation2 + $0x10] sm:$0xff]  ;;  %v757_v44 = vpop.f32.mrb[38].mxu1 }
 0x130   : > { %v2152_v46 = vpop.f32.mrb[39].mxu0  ;;  %798 = vst.msk [vmem:[#allocation2 + $0x20] sm:$0xff] %vm297_vm5, %v789_v40  ;;  %v939_v47 = vadd.f32 %v930_v43, %v898_v35  ;;  %v790_v48 = vadd.f32 %v781_v45, %v757_v44  ;;  %v2134_v49 = vpop.f32.mrb[39].mxu1 }
 0x131   : > { %v931_v50 = vld [vmem:[#allocation2 + $0x18] sm:$0xff]  ;;  %v1118_v25 = vld [vmem:[#allocation2] sm:$0xff] }
 0x132   : > { %948 = vst.msk [vmem:[#allocation2 + $0x10] sm:$0xff] %vm297_vm5, %v939_v47  ;;  %799 = vst.msk [vmem:[#allocation2 + $0x28] sm:$0xff] %vm297_vm5, %v790_v48  ;;  %v940_v51 = vadd.f32 %v931_v50, %v901_v42 }
 0x134   : > { %949 = vst.msk [vmem:[#allocation2 + $0x18] sm:$0xff] %vm297_vm5, %v940_v51  ;;  %v1119_v7 = vld [vmem:[#allocation2 + $0x8] sm:$0xff] }
 0x135   : > { %v906_v1 = vpop.f32.mrb[40].mxu0  ;;  %v762_v53 = vpop.f32.mrb[40].mxu1 }
 0x136   : > { %v2155_v55 = vpop.f32.mrb[41].mxu0  ;;  %v791_v56 = vadd.f32 %v782_v54, %v762_v53  ;;  %v2137_v37 = vpop.f32.mrb[41].mxu1 }
 0x137   : > { %v909_v57 = vpop.f32.mrb[42].mxu0  ;;  %v932_v58 = vld [vmem:[#allocation2 + $0x20] sm:$0xff]  ;;  %v765_v59 = vpop.f32.mrb[42].mxu1 }
 0x138   : > { %v2156_v61 = vpop.f32.mrb[43].mxu0  ;;  %800 = vst.msk [vmem:[#allocation2 + $0x30] sm:$0xff] %vm297_vm5, %v791_v56  ;;  %v941_v62 = vadd.f32 %v932_v58, %v906_v1  ;;  %v792_v63 = vadd.f32 %v783_v60, %v765_v59  ;;  %v2138_v0 = vpop.f32.mrb[43].mxu1 }
 0x139   : > { %v933_v2 = vld [vmem:[#allocation2 + $0x28] sm:$0xff]  ;;  %v1120_v33 = vld [vmem:[#allocation2 + $0x10] sm:$0xff] }
 0x13a   : > { %950 = vst.msk [vmem:[#allocation2 + $0x20] sm:$0xff] %vm297_vm5, %v941_v62  ;;  %801 = vst.msk [vmem:[#allocation2 + $0x38] sm:$0xff] %vm297_vm5, %v792_v63  ;;  %v942_v5 = vadd.f32 %v933_v2, %v909_v57 }
 0x13b   : > { %v1121_v41 = vld [vmem:[#allocation2 + $0x18] sm:$0xff] }
 0x13c   : > { %951 = vst.msk [vmem:[#allocation2 + $0x28] sm:$0xff] %vm297_vm5, %v942_v5 }
 0x13d   : > { %v914_v6 = vpop.f32.mrb[44].mxu0  ;;  %v770_v52 = vpop.f32.mrb[44].mxu1 }
 0x13e   : > { %v2159_v9 = vpop.f32.mrb[45].mxu0  ;;  %v793_v10 = vadd.f32 %v784_v8, %v770_v52  ;;  %v2141_v11 = vpop.f32.mrb[45].mxu1 }
 0x13f   : > { %v917_v12 = vpop.f32.mrb[46].mxu0  ;;  %v934_v14 = vld [vmem:[#allocation2 + $0x30] sm:$0xff]  ;;  %v773_v15 = vpop.f32.mrb[46].mxu1 }
 0x140   : > { %v2160_v16 = vpop.f32.mrb[47].mxu0  ;;  %802 = vst.msk [vmem:[#allocation2 + $0x40] sm:$0x7f] %vm306_vm6, %v793_v10  ;;  %v943_v18 = vadd.f32 %v934_v14, %v914_v6  ;;  %v2142_v19 = vpop.f32.mrb[47].mxu1 }
 0x141   : > { %v935_v20 = vld [vmem:[#allocation2 + $0x38] sm:$0xff]  ;;  %v1122_v50 = vld [vmem:[#allocation2 + $0x20] sm:$0xff] }
 0x142   : > { %952 = vst.msk [vmem:[#allocation2 + $0x30] sm:$0xff] %vm297_vm5, %v943_v18  ;;  %v944_v22 = vadd.f32 %v935_v20, %v917_v12 }
 0x143   : > { %v1123_v37 = vld [vmem:[#allocation2 + $0x28] sm:$0xff] }
 0x144   : > { %953 = vst.msk [vmem:[#allocation2 + $0x38] sm:$0xff] %vm297_vm5, %v944_v22 }
 0x145   : > { %v922_v23 = vpop.f32.mrb[48].mxu0  ;;  %v1080_v24 = vpop.f32.mrb[48].mxu1 }
 0x146   : > { %v2163_v27 = vpop.f32.mrb[49].mxu0  ;;  %v1127_v28 = vadd.f32 %v1118_v25, %v1080_v24  ;;  %v2169_v29 = vpop.f32.mrb[49].mxu1 }
 0x147   : > { %v925_v3 = vpop.f32.mrb[50].mxu0  ;;  %v936_v4 = vld [vmem:[#allocation2 + $0x40] sm:$0x7f]  ;;  %v1083_v13 = vpop.f32.mrb[50].mxu1 }
 0x148   : > { %v2164_v21 = vpop.f32.mrb[51].mxu0  ;;  %v945_v30 = vadd.f32 %v936_v4, %v922_v23  ;;  %1136 = vst.msk [vmem:[#allocation2] sm:$0xff] %vm297_vm5, %v1127_v28  ;;  %v1128_v17 = vadd.f32 %v1119_v7, %v1083_v13  ;;  %v2170_v26 = vpop.f32.mrb[51].mxu1 }
 0x149   : > { %v1124_v2 = vld [vmem:[#allocation2 + $0x30] sm:$0xff] }
 0x14a   : > { %954 = vst.msk [vmem:[#allocation2 + $0x40] sm:$0x7f] %vm306_vm6, %v945_v30 }
 0x14b   : > { %1137 = vst.msk [vmem:[#allocation2 + $0x8] sm:$0xff] %vm297_vm5, %v1128_v17  ;;  %v1125_v11 = vld [vmem:[#allocation2 + $0x38] sm:$0xff] }
 0x14d   : > { %v1270_v31 = vpop.f32.mrb[52].mxu0  ;;  %v1088_v32 = vpop.f32.mrb[52].mxu1 }
 0x14e   : > { %v2191_v34 = vpop.f32.mrb[53].mxu0  ;;  %v1129_v35 = vadd.f32 %v1120_v33, %v1088_v32  ;;  %v2173_v36 = vpop.f32.mrb[53].mxu1 }
 0x14f   : > { %v1273_v38 = vpop.f32.mrb[54].mxu0  ;;  %v1308_v39 = vld [vmem:[#allocation2] sm:$0xff]  ;;  %v1091_v40 = vpop.f32.mrb[54].mxu1 }
 0x150   : > { %v2192_v42 = vpop.f32.mrb[55].mxu0  ;;  %1138 = vst.msk [vmem:[#allocation2 + $0x10] sm:$0xff] %vm297_vm5, %v1129_v35  ;;  %v1317_v43 = vadd.f32 %v1308_v39, %v1270_v31  ;;  %v1130_v44 = vadd.f32 %v1121_v41, %v1091_v40  ;;  %v2174_v45 = vpop.f32.mrb[55].mxu1 }
 0x151   : > { %v1126_v23 = vld [vmem:[#allocation2 + $0x40] sm:$0x7f] }
 0x152   : > { %v1309_v46 = vld [vmem:[#allocation2 + $0x8] sm:$0xff]  ;;  %1326 = vst.msk [vmem:[#allocation2] sm:$0xff] %vm297_vm5, %v1317_v43  ;;  %1139 = vst.msk [vmem:[#allocation2 + $0x18] sm:$0xff] %vm297_vm5, %v1130_v44 }
 0x153   : > { %v1318_v47 = vadd.f32 %v1309_v46, %v1273_v38 }
 0x155   : > { %1327 = vst.msk [vmem:[#allocation2 + $0x8] sm:$0xff] %vm297_vm5, %v1318_v47  ;;  %v1278_v48 = vpop.f32.mrb[56].mxu0  ;;  %v1096_v49 = vpop.f32.mrb[56].mxu1 }
 0x156   : > { %v2195_v51 = vpop.f32.mrb[57].mxu0  ;;  %v1131_v1 = vadd.f32 %v1122_v50, %v1096_v49  ;;  %v2177_v53 = vpop.f32.mrb[57].mxu1 }
 0x157   : > { %v1281_v54 = vpop.f32.mrb[58].mxu0  ;;  %v1310_v55 = vld [vmem:[#allocation2 + $0x10] sm:$0xff]  ;;  %v1099_v56 = vpop.f32.mrb[58].mxu1 }
 0x158   : > { %v2196_v57 = vpop.f32.mrb[59].mxu0  ;;  %1140 = vst.msk [vmem:[#allocation2 + $0x20] sm:$0xff] %vm297_vm5, %v1131_v1  ;;  %v1319_v58 = vadd.f32 %v1310_v55, %v1278_v48  ;;  %v1132_v59 = vadd.f32 %v1123_v37, %v1099_v56  ;;  %v2178_v60 = vpop.f32.mrb[59].mxu1 }
 0x159   : > { %v1311_v61 = vld [vmem:[#allocation2 + $0x18] sm:$0xff]  ;;  %v1498_v31 = vld [vmem:[#allocation2] sm:$0xff] }
 0x15a   : > { %1328 = vst.msk [vmem:[#allocation2 + $0x10] sm:$0xff] %vm297_vm5, %v1319_v58  ;;  %1141 = vst.msk [vmem:[#allocation2 + $0x28] sm:$0xff] %vm297_vm5, %v1132_v59  ;;  %v1320_v62 = vadd.f32 %v1311_v61, %v1281_v54 }
 0x15c   : > { %1329 = vst.msk [vmem:[#allocation2 + $0x18] sm:$0xff] %vm297_vm5, %v1320_v62  ;;  %v1499_v39 = vld [vmem:[#allocation2 + $0x8] sm:$0xff] }
 0x15d   : > { %v1286_v63 = vpop.f32.mrb[60].mxu0  ;;  %v1104_v0 = vpop.f32.mrb[60].mxu1 }
 0x15e   : > { %v2199_v5 = vpop.f32.mrb[61].mxu0  ;;  %v1133_v6 = vadd.f32 %v1124_v2, %v1104_v0  ;;  %v2181_v52 = vpop.f32.mrb[61].mxu1 }
 0x15f   : > { %v1289_v8 = vpop.f32.mrb[62].mxu0  ;;  %v1312_v9 = vld [vmem:[#allocation2 + $0x20] sm:$0xff]  ;;  %v1107_v10 = vpop.f32.mrb[62].mxu1 }
 0x160   : > { %v2200_v12 = vpop.f32.mrb[63].mxu0  ;;  %1142 = vst.msk [vmem:[#allocation2 + $0x30] sm:$0xff] %vm297_vm5, %v1133_v6  ;;  %v1321_v14 = vadd.f32 %v1312_v9, %v1286_v63  ;;  %v1134_v15 = vadd.f32 %v1125_v11, %v1107_v10  ;;  %v2182_v16 = vpop.f32.mrb[63].mxu1  ;;  %v2748_v5 = vld [vmem:[%s2801_s2] ss:$0 sm:$0xff] }
 0x161   : > { %v1313_v18 = vld [vmem:[#allocation2 + $0x28] sm:$0xff]  ;;  %v1500_v46 = vld [vmem:[#allocation2 + $0x10] sm:$0xff] }
 0x162   : > { %1330 = vst.msk [vmem:[#allocation2 + $0x20] sm:$0xff] %vm297_vm5, %v1321_v14  ;;  %1143 = vst.msk [vmem:[#allocation2 + $0x38] sm:$0xff] %vm297_vm5, %v1134_v15  ;;  %v1322_v19 = vadd.f32 %v1313_v18, %v1289_v8 }
 0x163   : > { %v1501_v53 = vld [vmem:[#allocation2 + $0x18] sm:$0xff] }
 0x164   : > { %1331 = vst.msk [vmem:[#allocation2 + $0x28] sm:$0xff] %vm297_vm5, %v1322_v19 }
 0x165   : > { %v1294_v20 = vpop.f32.mrb[64].mxu0  ;;  %v1112_v22 = vpop.f32.mrb[64].mxu1 }
 0x166   : > { %v2203_v24 = vpop.f32.mrb[65].mxu0  ;;  %v1135_v25 = vadd.f32 %v1126_v23, %v1112_v22  ;;  %v2185_v27 = vpop.f32.mrb[65].mxu1 }
 0x167   : > { %v1297_v28 = vpop.f32.mrb[66].mxu0  ;;  %v1314_v29 = vld [vmem:[#allocation2 + $0x30] sm:$0xff]  ;;  %v1115_v3 = vpop.f32.mrb[66].mxu1 }
 0x168   : > { %v2204_v4 = vpop.f32.mrb[67].mxu0  ;;  %1144 = vst.msk [vmem:[#allocation2 + $0x40] sm:$0x7f] %vm306_vm6, %v1135_v25  ;;  %v1323_v13 = vadd.f32 %v1314_v29, %v1294_v20  ;;  %v2186_v7 = vpop.f32.mrb[67].mxu1 }
 0x169   : > { %v1315_v21 = vld [vmem:[#allocation2 + $0x38] sm:$0xff]  ;;  %v1502_v61 = vld [vmem:[#allocation2 + $0x20] sm:$0xff] }
 0x16a   : > { %1332 = vst.msk [vmem:[#allocation2 + $0x30] sm:$0xff] %vm297_vm5, %v1323_v13  ;;  %v1324_v30 = vadd.f32 %v1315_v21, %v1297_v28 }
 0x16b   : > { %v1503_v8 = vld [vmem:[#allocation2 + $0x28] sm:$0xff] }
 0x16c   : > { %1333 = vst.msk [vmem:[#allocation2 + $0x38] sm:$0xff] %vm297_vm5, %v1324_v30 }
 0x16d   : > { %v1302_v17 = vpop.f32.mrb[68].mxu0  ;;  %v1460_v26 = vpop.f32.mrb[68].mxu1 }
 0x16e   : > { %v2207_v32 = vpop.f32.mrb[69].mxu0  ;;  %v1507_v33 = vadd.f32 %v1498_v31, %v1460_v26  ;;  %v2213_v34 = vpop.f32.mrb[69].mxu1 }
 0x16f   : > { %v1305_v35 = vpop.f32.mrb[70].mxu0  ;;  %v1316_v36 = vld [vmem:[#allocation2 + $0x40] sm:$0x7f]  ;;  %v1463_v38 = vpop.f32.mrb[70].mxu1 }
 0x170   : > { %v2208_v40 = vpop.f32.mrb[71].mxu0  ;;  %v1325_v41 = vadd.f32 %v1316_v36, %v1302_v17  ;;  %1516 = vst.msk [vmem:[#allocation2] sm:$0xff] %vm297_vm5, %v1507_v33  ;;  %v1508_v42 = vadd.f32 %v1499_v39, %v1463_v38  ;;  %v2214_v43 = vpop.f32.mrb[71].mxu1 }
 0x171   : > { %v1504_v25 = vld [vmem:[#allocation2 + $0x30] sm:$0xff] }
 0x172   : > { %1334 = vst.msk [vmem:[#allocation2 + $0x40] sm:$0x7f] %vm306_vm6, %v1325_v41 }
 0x173   : > { %1517 = vst.msk [vmem:[#allocation2 + $0x8] sm:$0xff] %vm297_vm5, %v1508_v42  ;;  %v1505_v30 = vld [vmem:[#allocation2 + $0x38] sm:$0xff] }
 0x175   : > { %v1624_v44 = vpop.f32.mrb[72].mxu0  ;;  %v1468_v45 = vpop.f32.mrb[72].mxu1 }
 0x176   : > { %v2235_v47 = vpop.f32.mrb[73].mxu0  ;;  %v1509_v48 = vadd.f32 %v1500_v46, %v1468_v45  ;;  %v2217_v49 = vpop.f32.mrb[73].mxu1 }
 0x177   : > { %v1627_v50 = vpop.f32.mrb[74].mxu0  ;;  %v1662_v51 = vld [vmem:[#allocation2] sm:$0xff]  ;;  %v1471_v1 = vpop.f32.mrb[74].mxu1 }
 0x178   : > { %v2236_v54 = vpop.f32.mrb[75].mxu0  ;;  %1518 = vst.msk [vmem:[#allocation2 + $0x10] sm:$0xff] %vm297_vm5, %v1509_v48  ;;  %v1671_v55 = vadd.f32 %v1662_v51, %v1624_v44  ;;  %v1510_v56 = vadd.f32 %v1501_v53, %v1471_v1  ;;  %v2218_v37 = vpop.f32.mrb[75].mxu1 }
 0x179   : > { %v1506_v44 = vld [vmem:[#allocation2 + $0x40] sm:$0x7f] }
 0x17a   : > { %v1663_v57 = vld [vmem:[#allocation2 + $0x8] sm:$0xff]  ;;  %1680 = vst.msk [vmem:[#allocation2] sm:$0xff] %vm297_vm5, %v1671_v55  ;;  %1519 = vst.msk [vmem:[#allocation2 + $0x18] sm:$0xff] %vm297_vm5, %v1510_v56 }
 0x17b   : > { %v1672_v58 = vadd.f32 %v1663_v57, %v1627_v50 }
 0x17d   : > { %1681 = vst.msk [vmem:[#allocation2 + $0x8] sm:$0xff] %vm297_vm5, %v1672_v58  ;;  %v1632_v59 = vpop.f32.mrb[76].mxu0  ;;  %v1476_v60 = vpop.f32.mrb[76].mxu1 }
 0x17e   : > { %v2239_v62 = vpop.f32.mrb[77].mxu0  ;;  %v1511_v63 = vadd.f32 %v1502_v61, %v1476_v60  ;;  %v2221_v0 = vpop.f32.mrb[77].mxu1 }
 0x17f   : > { %v1635_v2 = vpop.f32.mrb[78].mxu0  ;;  %v1664_v6 = vld [vmem:[#allocation2 + $0x10] sm:$0xff]  ;;  %v1479_v52 = vpop.f32.mrb[78].mxu1 }
 0x180   : > { %v2240_v9 = vpop.f32.mrb[79].mxu0  ;;  %1520 = vst.msk [vmem:[#allocation2 + $0x20] sm:$0xff] %vm297_vm5, %v1511_v63  ;;  %v1673_v10 = vadd.f32 %v1664_v6, %v1632_v59  ;;  %v1512_v11 = vadd.f32 %v1503_v8, %v1479_v52  ;;  %v2222_v12 = vpop.f32.mrb[79].mxu1 }
 0x181   : > { %v1689_v14 = vld [vmem:[#allocation2] sm:$0xff]  ;;  %v1665_v15 = vld [vmem:[#allocation2 + $0x18] sm:$0xff] }
 0x182   : > { %v1705_v16 = vadd.f32 %v2748_v5, %v1689_v14  ;;  %1682 = vst.msk [vmem:[#allocation2 + $0x10] sm:$0xff] %vm297_vm5, %v1673_v10  ;;  %1521 = vst.msk [vmem:[#allocation2 + $0x28] sm:$0xff] %vm297_vm5, %v1512_v11  ;;  %v1674_v18 = vadd.f32 %v1665_v15, %v1635_v2 }
 0x184   : > { %v1690_v19 = vld [vmem:[#allocation2 + $0x8] sm:$0xff]  ;;  %v1714_v20 = vmax.f32 %v1705_v16, 0.0  ;;  %1683 = vst.msk [vmem:[#allocation2 + $0x18] sm:$0xff] %vm297_vm5, %v1674_v18 }
 0x185   : > { %v1706_v22 = vadd.f32 %v2748_v5, %v1690_v19  ;;  %v1640_v23 = vpop.f32.mrb[80].mxu0  ;;  %v1484_v24 = vpop.f32.mrb[80].mxu1 }
 0x186   : > { %v2243_v27 = vpop.f32.mrb[81].mxu0  ;;  %v1992_v28 = vpack.c.bf16 %v1714_v20, %v1714_v20  ;;  %v1513_v3 = vadd.f32 %v1504_v25, %v1484_v24  ;;  %v2225_v4 = vpop.f32.mrb[81].mxu1 }
 0x187   : > { %v1715_v29 = vmax.f32 %v1706_v22, 0.0  ;;  %v1643_v13 = vpop.f32.mrb[82].mxu0  ;;  %v1666_v7 = vld [vmem:[#allocation2 + $0x20] sm:$0xff]  ;;  %v1487_v21 = vpop.f32.mrb[82].mxu1 }
 0x188   : > { %v2244_v17 = vpop.f32.mrb[83].mxu0  ;;  %1761 = vst.msk [vmem:[%s2760_s13] sm:$0xf] %vm1760_vm7, %v1992_v28  ;;  %v1675_v31 = vadd.f32 %v1666_v7, %v1640_v23  ;;  %v1514_v32 = vadd.f32 %v1505_v30, %v1487_v21  ;;  %v2226_v33 = vpop.f32.mrb[83].mxu1  ;;  %v1772_v27 = vld [vmem:[%s2760_s13 + $0x20] sm:$0xf] }
 0x189   : > { %v1993_v26 = vpack.c.bf16 %v1715_v29, %v1715_v29  ;;  %1522 = vst.msk [vmem:[#allocation2 + $0x30] sm:$0xff] %vm297_vm5, %v1513_v3  ;;  %v1691_v34 = vld [vmem:[#allocation2 + $0x10] sm:$0xff]  ;;  %v1667_v35 = vld [vmem:[#allocation2 + $0x28] sm:$0xff] }
 0x18a   : > { %v1707_v36 = vadd.f32 %v2748_v5, %v1691_v34  ;;  %1684 = vst.msk [vmem:[#allocation2 + $0x20] sm:$0xff] %vm297_vm5, %v1675_v31  ;;  %1523 = vst.msk [vmem:[#allocation2 + $0x38] sm:$0xff] %vm297_vm5, %v1514_v32  ;;  %v1676_v38 = vadd.f32 %v1667_v35, %v1643_v13 }
 0x18b   : > { %1762 = vst.msk [vmem:[%s2760_s13 + $0x4] sm:$0xf] %vm1760_vm7, %v1993_v26  ;;  %v1692_v39 = vld [vmem:[#allocation2 + $0x18] sm:$0xff] }
 0x18c   : > { %v1716_v40 = vmax.f32 %v1707_v36, 0.0  ;;  %v1708_v41 = vadd.f32 %v2748_v5, %v1692_v39  ;;  %1685 = vst.msk [vmem:[#allocation2 + $0x28] sm:$0xff] %vm297_vm5, %v1676_v38 }
 0x18d   : > { %v1648_v42 = vpop.f32.mrb[84].mxu0  ;;  %v1492_v43 = vpop.f32.mrb[84].mxu1 }
 0x18e   : > { %v2247_v45 = vpop.f32.mrb[85].mxu0  ;;  %v1994_v46 = vpack.c.bf16 %v1716_v40, %v1716_v40  ;;  %v1717_v47 = vmax.f32 %v1708_v41, 0.0  ;;  %v1515_v48 = vadd.f32 %v1506_v44, %v1492_v43  ;;  %v2229_v49 = vpop.f32.mrb[85].mxu1 }
 0x18f   : > { %v1651_v50 = vpop.f32.mrb[86].mxu0  ;;  %v1495_v1 = vpop.f32.mrb[86].mxu1 }
 0x190   : > { %v1668_v51 = vld [vmem:[#allocation2 + $0x30] sm:$0xff]  ;;  %v2248_v53 = vpop.f32.mrb[87].mxu0  ;;  %1763 = vst.msk [vmem:[%s2760_s13 + $0x8] sm:$0xf] %vm1760_vm7, %v1994_v46  ;;  %v1995_v54 = vpack.c.bf16 %v1717_v47, %v1717_v47  ;;  %v2230_v56 = vpop.f32.mrb[87].mxu1 }
 0x191   : > { %1524 = vst.msk [vmem:[#allocation2 + $0x40] sm:$0x7f] %vm306_vm6, %v1515_v48  ;;  %v1677_v55 = vadd.f32 %v1668_v51, %v1648_v42  ;;  %v1693_v37 = vld [vmem:[#allocation2 + $0x20] sm:$0xff]  ;;  %v1669_v57 = vld [vmem:[#allocation2 + $0x38] sm:$0xff] }
 0x192   : > { %1764 = vst.msk [vmem:[%s2760_s13 + $0xc] sm:$0xf] %vm1760_vm7, %v1995_v54  ;;  %v1709_v58 = vadd.f32 %v2748_v5, %v1693_v37  ;;  %v1678_v59 = vadd.f32 %v1669_v57, %v1651_v50 }
 0x193   : > { %1686 = vst.msk [vmem:[#allocation2 + $0x30] sm:$0xff] %vm297_vm5, %v1677_v55  ;;  %v1694_v60 = vld [vmem:[#allocation2 + $0x28] sm:$0xff] }
 0x194   : > { %v1718_v61 = vmax.f32 %v1709_v58, 0.0  ;;  %v1710_v62 = vadd.f32 %v2748_v5, %v1694_v60  ;;  %1687 = vst.msk [vmem:[#allocation2 + $0x38] sm:$0xff] %vm297_vm5, %v1678_v59 }
 0x195   : > { %v1656_v63 = vpop.f32.mrb[88].mxu0 }
 0x196   : > { %v2251_v0 = vpop.f32.mrb[89].mxu0  ;;  %v1996_v2 = vpack.c.bf16 %v1718_v61, %v1718_v61  ;;  %v1719_v6 = vmax.f32 %v1710_v62, 0.0 }
 0x197   : > { %v1659_v52 = vpop.f32.mrb[90].mxu0 }
 0x198   : > { %v1670_v8 = vld [vmem:[#allocation2 + $0x40] sm:$0x7f]  ;;  %v2252_v9 = vpop.f32.mrb[91].mxu0  ;;  %1765 = vst.msk [vmem:[%s2760_s13 + $0x10] sm:$0xf] %vm1760_vm7, %v1996_v2  ;;  %v1997_v10 = vpack.c.bf16 %v1719_v6, %v1719_v6 }
 0x199   : > { %v1679_v11 = vadd.f32 %v1670_v8, %v1656_v63 }
 0x19a   : > { %v1695_v12 = vld [vmem:[#allocation2 + $0x30] sm:$0xff]  ;;  %1766 = vst.msk [vmem:[%s2760_s13 + $0x14] sm:$0xf] %vm1760_vm7, %v1997_v10 }
 0x19b   : > { %v1711_v14 = vadd.f32 %v2748_v5, %v1695_v12  ;;  %1688 = vst.msk [vmem:[#allocation2 + $0x40] sm:$0x7f] %vm306_vm6, %v1679_v11  ;;  %v1696_v15 = vld [vmem:[#allocation2 + $0x38] sm:$0xff] }
 0x19c   : > { %v1712_v18 = vadd.f32 %v2748_v5, %v1696_v15 }
 0x19d   : > { %v1720_v16 = vmax.f32 %v1711_v14, 0.0 }
 0x19e   : > { %v1721_v20 = vmax.f32 %v1712_v18, 0.0 }
 0x19f   : > { %v1998_v19 = vpack.c.bf16 %v1720_v16, %v1720_v16 }
 0x1a0   : > { %v1999_v22 = vpack.c.bf16 %v1721_v20, %v1721_v20 }
 0x1a1   : > { %1767 = vst.msk [vmem:[%s2760_s13 + $0x18] sm:$0xf] %vm1760_vm7, %v1998_v19 }
 0x1a2   : > { %v1697_v23 = vld [vmem:[#allocation2 + $0x40] sm:$0x7f]  ;;  %1768 = vst.msk [vmem:[%s2760_s13 + $0x1c] sm:$0xf] %vm1760_vm7, %v1999_v22 }
 0x1a3   : > { %v1713_v24 = vadd.f32 %v2748_v5, %v1697_v23 }
 0x1a5   : > { %v1722_v25 = vmax.f32 %v1713_v24, 0.0 }
 0x1a7   : > { %v2000_v28 = vpack.c.bf16 %v1722_v25, %v1722_v25 }
 0x1a9   : > { %v1773_v29 = vsel %vm1771_vm9, %v2000_v28, %v1772_v27 }
 0x1aa   : > { %1774 = vst [vmem:[%s2760_s13 + $0x20] sm:$0xf] %v1773_v29 }
 0x1ab PF: > { %s13_s12 = sadd.s32 1, %s2318_s12  }
 0x1ac   : > { %p10_p4 = scmp.ge.s32.totalorder %s13_s12, 4  }
 0x1ae   :  { %12 = sbr.rel (!%p10_p4) target bundleno = 1 (0x1), region = 73 }

// kernel: dqn_forward.6
= control target key start
LH: loop header
LB: loop body
LE: loop exit
PB: predicated region body
PF: predicated region fallthrough
CT: control target
= control target key end

     0   :  { %s1375_s12 = smov 0   ;;  %s1581_s0 = inlined_call_operand.vmem [shape: bf16[2,4,9,64], index: 0, kind: input, shape index: {}]   ;;  %s1582_s1 = inlined_call_operand.vmem [shape: bf16[9,64,128], index: 1, kind: input, shape index: {}]   ;;  %s1583_s2 = inlined_call_operand.vmem [shape: f32[1,128], index: 2, kind: input, shape index: {}]   ;;  %s1584_s3 = inlined_call_operand.vmem [shape: bf16[2,5,128], index: 3, kind: output, shape index: {}]  }
   0x1 LB: > { %s1010_s13 = sadd.s32 4294967295, %s1351_s12   ;;  %p1014_p0 = scmp.ge.s32.totalorder %s1351_s12, 1  ;;  %s1351_s12 = sphi %s1375_s12, %s13_s12  }
   0x2   : > { %p137_p1 = scmp.lt.s32.totalorder %s1351_s12, 3 }
   0x4   : > { %p138_p2 = pnand %p1014_p0, %p137_p1 }
   0x5   : > { %v1304_v0 = vld [vmem:[%s1582_s1] sm:$0xff] (!%p138_p2)   ;;  %v1353_v1 = vmov (!%p138_p2), 0.0   ;;  %v1305_v2 = vld [vmem:[%s1582_s1 + $0x8] sm:$0xff] (!%p138_p2)   ;;  %vm1354_vm0 = vmmov (!%p138_p2), 0   ;;  %p160_p3 = scmp.lt.s32.totalorder (!%p138_p2), %s1010_s13, 1  ;;  %v1307_v5 = vld [vmem:[%s1582_s1 + $0x10] sm:$0xff] (!%p138_p2)  }
   0x6   : > { %141 = sbr.rel (%p138_p2) target bundleno = 330 (0x14a), region = 32  ;;  %1186 = vmatprep.subr.bf16.mxu0 (!%p138_p2), %v1353_v1  ;;  %1198 = vmatprep.subr.bf16.mxu1 (!%p138_p2), %v1353_v1  ;;  %v1306_v3 = vld [vmem:[%s1582_s1 + $0x20] sm:$0xff] (!%p138_p2)   ;;  %v1308_v4 = vld [vmem:[%s1582_s1 + $0x28] sm:$0xff] (!%p138_p2)   ;;  %v1310_v6 = vld [vmem:[%s1582_s1 + $0x30] sm:$0xff] (!%p138_p2)   ;;  %vm203_vm1 = vcmask (!%p138_p2), 523264   ;;  %vm951_vm2 = vcmask (!%p138_p2), 1042432  }
   0x7   : > { %1187 = vmatpush3.bf16.msra.mxu0 (!%p138_p2), %v1304_v0  ;;  %1194 = vmatprep.mubr.msk.bf16.mxu0 (!%p138_p2), %vm1354_vm0, %v1353_v1  ;;  %v1309_v7 = vld [vmem:[%s1582_s1 + $0x18] sm:$0xff] (!%p138_p2)   ;;  %v1311_v9 = vld [vmem:[%s1582_s1 + $0x40] sm:$0xff] (!%p138_p2)   ;;  %v1313_v13 = vld [vmem:[%s1582_s1 + $0x48] sm:$0xff] (!%p138_p2)   ;;  %vm952_vm3 = vsmask.f32 (!%p138_p2), 2304 }
   0x8   : > { %1188 = vmatprep.subr.bf16.mxu0 (!%p138_p2), %v1353_v1  ;;  %1206 = vmatprep.mubr.msk.bf16.mxu1 (!%p138_p2), %vm1354_vm0, %v1353_v1  ;;  %v1312_v8 = vld [vmem:[%s1582_s1 + $0x38] sm:$0xff] (!%p138_p2)   ;;  %v1315_v12 = vld [vmem:[%s1582_s1 + $0x60] sm:$0xff] (!%p138_p2)   ;;  %v1317_v15 = vld [vmem:[%s1582_s1 + $0x68] sm:$0xff] (!%p138_p2)  }
   0x9   : > { %1199 = vmatpush3.bf16.msra.mxu1 (!%p138_p2), %v1306_v3  ;;  %v1314_v17 = vld [vmem:[%s1582_s1 + $0x50] sm:$0xff] (!%p138_p2)   ;;  %v1316_v21 = vld [vmem:[%s1582_s1 + $0x58] sm:$0xff] (!%p138_p2)   ;;  %v1320_v24 = vld [vmem:[%s1582_s1 + $0x80] sm:$0xff] (!%p138_p2)  }
   0xa   : > { %1200 = vmatprep.subr.bf16.mxu1 (!%p138_p2), %v1353_v1  ;;  %v1319_v18 = vld [vmem:[%s1582_s1 + $0x70] sm:$0xff] (!%p138_p2)   ;;  %v1321_v22 = vld [vmem:[%s1582_s1 + $0x78] sm:$0xff] (!%p138_p2)   ;;  %v1324_v26 = vld [vmem:[%s1582_s1 + $0xa0] sm:$0xff] (!%p138_p2)  }
   0xb   : > { %1189 = vmatpush3.bf16.msra.mxu0 (!%p138_p2), %v1305_v2  ;;  %v1322_v28 = vld [vmem:[%s1582_s1 + $0x88] sm:$0xff] (!%p138_p2)   ;;  %v1323_v30 = vld [vmem:[%s1582_s1 + $0x90] sm:$0xff] (!%p138_p2)   ;;  %v1325_v33 = vld [vmem:[%s1582_s1 + $0x98] sm:$0xff] (!%p138_p2)  }
   0xc   : > { %1190 = vmatprep.subr.bf16.mxu0 (!%p138_p2), %v1353_v1  ;;  %v1326_v29 = vld [vmem:[%s1582_s1 + $0xa8] sm:$0xff] (!%p138_p2)   ;;  %v1327_v32 = vld [vmem:[%s1582_s1 + $0xb0] sm:$0xff] (!%p138_p2)   ;;  %v1329_v36 = vld [vmem:[%s1582_s1 + $0xb8] sm:$0xff] (!%p138_p2)  }
   0xd   : > { %s1586_s13 = smov (!%p160_p3, %s1010_s13), 1  ;;  %1201 = vmatpush3.bf16.msra.mxu1 %v1308_v4  ;;  %v1328_v38 = vld [vmem:[%s1582_s1 + $0xc0] sm:$0xff]   ;;  %v1330_v42 = vld [vmem:[%s1582_s1 + $0xc8] sm:$0xff]   ;;  %v1332_v47 = vld [vmem:[%s1582_s1 + $0xd0] sm:$0xff]  }
   0xe   : > { %s1140_s26 = sshll.u32 %s1586_s13, 5  ;;  %1202 = vmatprep.subr.bf16.mxu1 %v1353_v1  ;;  %v1333_v40 = vld [vmem:[%s1582_s1 + $0xe0] sm:$0xff]   ;;  %v1335_v44 = vld [vmem:[%s1582_s1 + $0xe8] sm:$0xff]   ;;  %v1337_v50 = vld [vmem:[%s1582_s1 + $0xf0] sm:$0xff]  }
   0xf   : > { %1191 = vmatpush3.bf16.msra.mxu0 %v1307_v5  ;;  %s1421_s4 = scalar_lea.vmem %s1581_s0, %s1140_s26  ;;  %v1334_v53 = vld [vmem:[%s1582_s1 + $0xd8] sm:$0xff]   ;;  %v1338_v58 = vld [vmem:[%s1582_s1 + $0x100] sm:$0xff]   ;;  %v1340_v60 = vld [vmem:[%s1582_s1 + $0x108] sm:$0xff]  }
  0x10   : > { %1192 = vmatprep.subr.bf16.mxu0 %v1353_v1  ;;  %v170_v10 = vld [vmem:[%s1421_s4] sm:$0x7]  ;;  %v1023_v11 = vld [vmem:[%s1421_s4 + $0x8] sm:$0x7]  ;;  %v1051_v25 = vld [vmem:[%s1421_s4 + $0x10] sm:$0x7] }
  0x11   : > { %1203 = vmatpush3.bf16.msra.mxu1 %v1310_v6  ;;  %v1318_v14 = vld [vmem:[%s1421_s4] ss:$0 sps:$4 sm:$0x77]   ;;  %v1331_v27 = vld [vmem:[%s1421_s4 + $0x10] ss:$0 sps:$4 sm:$0x77]   ;;  %vm953_vm4 = vmand %vm951_vm2, %vm952_vm3 }
  0x12   : > { %1204 = vmatprep.subr.bf16.mxu1 %v1353_v1  ;;  %v345_v16 = vshll.u32 %v1318_v14, 16  ;;  %v343_v19 = vshrl.u32 %v1318_v14, 16  ;;  %v597_v31 = vshll.u32 %v1331_v27, 16  ;;  %v595_v34 = vshrl.u32 %v1331_v27, 16  ;;  %v1065_v37 = vld [vmem:[%s1421_s4 + $0x18] sm:$0x7] }
  0x13   : > { %1193 = vmatpush3.bf16.msra.mxu0 %v1309_v7  ;;  %v1336_v41 = vld [vmem:[%s1421_s4] ss:$0 sps:$4 sm:$0xee]   ;;  %v1341_v43 = vld [vmem:[%s1421_s4 + $0x8] ss:$0 sps:$4 sm:$0xee]  }
  0x14   : > { %1210 = vmatprep.subr.bf16.mxu0 %v1353_v1  ;;  %v347_v20 = vrot.slane %v345_v16, 1  ;;  %v599_v35 = vrot.slane %v597_v31, 1  ;;  %v685_v45 = vshrl.u32 %v1336_v41, 16  ;;  %v688_v46 = vshll.u32 %v1336_v41, 16  ;;  %v1339_v56 = vld [vmem:[%s1582_s1 + $0xf8] sm:$0xff]   ;;  %v1342_v61 = vld [vmem:[%s1582_s1 + $0x110] sm:$0xff]  }
  0x15   : > { %1205 = vmatpush3.bf16.msra.mxu1 %v1312_v8  ;;  %v776_v48 = vshrl.u32 %v1341_v43, 16  ;;  %v779_v49 = vshll.u32 %v1341_v43, 16  ;;  %v1344_v62 = vld [vmem:[%s1421_s4] sm:$0x1c]   ;;  %v1343_v63 = vld [vmem:[%s1582_s1 + $0x118] sm:$0xff]   ;;  %s1017_s4 = sshll.u32 %s1586_s13, 2 }
  0x16   : > { %1195 = vmatmul.mubr.msk.bf16.vlgmr.msra.gmra.mrb[0].mxu0 %vm203_vm1, %v170_v10  ;;  %1222 = vmatprep.subr.bf16.mxu1 %v1353_v1  ;;  %v348_v23 = vor.u32 %v347_v20, %v343_v19  ;;  %v600_v39 = vor.u32 %v599_v35, %v595_v34  ;;  %v687_v51 = vrot.slane %v685_v45, 1  ;;  %v690_v52 = vrot.slane %v688_v46, 2  ;;  %s168_s21 = scalar_lea.vmem %s1584_s3, %s1017_s4 }
  0x17   : > { %1211 = vmatpush3.bf16.msra.mxu0 %v1311_v9  ;;  %1218 = vmatprep.mubr.msk.bf16.mxu0 %vm1354_vm0, %v1353_v1  ;;  %v778_v54 = vrot.slane %v776_v48, 1  ;;  %v781_v55 = vrot.slane %v779_v49, 2  ;;  %v869_v0 = vrot.slane %v1344_v62, 2 }
  0x18   : > { %1212 = vmatprep.subr.bf16.mxu0 %v1353_v1  ;;  %1207 = vmatmul.mubr.msk.bf16.vlgmr.msra.gmra.mrb[0].mxu1 %vm203_vm1, %v1023_v11  ;;  %v691_v57 = vor.u32 %v690_v52, %v687_v51 }
  0x19   : > { %1223 = vmatpush3.bf16.msra.mxu1 %v1315_v12  ;;  %1230 = vmatprep.mubr.msk.bf16.mxu1 %vm1354_vm0, %v1353_v1  ;;  %v782_v59 = vor.u32 %v781_v55, %v778_v54 }
  0x1a   : > { %1224 = vmatprep.subr.bf16.mxu1 %v1353_v1 }
  0x1b   : > { %1213 = vmatpush3.bf16.msra.mxu0 %v1313_v13 }
  0x1c   : > { %1214 = vmatprep.subr.bf16.mxu0 %v1353_v1 }
  0x1d   : > { %1225 = vmatpush3.bf16.msra.mxu1 %v1317_v15 }
  0x1e   : > { %1226 = vmatprep.subr.bf16.mxu1 %v1353_v1 }
  0x1f   : > { %1215 = vmatpush3.bf16.msra.mxu0 %v1314_v17 }
  0x20   : > { %1216 = vmatprep.subr.bf16.mxu0 %v1353_v1 }
  0x21   : > { %1227 = vmatpush3.bf16.msra.mxu1 %v1319_v18 }
  0x22   : > { %1228 = vmatprep.subr.bf16.mxu1 %v1353_v1 }
  0x23   : > { %1217 = vmatpush3.bf16.msra.mxu0 %v1316_v21 }
  0x24   : > { %1234 = vmatprep.subr.bf16.mxu0 %v1353_v1 }
  0x25   : > { %1229 = vmatpush3.bf16.msra.mxu1 %v1321_v22 }
  0x26   : > { %1219 = vmatmul.mubr.msk.bf16.vlgmr.msra.gmra.mrb[4].mxu0 %vm203_vm1, %v348_v23  ;;  %1246 = vmatprep.subr.bf16.mxu1 %v1353_v1 }
  0x27   : > { %1235 = vmatpush3.bf16.msra.mxu0 %v1320_v24  ;;  %1242 = vmatprep.mubr.msk.bf16.mxu0 %vm1354_vm0, %v1353_v1 }
  0x28   : > { %1236 = vmatprep.subr.bf16.mxu0 %v1353_v1  ;;  %1231 = vmatmul.mubr.msk.bf16.vlgmr.msra.gmra.mrb[4].mxu1 %vm203_vm1, %v1051_v25 }
  0x29   : > { %1247 = vmatpush3.bf16.msra.mxu1 %v1324_v26  ;;  %1254 = vmatprep.mubr.msk.bf16.mxu1 %vm1354_vm0, %v1353_v1 }
  0x2a   : > { %1248 = vmatprep.subr.bf16.mxu1 %v1353_v1 }
  0x2b   : > { %1237 = vmatpush3.bf16.msra.mxu0 %v1322_v28 }
  0x2c   : > { %1238 = vmatprep.subr.bf16.mxu0 %v1353_v1 }
  0x2d   : > { %1249 = vmatpush3.bf16.msra.mxu1 %v1326_v29 }
  0x2e   : > { %1250 = vmatprep.subr.bf16.mxu1 %v1353_v1 }
  0x2f   : > { %1239 = vmatpush3.bf16.msra.mxu0 %v1323_v30 }
  0x30   : > { %1240 = vmatprep.subr.bf16.mxu0 %v1353_v1 }
  0x31   : > { %1251 = vmatpush3.bf16.msra.mxu1 %v1327_v32 }
  0x32   : > { %1252 = vmatprep.subr.bf16.mxu1 %v1353_v1 }
  0x33   : > { %1241 = vmatpush3.bf16.msra.mxu0 %v1325_v33 }
  0x34   : > { %1258 = vmatprep.subr.bf16.mxu0 %v1353_v1 }
  0x35   : > { %1253 = vmatpush3.bf16.msra.mxu1 %v1329_v36 }
  0x36   : > { %1243 = vmatmul.mubr.msk.bf16.vlgmr.msra.gmra.mrb[8].mxu0 %vm203_vm1, %v1065_v37  ;;  %1270 = vmatprep.subr.bf16.mxu1 %v1353_v1 }
  0x37   : > { %1259 = vmatpush3.bf16.msra.mxu0 %v1328_v38  ;;  %1266 = vmatprep.mubr.msk.bf16.mxu0 %vm1354_vm0, %v1353_v1 }
  0x38   : > { %1260 = vmatprep.subr.bf16.mxu0 %v1353_v1  ;;  %1255 = vmatmul.mubr.msk.bf16.vlgmr.msra.gmra.mrb[8].mxu1 %vm203_vm1, %v600_v39 }
  0x39   : > { %1271 = vmatpush3.bf16.msra.mxu1 %v1333_v40  ;;  %1278 = vmatprep.mubr.msk.bf16.mxu1 %vm1354_vm0, %v1353_v1 }
  0x3a   : > { %1272 = vmatprep.subr.bf16.mxu1 %v1353_v1 }
  0x3b   : > { %1261 = vmatpush3.bf16.msra.mxu0 %v1330_v42 }
  0x3c   : > { %1262 = vmatprep.subr.bf16.mxu0 %v1353_v1 }
  0x3d   : > { %1273 = vmatpush3.bf16.msra.mxu1 %v1335_v44 }
  0x3e   : > { %1274 = vmatprep.subr.bf16.mxu1 %v1353_v1 }
  0x3f   : > { %1263 = vmatpush3.bf16.msra.mxu0 %v1332_v47 }
  0x40   : > { %1264 = vmatprep.subr.bf16.mxu0 %v1353_v1 }
  0x41   : > { %1275 = vmatpush3.bf16.msra.mxu1 %v1337_v50 }
  0x42   : > { %1276 = vmatprep.subr.bf16.mxu1 %v1353_v1 }
  0x43   : > { %1265 = vmatpush3.bf16.msra.mxu0 %v1334_v53  ;;  %v1137_v53 = vld [vmem:[%s1583_s2] ss:$0 sm:$0xff] }
  0x44   : > { %1282 = vmatprep.subr.bf16.mxu0 %v1353_v1 }
  0x45   : > { %1277 = vmatpush3.bf16.msra.mxu1 %v1339_v56 }
  0x46   : > { %1267 = vmatmul.mubr.msk.bf16.vlgmr.msra.gmra.mrb[12].mxu0 %vm203_vm1, %v691_v57  ;;  %v954_v57 = vld [vmem:[%s168_s21] sm:$0x7] }
  0x47   : > { %1283 = vmatpush3.bf16.msra.mxu0 %v1338_v58  ;;  %1290 = vmatprep.mubr.msk.bf16.mxu0 %vm1354_vm0, %v1353_v1 }
  0x48   : > { %1284 = vmatprep.subr.bf16.mxu0 %v1353_v1  ;;  %1279 = vmatmul.mubr.msk.bf16.vlgmr.msra.gmra.mrb[12].mxu1 %vm203_vm1, %v782_v59 }
  0x4b   : > { %1285 = vmatpush3.bf16.msra.mxu0 %v1340_v60 }
  0x4c   : > { %1286 = vmatprep.subr.bf16.mxu0 %v1353_v1 }
  0x4f   : > { %1287 = vmatpush3.bf16.msra.mxu0 %v1342_v61 }
  0x50   : > { %1288 = vmatprep.subr.bf16.mxu0 %v1353_v1 }
  0x53   : > { %1289 = vmatpush3.bf16.msra.mxu0 %v1343_v63 }
  0x56   : > { %1291 = vmatmul.mubr.msk.bf16.vlgmr.msra.gmra.mrb[16].mxu0 %vm203_vm1, %v869_v0 }
  0xe9   : > { %v241_v2 = vpop.f32.mrb[0].mxu0 }
  0xea   : > { %247 = vst [vmem:[#allocation2] sm:$0x1f] %v241_v2  ;;  %v1196_v3 = vpop.f32.mrb[1].mxu0 }
  0xeb   : > { %v244_v4 = vpop.f32.mrb[2].mxu0  ;;  %v320_v5 = vpop.f32.mrb[0].mxu1 }
  0xec   : > { %v1197_v6 = vpop.f32.mrb[3].mxu0  ;;  %v1208_v7 = vpop.f32.mrb[1].mxu1 }
  0xed   : > { %v323_v8 = vpop.f32.mrb[2].mxu1 }
  0xee   : > { %v1209_v9 = vpop.f32.mrb[3].mxu1 }
  0xf1   : > { %v326_v10 = vld [vmem:[#allocation2] sm:$0x1f] }
  0xf2   : > { %v327_v11 = vadd.f32 %v326_v10, %v320_v5 }
  0xf4   : > { %328 = vst [vmem:[#allocation2] sm:$0x1f] %v327_v11 }
  0xf9   : > { %v410_v12 = vpop.f32.mrb[4].mxu0 }
  0xfa   : > { %v1220_v13 = vpop.f32.mrb[5].mxu0 }
  0xfb   : > { %v416_v14 = vld [vmem:[#allocation2] sm:$0x1f]  ;;  %v413_v1 = vpop.f32.mrb[6].mxu0  ;;  %v491_v15 = vpop.f32.mrb[4].mxu1 }
  0xfc   : > { %v417_v16 = vadd.f32 %v416_v14, %v410_v12  ;;  %v1221_v17 = vpop.f32.mrb[7].mxu0  ;;  %v1232_v18 = vpop.f32.mrb[5].mxu1 }
  0xfd   : > { %v494_v19 = vpop.f32.mrb[6].mxu1 }
  0xfe   : > { %418 = vst [vmem:[#allocation2] sm:$0x1f] %v417_v16  ;;  %v1233_v20 = vpop.f32.mrb[7].mxu1 }
 0x105   : > { %v497_v21 = vld [vmem:[#allocation2] sm:$0x1f] }
 0x106   : > { %v498_v22 = vadd.f32 %v497_v21, %v491_v15 }
 0x108   : > { %499 = vst [vmem:[#allocation2] sm:$0x1f] %v498_v22 }
 0x109   : > { %v572_v23 = vpop.f32.mrb[8].mxu0 }
 0x10a   : > { %v1244_v24 = vpop.f32.mrb[9].mxu0 }
 0x10b   : > { %v575_v25 = vpop.f32.mrb[10].mxu0  ;;  %v662_v26 = vpop.f32.mrb[8].mxu1 }
 0x10c   : > { %v1245_v27 = vpop.f32.mrb[11].mxu0  ;;  %v1256_v28 = vpop.f32.mrb[9].mxu1 }
 0x10d   : > { %v665_v29 = vpop.f32.mrb[10].mxu1 }
 0x10e   : > { %v1257_v30 = vpop.f32.mrb[11].mxu1 }
 0x10f   : > { %v578_v31 = vld [vmem:[#allocation2] sm:$0x1f] }
 0x110   : > { %v579_v32 = vadd.f32 %v578_v31, %v572_v23 }
 0x112   : > { %580 = vst [vmem:[#allocation2] sm:$0x1f] %v579_v32 }
 0x119   : > { %v668_v33 = vld [vmem:[#allocation2] sm:$0x1f]  ;;  %v753_v34 = vpop.f32.mrb[12].mxu0 }
 0x11a   : > { %v669_v35 = vadd.f32 %v668_v33, %v662_v26  ;;  %v1268_v36 = vpop.f32.mrb[13].mxu0 }
 0x11b   : > { %v756_v37 = vpop.f32.mrb[14].mxu0  ;;  %v844_v38 = vpop.f32.mrb[12].mxu1 }
 0x11c   : > { %670 = vst [vmem:[#allocation2] sm:$0x1f] %v669_v35  ;;  %v1269_v39 = vpop.f32.mrb[15].mxu0  ;;  %v1280_v40 = vpop.f32.mrb[13].mxu1 }
 0x11d   : > { %v847_v41 = vpop.f32.mrb[14].mxu1 }
 0x11e   : > { %v1281_v42 = vpop.f32.mrb[15].mxu1 }
 0x123   : > { %v759_v43 = vld [vmem:[#allocation2] sm:$0x1f] }
 0x124   : > { %v760_v44 = vadd.f32 %v759_v43, %v753_v34 }
 0x126   : > { %761 = vst [vmem:[#allocation2] sm:$0x1f] %v760_v44 }
 0x129   : > { %v931_v45 = vpop.f32.mrb[16].mxu0 }
 0x12a   : > { %v1292_v46 = vpop.f32.mrb[17].mxu0 }
 0x12b   : > { %v934_v47 = vpop.f32.mrb[18].mxu0 }
 0x12c   : > { %v1293_v48 = vpop.f32.mrb[19].mxu0 }
 0x12d   : > { %v850_v49 = vld [vmem:[#allocation2] sm:$0x1f] }
 0x12e   : > { %v851_v50 = vadd.f32 %v850_v49, %v844_v38 }
 0x130   : > { %852 = vst [vmem:[#allocation2] sm:$0x1f] %v851_v50 }
 0x137   : > { %v937_v51 = vld [vmem:[#allocation2] sm:$0x1f] }
 0x138   : > { %v938_v52 = vadd.f32 %v937_v51, %v931_v45 }
 0x13a   : > { %939 = vst [vmem:[#allocation2] sm:$0x1f] %v938_v52 }
 0x141   : > { %v940_v54 = vld [vmem:[#allocation2] sm:$0x1f] }
 0x142   : > { %v948_v55 = vadd.f32 %v1137_v53, %v940_v54 }
 0x144   : > { %v949_v56 = vmax.f32 %v948_v55, 0.0 }
 0x146   : > { %v950_v58 = vpack.c.bf16 %v949_v56, %v949_v56 }
 0x148   : > { %v955_v59 = vsel %vm953_vm4, %v950_v58, %v954_v57 }
 0x149   : > { %956 = vst [vmem:[%s168_s21] sm:$0x7] %v955_v59 }
 0x14a PF: > { %s13_s12 = sadd.s32 1, %s1351_s12  }
 0x14b   : > { %p10_p4 = scmp.ge.s32.totalorder %s13_s12, 4  }
 0x14d   :  { %12 = sbr.rel (!%p10_p4) target bundleno = 1 (0x1), region = 73 }

// kernel: dqn_forward.7
= control target key start
LH: loop header
LB: loop body
LE: loop exit
PB: predicated region body
PF: predicated region fallthrough
CT: control target
= control target key end

     0   :  { %v1905_v38 = vmov 1966171168   ;;  %v169_v40 = vlaneseq  ;;  %s2453_s0 = inlined_call_operand.vmem [shape: bf16[2,512], index: 0, kind: input, shape index: {}]   ;;  %s2454_s1 = inlined_call_operand.vmem [shape: bf16[512,512], index: 1, kind: input, shape index: {}]   ;;  %s2455_s2 = inlined_call_operand.vmem [shape: f32[1,512], index: 2, kind: input, shape index: {}]   ;;  %s2456_s3 = inlined_call_operand.vmem [shape: bf16[512,128], index: 3, kind: input, shape index: {}]   ;;  %s2457_s4 = inlined_call_operand.vmem [shape: f32[1,128], index: 4, kind: input, shape index: {}]   ;;  %s2458_s5 = inlined_call_operand.hbm [shape: f32[2,128], index: 5, kind: output, shape index: {}]  }
   0x1   :  { %v1657_v0 = vld [vmem:[%s2454_s1 + $0x4] ss:$16 sps:$4 sm:$0xff]   ;;  %v1659_v1 = vld [vmem:[%s2454_s1 + $0xc] ss:$16 sps:$4 sm:$0xff]   ;;  %v1661_v2 = vld [vmem:[%s2454_s1] ss:$16 sps:$4 sm:$0xff]   ;;  %v167_v39 = vunpack.c.l.s4 %v1905_v38 }
   0x2   :  { %826 = vmatprep.subr.bf16.mxu0 %v1657_v0  ;;  %v1662_v3 = vld [vmem:[%s2454_s1 + $0x8] ss:$16 sps:$4 sm:$0xff]   ;;  %908 = vmatprep.subr.bf16.mxu1 %v1659_v1  ;;  %v1663_v4 = vld [vmem:[%s2454_s1 + $0x24] ss:$16 sps:$4 sm:$0xff]   ;;  %v1665_v5 = vld [vmem:[%s2454_s1 + $0x2c] ss:$16 sps:$4 sm:$0xff]  }
   0x3   :  { %827 = vmatpush1.bf16.msra.mxu0 %v1661_v2  ;;  %909 = vmatpush1.bf16.msra.mxu1 %v1662_v3  ;;  %v1667_v6 = vld [vmem:[%s2454_s1 + $0x20] ss:$16 sps:$4 sm:$0xff]   ;;  %v1668_v7 = vld [vmem:[%s2454_s1 + $0x28] ss:$16 sps:$4 sm:$0xff]   ;;  %v1669_v8 = vld [vmem:[%s2454_s1 + $0x44] ss:$16 sps:$4 sm:$0xff]   ;;  %v168_v45 = vunpack.c.0.s8 %v167_v39 }
   0x4   :  { %828 = vmatprep.subr.bf16.mxu0 %v1663_v4  ;;  %910 = vmatprep.subr.bf16.mxu1 %v1665_v5  ;;  %v1671_v9 = vld [vmem:[%s2454_s1 + $0x4c] ss:$16 sps:$4 sm:$0xff]   ;;  %v1673_v10 = vld [vmem:[%s2454_s1 + $0x40] ss:$16 sps:$4 sm:$0xff]   ;;  %v1674_v11 = vld [vmem:[%s2454_s1 + $0x48] ss:$16 sps:$4 sm:$0xff]  }
   0x5   :  { %v1675_v12 = vld [vmem:[%s2454_s1 + $0x64] ss:$16 sps:$4 sm:$0xff]   ;;  %v1677_v13 = vld [vmem:[%s2454_s1 + $0x6c] ss:$16 sps:$4 sm:$0xff]   ;;  %v1679_v14 = vld [vmem:[%s2454_s1 + $0x60] ss:$16 sps:$4 sm:$0xff]  }
   0x6   :  { %v1680_v15 = vld [vmem:[%s2454_s1 + $0x68] ss:$16 sps:$4 sm:$0xff]   ;;  %v1681_v16 = vld [vmem:[%s2454_s1 + $0x84] ss:$16 sps:$4 sm:$0xff]   ;;  %v1683_v17 = vld [vmem:[%s2454_s1 + $0x8c] ss:$16 sps:$4 sm:$0xff]  }
   0x7   :  { %829 = vmatpush1.bf16.msra.mxu0 %v1667_v6  ;;  %911 = vmatpush1.bf16.msra.mxu1 %v1668_v7  ;;  %v1685_v18 = vld [vmem:[%s2454_s1 + $0x80] ss:$16 sps:$4 sm:$0xff]   ;;  %v1686_v19 = vld [vmem:[%s2454_s1 + $0x88] ss:$16 sps:$4 sm:$0xff]   ;;  %v1687_v20 = vld [vmem:[%s2454_s1 + $0xa4] ss:$16 sps:$4 sm:$0xff]  }
   0x8   :  { %830 = vmatprep.subr.bf16.mxu0 %v1669_v8  ;;  %912 = vmatprep.subr.bf16.mxu1 %v1671_v9  ;;  %v1689_v21 = vld [vmem:[%s2454_s1 + $0xac] ss:$16 sps:$4 sm:$0xff]   ;;  %v1691_v22 = vld [vmem:[%s2454_s1 + $0xa0] ss:$16 sps:$4 sm:$0xff]   ;;  %v1692_v23 = vld [vmem:[%s2454_s1 + $0xa8] ss:$16 sps:$4 sm:$0xff]  }
   0x9   :  { %v1693_v24 = vld [vmem:[%s2454_s1 + $0xc4] ss:$16 sps:$4 sm:$0xff]   ;;  %v1695_v25 = vld [vmem:[%s2454_s1 + $0xcc] ss:$16 sps:$4 sm:$0xff]   ;;  %v1697_v26 = vld [vmem:[%s2454_s1 + $0xc0] ss:$16 sps:$4 sm:$0xff]  }
   0xa   :  { %v1698_v27 = vld [vmem:[%s2454_s1 + $0xc8] ss:$16 sps:$4 sm:$0xff]   ;;  %v1699_v28 = vld [vmem:[%s2454_s1 + $0xe4] ss:$16 sps:$4 sm:$0xff]   ;;  %v1701_v29 = vld [vmem:[%s2454_s1 + $0xec] ss:$16 sps:$4 sm:$0xff]  }
   0xb   :  { %831 = vmatpush1.bf16.msra.mxu0 %v1673_v10  ;;  %913 = vmatpush1.bf16.msra.mxu1 %v1674_v11  ;;  %v1703_v30 = vld [vmem:[%s2454_s1 + $0xe0] ss:$16 sps:$4 sm:$0xff]   ;;  %v1704_v31 = vld [vmem:[%s2454_s1 + $0xe8] ss:$16 sps:$4 sm:$0xff]   ;;  %v1705_v32 = vld [vmem:[%s2454_s1 + $0x104] ss:$16 sps:$4 sm:$0xff]  }
   0xc   :  { %832 = vmatprep.subr.bf16.mxu0 %v1675_v12  ;;  %914 = vmatprep.subr.bf16.mxu1 %v1677_v13  ;;  %v1707_v33 = vld [vmem:[%s2454_s1 + $0x10c] ss:$16 sps:$4 sm:$0xff]   ;;  %v1709_v34 = vld [vmem:[%s2454_s1 + $0x100] ss:$16 sps:$4 sm:$0xff]   ;;  %v1710_v35 = vld [vmem:[%s2454_s1 + $0x108] ss:$16 sps:$4 sm:$0xff]  }
   0xd   :  { %v1711_v36 = vld [vmem:[%s2454_s1 + $0x124] ss:$16 sps:$4 sm:$0xff]   ;;  %v1713_v37 = vld [vmem:[%s2454_s1 + $0x12c] ss:$16 sps:$4 sm:$0xff]   ;;  %v1715_v41 = vld [vmem:[%s2454_s1 + $0x120] ss:$16 sps:$4 sm:$0xff]  }
   0xe   :  { %v1716_v42 = vld [vmem:[%s2454_s1 + $0x128] ss:$16 sps:$4 sm:$0xff]   ;;  %v1717_v43 = vld [vmem:[%s2454_s1 + $0x144] ss:$16 sps:$4 sm:$0xff]   ;;  %v1719_v44 = vld [vmem:[%s2454_s1 + $0x14c] ss:$16 sps:$4 sm:$0xff]  }
   0xf   :  { %833 = vmatpush1.bf16.msra.mxu0 %v1679_v14  ;;  %915 = vmatpush1.bf16.msra.mxu1 %v1680_v15  ;;  %v2064_v46 = vshrl.u32 %v169_v40, 7  ;;  %v1721_v47 = vld [vmem:[%s2454_s1 + $0x140] ss:$16 sps:$4 sm:$0xff]   ;;  %v1722_v48 = vld [vmem:[%s2454_s1 + $0x148] ss:$16 sps:$4 sm:$0xff]  }
  0x10   :  { %834 = vmatprep.subr.bf16.mxu0 %v1681_v16  ;;  %916 = vmatprep.subr.bf16.mxu1 %v1683_v17  ;;  %v1723_v49 = vld [vmem:[%s2454_s1 + $0x164] ss:$16 sps:$4 sm:$0xff]   ;;  %v1725_v50 = vld [vmem:[%s2454_s1 + $0x16c] ss:$16 sps:$4 sm:$0xff]   ;;  %v1727_v53 = vld [vmem:[%s2454_s1 + $0x160] ss:$16 sps:$4 sm:$0xff]  }
  0x11   :  { %v171_v51 = vsub.s32 %v168_v45, %v2064_v46  ;;  %v1440_v52 = vld.sshfl [vmem:[%s2453_s0] sm:$0x33 pattern:$0x75316420]  ;;  %v1728_v54 = vld [vmem:[%s2454_s1 + $0x168] ss:$16 sps:$4 sm:$0xff]  }
  0x12   :  { %v165_v55 = vcombine.high %v1440_v52, %v1440_v52  ;;  %v1729_v56 = vld [vmem:[%s2454_s1 + $0x184] ss:$16 sps:$4 sm:$0xff]   ;;  %v1731_v57 = vld [vmem:[%s2454_s1 + $0x18c] ss:$16 sps:$4 sm:$0xff]   ;;  %v1733_v59 = vld [vmem:[%s2454_s1 + $0x180] ss:$16 sps:$4 sm:$0xff]  }
  0x13   :  { %835 = vmatpush1.bf16.msra.mxu0 %v1685_v18  ;;  %917 = vmatpush1.bf16.msra.mxu1 %v1686_v19  ;;  %v1734_v60 = vld [vmem:[%s2454_s1 + $0x188] ss:$16 sps:$4 sm:$0xff]   ;;  %v1735_v61 = vld [vmem:[%s2454_s1 + $0x1a4] ss:$16 sps:$4 sm:$0xff]   ;;  %v1737_v62 = vld [vmem:[%s2454_s1 + $0x1ac] ss:$16 sps:$4 sm:$0xff]   ;;  %v2145_v12 = vrot.slane %v1440_v52, %v171_v51 }
  0x14   :  { %836 = vmatprep.subr.bf16.mxu0 %v1687_v20  ;;  %918 = vmatprep.subr.bf16.mxu1 %v1689_v21  ;;  %v179_v58 = vrot.slane %v165_v55, %v171_v51  ;;  %v1739_v63 = vld [vmem:[%s2454_s1 + $0x1a0] ss:$16 sps:$4 sm:$0xff]   ;;  %v1740_v0 = vld [vmem:[%s2454_s1 + $0x1a8] ss:$16 sps:$4 sm:$0xff]   ;;  %v1741_v1 = vld [vmem:[%s2454_s1 + $0x1c4] ss:$16 sps:$4 sm:$0xff]  }
  0x15   :  { %v1743_v2 = vld [vmem:[%s2454_s1 + $0x1cc] ss:$16 sps:$4 sm:$0xff]   ;;  %v1745_v3 = vld [vmem:[%s2454_s1 + $0x1c0] ss:$16 sps:$4 sm:$0xff]   ;;  %v1746_v4 = vld [vmem:[%s2454_s1 + $0x1c8] ss:$16 sps:$4 sm:$0xff]  }
  0x16   :  { %858 = vmatprep.mubr.bf16.mxu0 %v179_v58  ;;  %940 = vmatprep.mubr.bf16.mxu1 %v179_v58  ;;  %v1747_v5 = vld [vmem:[%s2454_s1 + $0x1e4] ss:$16 sps:$4 sm:$0xff]   ;;  %v1749_v6 = vld [vmem:[%s2454_s1 + $0x1ec] ss:$16 sps:$4 sm:$0xff]   ;;  %v1751_v7 = vld [vmem:[%s2454_s1 + $0x1e0] ss:$16 sps:$4 sm:$0xff]   ;;  %v181_v16 = vcombine.high %v179_v58, %v179_v58 }
  0x17   :  { %837 = vmatpush1.bf16.msra.mxu0 %v1691_v22  ;;  %919 = vmatpush1.bf16.msra.mxu1 %v1692_v23  ;;  %v1752_v8 = vld [vmem:[%s2454_s1 + $0x1e8] ss:$16 sps:$4 sm:$0xff]   ;;  %v1755_v9 = vld [vmem:[%s2454_s1 + $0x204] ss:$16 sps:$4 sm:$0xff]   ;;  %v1758_v10 = vld [vmem:[%s2454_s1 + $0x20c] ss:$16 sps:$4 sm:$0xff]  }
  0x18   :  { %838 = vmatprep.subr.bf16.mxu0 %v1693_v24  ;;  %920 = vmatprep.subr.bf16.mxu1 %v1695_v25  ;;  %v1753_v11 = vld [vmem:[%s2454_s1 + $0x200] ss:$16 sps:$4 sm:$0xff]   ;;  %v1756_v13 = vld [vmem:[%s2454_s1 + $0x208] ss:$16 sps:$4 sm:$0xff]   ;;  %v1761_v14 = vld [vmem:[%s2454_s1 + $0x224] ss:$16 sps:$4 sm:$0xff]  }
  0x19   :  { %v1764_v15 = vld [vmem:[%s2454_s1 + $0x22c] ss:$16 sps:$4 sm:$0xff]   ;;  %v1759_v17 = vld [vmem:[%s2454_s1 + $0x220] ss:$16 sps:$4 sm:$0xff]   ;;  %v1762_v18 = vld [vmem:[%s2454_s1 + $0x228] ss:$16 sps:$4 sm:$0xff]  }
  0x1a   :  { %v1767_v19 = vld [vmem:[%s2454_s1 + $0x244] ss:$16 sps:$4 sm:$0xff]   ;;  %v1770_v20 = vld [vmem:[%s2454_s1 + $0x24c] ss:$16 sps:$4 sm:$0xff]   ;;  %v1765_v21 = vld [vmem:[%s2454_s1 + $0x240] ss:$16 sps:$4 sm:$0xff]  }
  0x1b   :  { %839 = vmatpush1.bf16.msra.mxu0 %v1697_v26  ;;  %921 = vmatpush1.bf16.msra.mxu1 %v1698_v27  ;;  %v1768_v22 = vld [vmem:[%s2454_s1 + $0x248] ss:$16 sps:$4 sm:$0xff]   ;;  %v1773_v23 = vld [vmem:[%s2454_s1 + $0x264] ss:$16 sps:$4 sm:$0xff]   ;;  %v1776_v24 = vld [vmem:[%s2454_s1 + $0x26c] ss:$16 sps:$4 sm:$0xff]  }
  0x1c   :  { %840 = vmatprep.subr.bf16.mxu0 %v1699_v28  ;;  %922 = vmatprep.subr.bf16.mxu1 %v1701_v29  ;;  %v1771_v25 = vld [vmem:[%s2454_s1 + $0x260] ss:$16 sps:$4 sm:$0xff]   ;;  %v1774_v26 = vld [vmem:[%s2454_s1 + $0x268] ss:$16 sps:$4 sm:$0xff]   ;;  %v1779_v27 = vld [vmem:[%s2454_s1 + $0x284] ss:$16 sps:$4 sm:$0xff]  }
  0x1d   :  { %v1782_v28 = vld [vmem:[%s2454_s1 + $0x28c] ss:$16 sps:$4 sm:$0xff]   ;;  %v1777_v29 = vld [vmem:[%s2454_s1 + $0x280] ss:$16 sps:$4 sm:$0xff]   ;;  %v1792_v38 = vld [vmem:[%s2454_s1 + $0x2c8] ss:$16 sps:$4 sm:$0xff]  }
  0x1e   :  { %v1797_v39 = vld [vmem:[%s2454_s1 + $0x2e4] ss:$16 sps:$4 sm:$0xff]   ;;  %v1800_v40 = vld [vmem:[%s2454_s1 + $0x2ec] ss:$16 sps:$4 sm:$0xff]   ;;  %v1801_v45 = vld [vmem:[%s2454_s1 + $0x300] ss:$16 sps:$4 sm:$0xff]  }
  0x1f   :  { %841 = vmatpush1.bf16.msra.mxu0 %v1703_v30  ;;  %923 = vmatpush1.bf16.msra.mxu1 %v1704_v31  ;;  %v1780_v30 = vld [vmem:[%s2454_s1 + $0x288] ss:$16 sps:$4 sm:$0xff]   ;;  %v1785_v31 = vld [vmem:[%s2454_s1 + $0x2a4] ss:$16 sps:$4 sm:$0xff]   ;;  %v1819_v58 = vld [vmem:[%s2454_s1 + $0x360] ss:$16 sps:$4 sm:$0xff]  }
  0x20   :  { %842 = vmatprep.subr.bf16.mxu0 %v1705_v32  ;;  %924 = vmatprep.subr.bf16.mxu1 %v1707_v33  ;;  %v1788_v32 = vld [vmem:[%s2454_s1 + $0x2ac] ss:$16 sps:$4 sm:$0xff]   ;;  %v1783_v33 = vld [vmem:[%s2454_s1 + $0x2a0] ss:$16 sps:$4 sm:$0xff]   ;;  %v1810_v51 = vld [vmem:[%s2454_s1 + $0x328] ss:$16 sps:$4 sm:$0xff]  }
  0x21   :  { %v1815_v52 = vld [vmem:[%s2454_s1 + $0x344] ss:$16 sps:$4 sm:$0xff]   ;;  %v1816_v55 = vld [vmem:[%s2454_s1 + $0x348] ss:$16 sps:$4 sm:$0xff]  }
  0x23   :  { %843 = vmatpush1.bf16.msra.mxu0 %v1709_v34  ;;  %925 = vmatpush1.bf16.msra.mxu1 %v1710_v35  ;;  %v1786_v34 = vld [vmem:[%s2454_s1 + $0x2a8] ss:$16 sps:$4 sm:$0xff]   ;;  %v1791_v35 = vld [vmem:[%s2454_s1 + $0x2c4] ss:$16 sps:$4 sm:$0xff]  }
  0x24   :  { %844 = vmatprep.subr.bf16.mxu0 %v1711_v36  ;;  %926 = vmatprep.subr.bf16.mxu1 %v1713_v37  ;;  %v1794_v36 = vld [vmem:[%s2454_s1 + $0x2cc] ss:$16 sps:$4 sm:$0xff]   ;;  %v1789_v37 = vld [vmem:[%s2454_s1 + $0x2c0] ss:$16 sps:$4 sm:$0xff]  }
  0x27   :  { %845 = vmatpush1.bf16.msra.mxu0 %v1715_v41  ;;  %927 = vmatpush1.bf16.msra.mxu1 %v1716_v42  ;;  %v1795_v41 = vld [vmem:[%s2454_s1 + $0x2e0] ss:$16 sps:$4 sm:$0xff]   ;;  %v1798_v42 = vld [vmem:[%s2454_s1 + $0x2e8] ss:$16 sps:$4 sm:$0xff]  }
  0x28   :  { %846 = vmatprep.subr.bf16.mxu0 %v1717_v43  ;;  %928 = vmatprep.subr.bf16.mxu1 %v1719_v44  ;;  %v1803_v43 = vld [vmem:[%s2454_s1 + $0x304] ss:$16 sps:$4 sm:$0xff]   ;;  %v1806_v44 = vld [vmem:[%s2454_s1 + $0x30c] ss:$16 sps:$4 sm:$0xff]  }
  0x2b   :  { %847 = vmatpush1.bf16.msra.mxu0 %v1721_v47  ;;  %929 = vmatpush1.bf16.msra.mxu1 %v1722_v48  ;;  %v1804_v47 = vld [vmem:[%s2454_s1 + $0x308] ss:$16 sps:$4 sm:$0xff]   ;;  %v1809_v48 = vld [vmem:[%s2454_s1 + $0x324] ss:$16 sps:$4 sm:$0xff]  }
  0x2c   :  { %848 = vmatprep.subr.bf16.mxu0 %v1723_v49  ;;  %930 = vmatprep.subr.bf16.mxu1 %v1725_v50  ;;  %v1812_v49 = vld [vmem:[%s2454_s1 + $0x32c] ss:$16 sps:$4 sm:$0xff]   ;;  %v1807_v50 = vld [vmem:[%s2454_s1 + $0x320] ss:$16 sps:$4 sm:$0xff]  }
  0x2f   :  { %849 = vmatpush1.bf16.msra.mxu0 %v1727_v53  ;;  %931 = vmatpush1.bf16.msra.mxu1 %v1728_v54  ;;  %v1818_v53 = vld [vmem:[%s2454_s1 + $0x34c] ss:$16 sps:$4 sm:$0xff]   ;;  %v1813_v54 = vld [vmem:[%s2454_s1 + $0x340] ss:$16 sps:$4 sm:$0xff]  }
  0x30   :  { %850 = vmatprep.subr.bf16.mxu0 %v1729_v56  ;;  %932 = vmatprep.subr.bf16.mxu1 %v1731_v57  ;;  %v1821_v56 = vld [vmem:[%s2454_s1 + $0x364] ss:$16 sps:$4 sm:$0xff]   ;;  %v1824_v57 = vld [vmem:[%s2454_s1 + $0x36c] ss:$16 sps:$4 sm:$0xff]  }
  0x33   :  { %851 = vmatpush1.bf16.msra.mxu0 %v1733_v59  ;;  %933 = vmatpush1.bf16.msra.mxu1 %v1734_v60  ;;  %v1822_v59 = vld [vmem:[%s2454_s1 + $0x368] ss:$16 sps:$4 sm:$0xff]   ;;  %v1827_v60 = vld [vmem:[%s2454_s1 + $0x384] ss:$16 sps:$4 sm:$0xff]  }
  0x34   :  { %852 = vmatprep.subr.bf16.mxu0 %v1735_v61  ;;  %934 = vmatprep.subr.bf16.mxu1 %v1737_v62  ;;  %v1830_v61 = vld [vmem:[%s2454_s1 + $0x38c] ss:$16 sps:$4 sm:$0xff]  }
  0x37   :  { %853 = vmatpush1.bf16.msra.mxu0 %v1739_v63  ;;  %935 = vmatpush1.bf16.msra.mxu1 %v1740_v0 }
  0x38   :  { %854 = vmatprep.subr.bf16.mxu0 %v1741_v1  ;;  %936 = vmatprep.subr.bf16.mxu1 %v1743_v2 }
  0x3b   :  { %855 = vmatpush1.bf16.msra.mxu0 %v1745_v3  ;;  %937 = vmatpush1.bf16.msra.mxu1 %v1746_v4 }
  0x3c   :  { %856 = vmatprep.subr.bf16.mxu0 %v1747_v5  ;;  %938 = vmatprep.subr.bf16.mxu1 %v1749_v6 }
  0x3f   :  { %857 = vmatpush1.bf16.msra.mxu0 %v1751_v7  ;;  %939 = vmatpush1.bf16.msra.mxu1 %v1752_v8 }
  0x40   :  { %867 = vmatprep.subr.bf16.mxu0 %v1755_v9  ;;  %949 = vmatprep.subr.bf16.mxu1 %v1758_v10 }
  0x42   :  { %859 = vmatmul.mubr.bf16.vlgmr.msra.gmra.mrb[0].mxu0 %v2145_v12  ;;  %941 = vmatmul.mubr.bf16.vlgmr.msra.gmra.mrb[0].mxu1 %v2145_v12 }
  0x43   :  { %868 = vmatpush1.bf16.msra.mxu0 %v1753_v11  ;;  %950 = vmatpush1.bf16.msra.mxu1 %v1756_v13 }
  0x44   :  { %869 = vmatprep.subr.bf16.mxu0 %v1761_v14  ;;  %951 = vmatprep.subr.bf16.mxu1 %v1764_v15 }
  0x45   :  { %899 = vmatprep.mubr.bf16.mxu0 %v181_v16  ;;  %981 = vmatprep.mubr.bf16.mxu1 %v181_v16 }
  0x47   :  { %870 = vmatpush1.bf16.msra.mxu0 %v1759_v17  ;;  %952 = vmatpush1.bf16.msra.mxu1 %v1762_v18 }
  0x48   :  { %871 = vmatprep.subr.bf16.mxu0 %v1767_v19  ;;  %953 = vmatprep.subr.bf16.mxu1 %v1770_v20 }
  0x4b   :  { %872 = vmatpush1.bf16.msra.mxu0 %v1765_v21  ;;  %954 = vmatpush1.bf16.msra.mxu1 %v1768_v22 }
  0x4c   :  { %873 = vmatprep.subr.bf16.mxu0 %v1773_v23  ;;  %955 = vmatprep.subr.bf16.mxu1 %v1776_v24 }
  0x4f   :  { %874 = vmatpush1.bf16.msra.mxu0 %v1771_v25  ;;  %956 = vmatpush1.bf16.msra.mxu1 %v1774_v26 }
  0x50   :  { %875 = vmatprep.subr.bf16.mxu0 %v1779_v27  ;;  %957 = vmatprep.subr.bf16.mxu1 %v1782_v28 }
  0x53   :  { %876 = vmatpush1.bf16.msra.mxu0 %v1777_v29  ;;  %958 = vmatpush1.bf16.msra.mxu1 %v1780_v30 }
  0x54   :  { %877 = vmatprep.subr.bf16.mxu0 %v1785_v31  ;;  %959 = vmatprep.subr.bf16.mxu1 %v1788_v32 }
  0x57   :  { %878 = vmatpush1.bf16.msra.mxu0 %v1783_v33  ;;  %960 = vmatpush1.bf16.msra.mxu1 %v1786_v34 }
  0x58   :  { %879 = vmatprep.subr.bf16.mxu0 %v1791_v35  ;;  %961 = vmatprep.subr.bf16.mxu1 %v1794_v36 }
  0x5b   :  { %880 = vmatpush1.bf16.msra.mxu0 %v1789_v37  ;;  %962 = vmatpush1.bf16.msra.mxu1 %v1792_v38 }
  0x5c   :  { %881 = vmatprep.subr.bf16.mxu0 %v1797_v39  ;;  %963 = vmatprep.subr.bf16.mxu1 %v1800_v40 }
  0x5f   :  { %882 = vmatpush1.bf16.msra.mxu0 %v1795_v41  ;;  %964 = vmatpush1.bf16.msra.mxu1 %v1798_v42 }
  0x60   :  { %883 = vmatprep.subr.bf16.mxu0 %v1803_v43  ;;  %965 = vmatprep.subr.bf16.mxu1 %v1806_v44 }
  0x63   :  { %884 = vmatpush1.bf16.msra.mxu0 %v1801_v45  ;;  %966 = vmatpush1.bf16.msra.mxu1 %v1804_v47 }
  0x64   :  { %885 = vmatprep.subr.bf16.mxu0 %v1809_v48  ;;  %967 = vmatprep.subr.bf16.mxu1 %v1812_v49 }
  0x67   :  { %886 = vmatpush1.bf16.msra.mxu0 %v1807_v50  ;;  %968 = vmatpush1.bf16.msra.mxu1 %v1810_v51 }
  0x68   :  { %887 = vmatprep.subr.bf16.mxu0 %v1815_v52  ;;  %969 = vmatprep.subr.bf16.mxu1 %v1818_v53 }
  0x6b   :  { %888 = vmatpush1.bf16.msra.mxu0 %v1813_v54  ;;  %970 = vmatpush1.bf16.msra.mxu1 %v1816_v55 }
  0x6c   :  { %889 = vmatprep.subr.bf16.mxu0 %v1821_v56  ;;  %971 = vmatprep.subr.bf16.mxu1 %v1824_v57 }
  0x6d   :  { %10 = vsyncpa [#allocation4], 0  ;;  %v1825_v62 = vld [vmem:[%s2454_s1 + $0x380] ss:$16 sps:$4 sm:$0xff]   ;;  %v1828_v63 = vld [vmem:[%s2454_s1 + $0x388] ss:$16 sps:$4 sm:$0xff]   ;;  %v180_v15 = vcombine.high %v2145_v12, %v2145_v12 }
  0x6e   :  { %v1833_v0 = vld [vmem:[%s2454_s1 + $0x3a4] ss:$16 sps:$4 sm:$0xff]   ;;  %v1836_v1 = vld [vmem:[%s2454_s1 + $0x3ac] ss:$16 sps:$4 sm:$0xff]   ;;  %v1831_v2 = vld [vmem:[%s2454_s1 + $0x3a0] ss:$16 sps:$4 sm:$0xff]  }
  0x6f   :  { %890 = vmatpush1.bf16.msra.mxu0 %v1819_v58  ;;  %972 = vmatpush1.bf16.msra.mxu1 %v1822_v59  ;;  %v1834_v3 = vld [vmem:[%s2454_s1 + $0x3a8] ss:$16 sps:$4 sm:$0xff]   ;;  %v1839_v4 = vld [vmem:[%s2454_s1 + $0x3c4] ss:$16 sps:$4 sm:$0xff]   ;;  %v1842_v5 = vld [vmem:[%s2454_s1 + $0x3cc] ss:$16 sps:$4 sm:$0xff]  }
  0x70   :  { %891 = vmatprep.subr.bf16.mxu0 %v1827_v60  ;;  %973 = vmatprep.subr.bf16.mxu1 %v1830_v61  ;;  %v1837_v6 = vld [vmem:[%s2454_s1 + $0x3c0] ss:$16 sps:$4 sm:$0xff]   ;;  %v1840_v7 = vld [vmem:[%s2454_s1 + $0x3c8] ss:$16 sps:$4 sm:$0xff]   ;;  %v1845_v8 = vld [vmem:[%s2454_s1 + $0x3e4] ss:$16 sps:$4 sm:$0xff]  }
  0x71   :  { %v1848_v9 = vld [vmem:[%s2454_s1 + $0x3ec] ss:$16 sps:$4 sm:$0xff]   ;;  %v1843_v10 = vld [vmem:[%s2454_s1 + $0x3e0] ss:$16 sps:$4 sm:$0xff]   ;;  %v1846_v11 = vld [vmem:[%s2454_s1 + $0x3e8] ss:$16 sps:$4 sm:$0xff]  }
  0x72   :  { %v1849_v13 = vld [vmem:[%s2456_s3 + $0x40] sm:$0xff]   ;;  %v1853_v18 = vld [vmem:[%s2456_s3 + $0x48] sm:$0xff]   ;;  %v1857_v21 = vld [vmem:[%s2456_s3 + $0x50] sm:$0xff]   ;;  %v1906_v45 = vmov 1983009808   ;;  %v1022_v48 = vsub.s32 0, %v2064_v46 }
  0x73   :  { %892 = vmatpush1.bf16.msra.mxu0 %v1825_v62  ;;  %974 = vmatpush1.bf16.msra.mxu1 %v1828_v63  ;;  %v1851_v14 = vld [vmem:[%s2456_s3 + $0xc0] sm:$0xff]   ;;  %v1855_v12 = vld [vmem:[%s2456_s3 + $0xc8] sm:$0xff]   ;;  %v1859_v22 = vld [vmem:[%s2456_s3 + $0xd0] sm:$0xff]   ;;  %v997_v47 = vunpack.c.l.s4 %v1906_v45  ;;  %v1026_v49 = vsub.s32 1, %v2064_v46  ;;  %v1030_v50 = vsub.s32 2, %v2064_v46  ;;  %v1034_v51 = vsub.s32 3, %v2064_v46 }
  0x74   :  { %893 = vmatprep.subr.bf16.mxu0 %v1833_v0  ;;  %975 = vmatprep.subr.bf16.mxu1 %v1836_v1  ;;  %v1850_v16 = vld [vmem:[%s2456_s3] sm:$0xff]   ;;  %v1854_v19 = vld [vmem:[%s2456_s3 + $0x8] sm:$0xff]   ;;  %v1858_v23 = vld [vmem:[%s2456_s3 + $0x10] sm:$0xff]   ;;  %s1907_s30 = smov [#allocation3]  }
  0x75   :  { %v1852_v17 = vld [vmem:[%s2456_s3 + $0x80] sm:$0xff]   ;;  %v1856_v20 = vld [vmem:[%s2456_s3 + $0x88] sm:$0xff]   ;;  %v1860_v24 = vld [vmem:[%s2456_s3 + $0x90] sm:$0xff]   ;;  %v998_v53 = vunpack.c.0.s8 %v997_v47  ;;  %s1432_s6 = sshll.u32 %s1907_s30, 4  ;;  %s1433_s6 = int_to_ptr.vmem [resolvable:$true] %s1432_s6 }
  0x76   :  { %v1861_v25 = vld [vmem:[%s2456_s3 + $0x58] sm:$0xff]   ;;  %v1865_v29 = vld [vmem:[%s2456_s3 + $0x60] sm:$0xff]   ;;  %v1869_v33 = vld [vmem:[%s2456_s3 + $0x68] sm:$0xff]   ;;  %s1881_s7 = scalar_lea.vmem %s1433_s6, 32  ;;  %p1886_p1 = scmp.lt.s32.totalorder %s1433_s6, %s1433_s6 }
  0x77   :  { %894 = vmatpush1.bf16.msra.mxu0 %v1831_v2  ;;  %976 = vmatpush1.bf16.msra.mxu1 %v1834_v3  ;;  %v1862_v26 = vld [vmem:[%s2456_s3 + $0x18] sm:$0xff]   ;;  %v1866_v30 = vld [vmem:[%s2456_s3 + $0x20] sm:$0xff]   ;;  %v1870_v34 = vld [vmem:[%s2456_s3 + $0x28] sm:$0xff]   ;;  %v1001_v58 = vsub.s32 %v998_v53, %v2064_v46  ;;  %p1882_p0 = scmp.ne.s32.totalorder %s1433_s6, %s1881_s7  ;;  %p1887_p2 = scmp.lt.s32.totalorder %s1881_s7, %s1881_s7 }
  0x78   :  { %895 = vmatprep.subr.bf16.mxu0 %v1839_v4  ;;  %977 = vmatprep.subr.bf16.mxu1 %v1842_v5  ;;  %v1863_v27 = vld [vmem:[%s2456_s3 + $0xd8] sm:$0xff]   ;;  %v1867_v31 = vld [vmem:[%s2456_s3 + $0xe0] sm:$0xff]   ;;  %v1871_v35 = vld [vmem:[%s2456_s3 + $0xe8] sm:$0xff]  }
  0x79   :  { %v1864_v28 = vld [vmem:[%s2456_s3 + $0x98] sm:$0xff]   ;;  %v1868_v32 = vld [vmem:[%s2456_s3 + $0xa0] sm:$0xff]   ;;  %v1872_v36 = vld [vmem:[%s2456_s3 + $0xa8] sm:$0xff]   ;;  %p1888_p3 = por %p1887_p2, %p1886_p1 }
  0x7a   :  { %v1873_v37 = vld [vmem:[%s2456_s3 + $0x70] sm:$0xff]   ;;  %v1877_v41 = vld [vmem:[%s2456_s3 + $0x78] sm:$0xff]   ;;  %v1018_v52 = vld [vmem:[%s2455_s2] sm:$0xf] }
  0x7b   :  { %896 = vmatpush1.bf16.msra.mxu0 %v1837_v6  ;;  %978 = vmatpush1.bf16.msra.mxu1 %v1840_v7  ;;  %v1874_v38 = vld [vmem:[%s2456_s3 + $0x30] sm:$0xff]   ;;  %v1879_v42 = vld [vmem:[%s2456_s3 + $0xf8] sm:$0xff]   ;;  %v1023_v54 = vrot.slane %v1018_v52, %v1022_v48  ;;  %v1027_v55 = vrot.slane %v1018_v52, %v1026_v49  ;;  %v1031_v56 = vrot.slane %v1018_v52, %v1030_v50  ;;  %p1889_p4 = pnand %p1888_p3, %p1882_p0 }
  0x7c   :  { %897 = vmatprep.subr.bf16.mxu0 %v1845_v8  ;;  %979 = vmatprep.subr.bf16.mxu1 %v1848_v9  ;;  %v1875_v39 = vld [vmem:[%s2456_s3 + $0xf0] sm:$0xff]   ;;  %v1878_v43 = vld [vmem:[%s2456_s3 + $0x38] sm:$0xff]   ;;  %v1035_v57 = vrot.slane %v1018_v52, %v1034_v51 }
  0x7d   :  { %v1876_v40 = vld [vmem:[%s2456_s3 + $0xb0] sm:$0xff]   ;;  %v1880_v44 = vld [vmem:[%s2456_s3 + $0xb8] sm:$0xff]   ;;  %v1036_v59 = vcombine.low %v1023_v54, %v1027_v55 }
  0x7e   :  { %v1037_v60 = vcombine.low %v1031_v56, %v1035_v57 }
  0x7f   :  { %898 = vmatpush1.bf16.msra.mxu0 %v1843_v10  ;;  %980 = vmatpush1.bf16.msra.mxu1 %v1846_v11  ;;  %v1044_v63 = vrot.slane %v1036_v59, %v1001_v58 }
  0x80   :  { %1602 = vmatprep.subr.bf16.mxu0 %v1849_v13  ;;  %1624 = vmatprep.subr.bf16.mxu1 %v1851_v14  ;;  %v1051_v0 = vrot.slane %v1037_v60, %v1001_v58 }
  0x82   :  { %900 = vmatmul.mubr.bf16.vlgmr.msra.gmra.mrb[0].mxu0 %v180_v15  ;;  %982 = vmatmul.mubr.bf16.vlgmr.msra.gmra.mrb[0].mxu1 %v180_v15  ;;  %v1052_v11 = vcombine.low %v1044_v63, %v1051_v0 }
  0x83   :  { %1603 = vmatpush3.bf16.msra.mxu0 %v1850_v16  ;;  %1625 = vmatpush3.bf16.msra.mxu1 %v1852_v17 }
  0x84   :  { %1604 = vmatprep.subr.bf16.mxu0 %v1853_v18  ;;  %1626 = vmatprep.subr.bf16.mxu1 %v1855_v12 }
  0x87   :  { %1605 = vmatpush3.bf16.msra.mxu0 %v1854_v19  ;;  %1627 = vmatpush3.bf16.msra.mxu1 %v1856_v20 }
  0x88   :  { %1606 = vmatprep.subr.bf16.mxu0 %v1857_v21  ;;  %1628 = vmatprep.subr.bf16.mxu1 %v1859_v22 }
  0x8b   :  { %1607 = vmatpush3.bf16.msra.mxu0 %v1858_v23  ;;  %1629 = vmatpush3.bf16.msra.mxu1 %v1860_v24  ;;  %v1569_v24 = vld [vmem:[%s2457_s4] ss:$0 sm:$0xff] }
  0x8c   :  { %1608 = vmatprep.subr.bf16.mxu0 %v1861_v25  ;;  %1630 = vmatprep.subr.bf16.mxu1 %v1863_v27 }
  0x8f   :  { %1609 = vmatpush3.bf16.msra.mxu0 %v1862_v26  ;;  %1631 = vmatpush3.bf16.msra.mxu1 %v1864_v28 }
  0x90   :  { %1610 = vmatprep.subr.bf16.mxu0 %v1865_v29  ;;  %1632 = vmatprep.subr.bf16.mxu1 %v1867_v31 }
  0x93   :  { %1611 = vmatpush3.bf16.msra.mxu0 %v1866_v30  ;;  %1633 = vmatpush3.bf16.msra.mxu1 %v1868_v32 }
  0x94   :  { %1612 = vmatprep.subr.bf16.mxu0 %v1869_v33  ;;  %1634 = vmatprep.subr.bf16.mxu1 %v1871_v35 }
  0x97   :  { %1613 = vmatpush3.bf16.msra.mxu0 %v1870_v34  ;;  %1635 = vmatpush3.bf16.msra.mxu1 %v1872_v36 }
  0x98   :  { %1614 = vmatprep.subr.bf16.mxu0 %v1873_v37  ;;  %1636 = vmatprep.subr.bf16.mxu1 %v1875_v39 }
  0x9b   :  { %1615 = vmatpush3.bf16.msra.mxu0 %v1874_v38  ;;  %1637 = vmatpush3.bf16.msra.mxu1 %v1876_v40 }
  0x9c   :  { %1616 = vmatprep.subr.bf16.mxu0 %v1877_v41  ;;  %1638 = vmatprep.subr.bf16.mxu1 %v1879_v42 }
  0x9f   :  { %1617 = vmatpush3.bf16.msra.mxu0 %v1878_v43  ;;  %1639 = vmatpush3.bf16.msra.mxu1 %v1880_v44 }
 0x155   :  { %v901_v61 = vpop.f32.mrb[0].mxu0  ;;  %v983_v62 = vpop.f32.mrb[0].mxu1 }
 0x156   :  { %v903_v1 = vpop.f32.mrb[1].mxu0  ;;  %v985_v2 = vpop.f32.mrb[1].mxu1 }
 0x157   :  { %v994_v3 = vcombine.low %v901_v61, %v903_v1  ;;  %v995_v4 = vcombine.low %v983_v62, %v985_v2  ;;  %v905_v5 = vpop.f32.mrb[2].mxu0  ;;  %v987_v6 = vpop.f32.mrb[2].mxu1 }
 0x158   :  { %v906_v7 = vpop.f32.mrb[3].mxu0  ;;  %v988_v8 = vpop.f32.mrb[3].mxu1 }
 0x159   :  { %v1002_v9 = vrot.slane %v994_v3, %v1001_v58  ;;  %v1009_v10 = vrot.slane %v995_v4, %v1001_v58 }
 0x15b   :  { %v1010_v13 = vcombine.low %v1002_v9, %v1009_v10 }
 0x15d   :  { %v1054_v14 = vadd.f32 %v1052_v11, %v1010_v13 }
 0x15f   :  { %v1055_v46 = vmax.f32 %v1054_v14, 0.0 }
 0x161   :  { %v1064_v15 = vrot.slane %v1055_v46, %v1001_v58  ;;  %v1057_v16 = vcombine.high %v1055_v46, %v1055_v46 }
 0x163   :  { %v1072_v17 = vcombine.high %v1064_v15, %v1064_v15  ;;  %v1071_v18 = vrot.slane %v1057_v16, %v1001_v58  ;;  %v1078_v20 = vpack.c.bf16 %v1064_v15, %v1064_v15 }
 0x165   :  { %v1079_v12 = vpack.c.bf16 %v1072_v17, %v1072_v17  ;;  %v1073_v19 = vcombine.high %v1071_v18, %v1071_v18  ;;  %v1080_v22 = vpack.c.bf16 %v1071_v18, %v1071_v18 }
 0x167   :  { %1377 = vmatprep.mubr.bf16.mxu0 %v1079_v12  ;;  %v1081_v21 = vpack.c.bf16 %v1073_v19, %v1073_v19 }
 0x168   :  { %1378 = vmatmul.mubr.bf16.vlgmr.msra.gmra.mrb[4].mxu0 %v1078_v20 }
 0x169   :  { %1417 = vmatprep.mubr.bf16.mxu1 %v1081_v21 }
 0x16a   :  { %1418 = vmatmul.mubr.bf16.vlgmr.msra.gmra.mrb[4].mxu1 %v1080_v22 }
 0x23b   :  { %v1618_v23 = vpop.f32.mrb[4].mxu0 }
 0x23c   :  { %v1619_v25 = vpop.f32.mrb[5].mxu0 }
 0x23d   :  { %v1620_v26 = vadd.f32 %v1619_v25, %v1618_v23  ;;  %v1621_v27 = vpop.f32.mrb[6].mxu0  ;;  %v1640_v28 = vpop.f32.mrb[4].mxu1 }
 0x23e   :  { %v1622_v29 = vpop.f32.mrb[7].mxu0  ;;  %v1641_v30 = vpop.f32.mrb[5].mxu1 }
 0x23f   :  { %v1380_v31 = vadd.f32 %v1620_v26, %v1569_v24  ;;  %v1642_v32 = vadd.f32 %v1641_v30, %v1640_v28  ;;  %v1643_v33 = vpop.f32.mrb[6].mxu1 }
 0x240   :  { %v1644_v34 = vpop.f32.mrb[7].mxu1 }
 0x241   :  { %v1420_v35 = vadd.f32 %v1642_v32, %v1380_v31 }
 0x243   :  { %1425 = vst [vmem:[#allocation3] sm:$0x3] %v1420_v35 }
 0x244   :  { %1892 = shalt.err (!%p1889_p4)
}
 0x245   :  { %s1893_s9 = scalar_lea.hbm %s2458_s5, 32 }
 0x246   :  { %p1894_p5 = scmp.ne.s32.totalorder %s2458_s5, %s1893_s9  ;;  %p1897_p6 = scmp.lt.u32.totalorder %s1893_s9, %s2458_s5 }
 0x248   :  { %p1899_p7 = pnand %p1897_p6, %p1894_p5 }
 0x24a   :  { %1902 = shalt.err (!%p1899_p7)
}
 0x24b   :  { %1435 = dma.vmem_to_hbm [thread:$0]  %s1433_s6, 32, %s2458_s5, [#allocation4]  }
 0x24c   :  { %1903 = dma.done.wait [#allocation4], 32  }
 0x24d   :  { %1904 = vsyncadd [#allocation4], 4294967264 }
 0x24e   :  { %1439 = vsyncpa [#allocation4], 1 }

</bundles_post_ra>
